<compile_context>
chip_gen: v7x
topology: tpu7x:2x2x1
jax: 0.10.0
libtpu: 0.0.40
codegen_flags: <defaults>
</compile_context>

<pallas_src>
import jax
import jax.numpy as jnp
from jax import lax
from jax.experimental import pallas as pl
from jax.experimental.pallas import tpu as pltpu

HIDDEN = 50
LANES = 128
CHUNK = 64           # rows per register-resident chunk (8 vregs of f32)


def mlp_kernel(w1_ref, b1_ref, w2_ref, c_ref, x_ref, o_ref):
    # x_ref/o_ref: (tb, 128) f32, batch mapped onto (sublane, lane) -> fully lane-dense.
    # w1_ref/b1_ref/w2_ref: (50,) f32 pre-scaled weights in SMEM; c_ref: (1,) f32 bias constant.
    c0 = c_ref[0]
    n_chunks = x_ref.shape[0] // CHUNK

    @pl.loop(0, n_chunks)
    def _(ci):
        r = pl.multiple_of(ci * CHUNK, CHUNK)
        xc = x_ref[pl.ds(r, CHUNK), :]                       # 8 vregs, loaded once per chunk

        def body(j, acc):
            # VPU FMA (scalar bcast) + single EUP tanh + VPU FMA; acc stays in vregs (unrolled).
            return acc + w2_ref[j] * jnp.tanh(xc * w1_ref[j] + b1_ref[j])

        acc = lax.fori_loop(0, HIDDEN, body, jnp.zeros_like(xc), unroll=True)
        o_ref[pl.ds(r, CHUNK), :] = acc + c0                 # one store per chunk


def neural_network_forward(x, w1, b1, w2, *, block_rows=512):
    """x: (B, 1) f32.  w1: (1, 50), b1: (1, 50), w2: (50, 1) (pre-transposed torch weights)."""
    B = x.shape[0]

    # Lane-dense layout: batch -> (rows, 128); rows rounded to CHUNK multiples, >= 2 grid steps
    # so both TensorCores on v7x get a tile.
    rows = -(-B // LANES)
    rows_c = -(-rows // CHUNK) * CHUNK                       # multiple of the in-kernel chunk
    n_tiles = max(2, -(-rows_c // block_rows))               # at least 2 grid steps
    tb = -(-(-(-rows_c // n_tiles)) // CHUNK) * CHUNK        # rows per tile, multiple of CHUNK
    rows_padded = tb * n_tiles
    b_pad = rows_padded * LANES

    x_flat = jnp.pad(x.reshape(-1).astype(jnp.float32), (0, b_pad - B))
    x2d = x_flat.reshape(rows_padded, LANES)

    # tanh-identity pre-scaling: sigmoid(h) = 0.5*(1 + tanh(h/2)).
    w1_s = 0.5 * w1.reshape(-1).astype(jnp.float32)          # (50,)
    b1_s = 0.5 * b1.reshape(-1).astype(jnp.float32)          # (50,)
    w2_s = 0.5 * w2.reshape(-1).astype(jnp.float32)          # (50,)
    c_s = jnp.sum(0.5 * w2.reshape(-1).astype(jnp.float32)).reshape(1)  # (1,)

    grid = (n_tiles,)

    cost = pl.CostEstimate(
        flops=4 * HIDDEN * b_pad,                            # two FMAs per hidden unit per element
        transcendentals=HIDDEN * b_pad,                      # one tanh per hidden unit per element
        bytes_accessed=8 * b_pad + (3 * HIDDEN + 1) * 4,     # x in + y out + tiny weights
    )

    out2d = pl.pallas_call(
        mlp_kernel,
        out_shape=jax.ShapeDtypeStruct((rows_padded, LANES), jnp.float32),
        grid=grid,
        in_specs=[
            pl.BlockSpec(memory_space=pltpu.SMEM),           # w1' scalars
            pl.BlockSpec(memory_space=pltpu.SMEM),           # b1' scalars
            pl.BlockSpec(memory_space=pltpu.SMEM),           # w2' scalars
            pl.BlockSpec(memory_space=pltpu.SMEM),           # c constant
            pl.BlockSpec((tb, LANES), lambda i: (i, 0)),     # lane-dense batch tiles
        ],
        out_specs=pl.BlockSpec((tb, LANES), lambda i: (i, 0)),
        compiler_params=pltpu.CompilerParams(
            dimension_semantics=("parallel",),               # shard batch tiles across TCs
        ),
        cost_estimate=cost,
    )(w1_s, b1_s, w2_s, c_s, x2d)

    # Back to the PyTorch (B, 1) layout; padded samples are discarded here.
    return out2d.reshape(-1)[:B].reshape(B, 1)


def init_params(key, in_dim=1, hidden=HIDDEN, out_dim=1):
    # Mimic torch's default U(-1/sqrt(fan_in), 1/sqrt(fan_in)); weights stored pre-transposed.
    k1, k2, k3 = jax.random.split(key, 3)
    bound1 = 1.0 / jnp.sqrt(in_dim)
    bound2 = 1.0 / jnp.sqrt(hidden)
    w1 = jax.random.uniform(k1, (in_dim, hidden), jnp.float32, -bound1, bound1)
    b1 = jax.random.uniform(k2, (1, hidden), jnp.float32, -bound1, bound1)
    w2 = jax.random.uniform(k3, (hidden, out_dim), jnp.float32, -bound2, bound2)
    return w1, b1, w2


if __name__ == "__main__":
    key = jax.random.PRNGKey(0)
    kx, kp, kx2 = jax.random.split(key, 3)

    w1, b1, w2 = init_params(kp)

    # Small deterministic example (matches nn.Linear(1, 50) input shape (B, 1)).
    B = 8
    x = jax.random.normal(kx, (B, 1), dtype=jnp.float32)
    out = neural_network_forward(x, w1, b1, w2)
    jax.block_until_ready(out)

    ref = jax.nn.sigmoid(x @ w1 + b1) @ w2
    assert out.shape == (B, 1)
    assert jnp.allclose(out, ref, atol=1e-4, rtol=1e-4), float(jnp.abs(out - ref).max())

    # Second check: batch not a multiple of 128 exercises the lane padding / slicing path.
    B2 = 300
    x2 = jax.random.normal(kx2, (B2, 1), dtype=jnp.float32)
    out2 = neural_network_forward(x2, w1, b1, w2)
    jax.block_until_ready(out2)
    ref2 = jax.nn.sigmoid(x2 @ w1 + b1) @ w2
    assert out2.shape == (B2, 1)
    assert jnp.allclose(out2, ref2, atol=1e-4, rtol=1e-4), float(jnp.abs(out2 - ref2).max())

    print("KERNEL_OK")
</pallas_src>

<mosaic_0001>
module attributes {stable_mosaic.version = 11 : i64} {
  func.func @mlp_kernel(%arg0: i32, %arg1: memref<50xf32, #tpu.memory_space<smem>>, %arg2: memref<50xf32, #tpu.memory_space<smem>>, %arg3: memref<50xf32, #tpu.memory_space<smem>>, %arg4: memref<1xf32, #tpu.memory_space<smem>>, %arg5: memref<64x128xf32, #tpu.memory_space<vmem>>, %arg6: memref<64x128xf32, #tpu.memory_space<vmem>>) attributes {dimension_semantics = [#tpu.dimension_semantics<parallel>], iteration_bounds = array<i64: 2>, scalar_prefetch = 0 : i64, scratch_operands = 0 : i64, tpu.core_type = #tpu.core_type<tc>, window_params = [{transform_indices = @transform_0, window_bounds = array<i64: 50>}, {transform_indices = @transform_1, window_bounds = array<i64: 50>}, {transform_indices = @transform_2, window_bounds = array<i64: 50>}, {transform_indices = @transform_3, window_bounds = array<i64: 1>}, {transform_indices = @transform_4, window_bounds = array<i64: 64, 128>}, {transform_indices = @transform_5, window_bounds = array<i64: 64, 128>}]} {
    %c0 = arith.constant 0 : index
    %0 = memref.load %arg4[%c0] : memref<1xf32, #tpu.memory_space<smem>>
    %c0_i32 = arith.constant 0 : i32
    %c1_i32 = arith.constant 1 : i32
    %1 = arith.muli %c0_i32, %c1_i32 : i32
    %c0_i32_0 = arith.constant 0 : i32
    %2 = arith.addi %c0_i32_0, %1 : i32
    %c64_i32 = arith.constant 64 : i32
    %3 = arith.muli %2, %c64_i32 : i32
    %4 = tpu.assume_multiple %3, 64 : i32
    %5 = arith.index_cast %4 : i32 to index
    %c0_1 = arith.constant 0 : index
    %6 = vector.load %arg5[%5, %c0_1] : memref<64x128xf32, #tpu.memory_space<vmem>>, vector<64x128xf32>
    %cst = arith.constant 0.000000e+00 : f32
    %7 = vector.broadcast %cst : f32 to vector<64x128xf32>
    %c0_i32_2 = arith.constant 0 : i32
    %8 = arith.index_cast %c0_i32_2 : i32 to index
    %9 = memref.load %arg3[%8] : memref<50xf32, #tpu.memory_space<smem>>
    %10 = arith.index_cast %c0_i32_2 : i32 to index
    %11 = memref.load %arg1[%10] : memref<50xf32, #tpu.memory_space<smem>>
    %12 = vector.broadcast %11 : f32 to vector<64x128xf32>
    %13 = arith.mulf %6, %12 : vector<64x128xf32>
    %14 = arith.index_cast %c0_i32_2 : i32 to index
    %15 = memref.load %arg2[%14] : memref<50xf32, #tpu.memory_space<smem>>
    %16 = vector.broadcast %15 : f32 to vector<64x128xf32>
    %17 = arith.addf %13, %16 : vector<64x128xf32>
    %18 = math.tanh %17 : vector<64x128xf32>
    %19 = vector.broadcast %9 : f32 to vector<64x128xf32>
    %20 = arith.mulf %19, %18 : vector<64x128xf32>
    %21 = arith.addf %7, %20 : vector<64x128xf32>
    %c1_i32_3 = arith.constant 1 : i32
    %22 = arith.index_cast %c1_i32_3 : i32 to index
    %23 = memref.load %arg3[%22] : memref<50xf32, #tpu.memory_space<smem>>
    %24 = arith.index_cast %c1_i32_3 : i32 to index
    %25 = memref.load %arg1[%24] : memref<50xf32, #tpu.memory_space<smem>>
    %26 = vector.broadcast %25 : f32 to vector<64x128xf32>
    %27 = arith.mulf %6, %26 : vector<64x128xf32>
    %28 = arith.index_cast %c1_i32_3 : i32 to index
    %29 = memref.load %arg2[%28] : memref<50xf32, #tpu.memory_space<smem>>
    %30 = vector.broadcast %29 : f32 to vector<64x128xf32>
    %31 = arith.addf %27, %30 : vector<64x128xf32>
    %32 = math.tanh %31 : vector<64x128xf32>
    %33 = vector.broadcast %23 : f32 to vector<64x128xf32>
    %34 = arith.mulf %33, %32 : vector<64x128xf32>
    %35 = arith.addf %21, %34 : vector<64x128xf32>
    %c2_i32 = arith.constant 2 : i32
    %36 = arith.index_cast %c2_i32 : i32 to index
    %37 = memref.load %arg3[%36] : memref<50xf32, #tpu.memory_space<smem>>
    %38 = arith.index_cast %c2_i32 : i32 to index
    %39 = memref.load %arg1[%38] : memref<50xf32, #tpu.memory_space<smem>>
    %40 = vector.broadcast %39 : f32 to vector<64x128xf32>
    %41 = arith.mulf %6, %40 : vector<64x128xf32>
    %42 = arith.index_cast %c2_i32 : i32 to index
    %43 = memref.load %arg2[%42] : memref<50xf32, #tpu.memory_space<smem>>
    %44 = vector.broadcast %43 : f32 to vector<64x128xf32>
    %45 = arith.addf %41, %44 : vector<64x128xf32>
    %46 = math.tanh %45 : vector<64x128xf32>
    %47 = vector.broadcast %37 : f32 to vector<64x128xf32>
    %48 = arith.mulf %47, %46 : vector<64x128xf32>
    %49 = arith.addf %35, %48 : vector<64x128xf32>
    %c3_i32 = arith.constant 3 : i32
    %50 = arith.index_cast %c3_i32 : i32 to index
    %51 = memref.load %arg3[%50] : memref<50xf32, #tpu.memory_space<smem>>
    %52 = arith.index_cast %c3_i32 : i32 to index
    %53 = memref.load %arg1[%52] : memref<50xf32, #tpu.memory_space<smem>>
    %54 = vector.broadcast %53 : f32 to vector<64x128xf32>
    %55 = arith.mulf %6, %54 : vector<64x128xf32>
    %56 = arith.index_cast %c3_i32 : i32 to index
    %57 = memref.load %arg2[%56] : memref<50xf32, #tpu.memory_space<smem>>
    %58 = vector.broadcast %57 : f32 to vector<64x128xf32>
    %59 = arith.addf %55, %58 : vector<64x128xf32>
    %60 = math.tanh %59 : vector<64x128xf32>
    %61 = vector.broadcast %51 : f32 to vector<64x128xf32>
    %62 = arith.mulf %61, %60 : vector<64x128xf32>
    %63 = arith.addf %49, %62 : vector<64x128xf32>
    %c4_i32 = arith.constant 4 : i32
    %64 = arith.index_cast %c4_i32 : i32 to index
    %65 = memref.load %arg3[%64] : memref<50xf32, #tpu.memory_space<smem>>
    %66 = arith.index_cast %c4_i32 : i32 to index
    %67 = memref.load %arg1[%66] : memref<50xf32, #tpu.memory_space<smem>>
    %68 = vector.broadcast %67 : f32 to vector<64x128xf32>
    %69 = arith.mulf %6, %68 : vector<64x128xf32>
    %70 = arith.index_cast %c4_i32 : i32 to index
    %71 = memref.load %arg2[%70] : memref<50xf32, #tpu.memory_space<smem>>
    %72 = vector.broadcast %71 : f32 to vector<64x128xf32>
    %73 = arith.addf %69, %72 : vector<64x128xf32>
    %74 = math.tanh %73 : vector<64x128xf32>
    %75 = vector.broadcast %65 : f32 to vector<64x128xf32>
    %76 = arith.mulf %75, %74 : vector<64x128xf32>
    %77 = arith.addf %63, %76 : vector<64x128xf32>
    %c5_i32 = arith.constant 5 : i32
    %78 = arith.index_cast %c5_i32 : i32 to index
    %79 = memref.load %arg3[%78] : memref<50xf32, #tpu.memory_space<smem>>
    %80 = arith.index_cast %c5_i32 : i32 to index
    %81 = memref.load %arg1[%80] : memref<50xf32, #tpu.memory_space<smem>>
    %82 = vector.broadcast %81 : f32 to vector<64x128xf32>
    %83 = arith.mulf %6, %82 : vector<64x128xf32>
    %84 = arith.index_cast %c5_i32 : i32 to index
    %85 = memref.load %arg2[%84] : memref<50xf32, #tpu.memory_space<smem>>
    %86 = vector.broadcast %85 : f32 to vector<64x128xf32>
    %87 = arith.addf %83, %86 : vector<64x128xf32>
    %88 = math.tanh %87 : vector<64x128xf32>
    %89 = vector.broadcast %79 : f32 to vector<64x128xf32>
    %90 = arith.mulf %89, %88 : vector<64x128xf32>
    %91 = arith.addf %77, %90 : vector<64x128xf32>
    %c6_i32 = arith.constant 6 : i32
    %92 = arith.index_cast %c6_i32 : i32 to index
    %93 = memref.load %arg3[%92] : memref<50xf32, #tpu.memory_space<smem>>
    %94 = arith.index_cast %c6_i32 : i32 to index
    %95 = memref.load %arg1[%94] : memref<50xf32, #tpu.memory_space<smem>>
    %96 = vector.broadcast %95 : f32 to vector<64x128xf32>
    %97 = arith.mulf %6, %96 : vector<64x128xf32>
    %98 = arith.index_cast %c6_i32 : i32 to index
    %99 = memref.load %arg2[%98] : memref<50xf32, #tpu.memory_space<smem>>
    %100 = vector.broadcast %99 : f32 to vector<64x128xf32>
    %101 = arith.addf %97, %100 : vector<64x128xf32>
    %102 = math.tanh %101 : vector<64x128xf32>
    %103 = vector.broadcast %93 : f32 to vector<64x128xf32>
    %104 = arith.mulf %103, %102 : vector<64x128xf32>
    %105 = arith.addf %91, %104 : vector<64x128xf32>
    %c7_i32 = arith.constant 7 : i32
    %106 = arith.index_cast %c7_i32 : i32 to index
    %107 = memref.load %arg3[%106] : memref<50xf32, #tpu.memory_space<smem>>
    %108 = arith.index_cast %c7_i32 : i32 to index
    %109 = memref.load %arg1[%108] : memref<50xf32, #tpu.memory_space<smem>>
    %110 = vector.broadcast %109 : f32 to vector<64x128xf32>
    %111 = arith.mulf %6, %110 : vector<64x128xf32>
    %112 = arith.index_cast %c7_i32 : i32 to index
    %113 = memref.load %arg2[%112] : memref<50xf32, #tpu.memory_space<smem>>
    %114 = vector.broadcast %113 : f32 to vector<64x128xf32>
    %115 = arith.addf %111, %114 : vector<64x128xf32>
    %116 = math.tanh %115 : vector<64x128xf32>
    %117 = vector.broadcast %107 : f32 to vector<64x128xf32>
    %118 = arith.mulf %117, %116 : vector<64x128xf32>
    %119 = arith.addf %105, %118 : vector<64x128xf32>
    %c8_i32 = arith.constant 8 : i32
    %120 = arith.index_cast %c8_i32 : i32 to index
    %121 = memref.load %arg3[%120] : memref<50xf32, #tpu.memory_space<smem>>
    %122 = arith.index_cast %c8_i32 : i32 to index
    %123 = memref.load %arg1[%122] : memref<50xf32, #tpu.memory_space<smem>>
    %124 = vector.broadcast %123 : f32 to vector<64x128xf32>
    %125 = arith.mulf %6, %124 : vector<64x128xf32>
    %126 = arith.index_cast %c8_i32 : i32 to index
    %127 = memref.load %arg2[%126] : memref<50xf32, #tpu.memory_space<smem>>
    %128 = vector.broadcast %127 : f32 to vector<64x128xf32>
    %129 = arith.addf %125, %128 : vector<64x128xf32>
    %130 = math.tanh %129 : vector<64x128xf32>
    %131 = vector.broadcast %121 : f32 to vector<64x128xf32>
    %132 = arith.mulf %131, %130 : vector<64x128xf32>
    %133 = arith.addf %119, %132 : vector<64x128xf32>
    %c9_i32 = arith.constant 9 : i32
    %134 = arith.index_cast %c9_i32 : i32 to index
    %135 = memref.load %arg3[%134] : memref<50xf32, #tpu.memory_space<smem>>
    %136 = arith.index_cast %c9_i32 : i32 to index
    %137 = memref.load %arg1[%136] : memref<50xf32, #tpu.memory_space<smem>>
    %138 = vector.broadcast %137 : f32 to vector<64x128xf32>
    %139 = arith.mulf %6, %138 : vector<64x128xf32>
    %140 = arith.index_cast %c9_i32 : i32 to index
    %141 = memref.load %arg2[%140] : memref<50xf32, #tpu.memory_space<smem>>
    %142 = vector.broadcast %141 : f32 to vector<64x128xf32>
    %143 = arith.addf %139, %142 : vector<64x128xf32>
    %144 = math.tanh %143 : vector<64x128xf32>
    %145 = vector.broadcast %135 : f32 to vector<64x128xf32>
    %146 = arith.mulf %145, %144 : vector<64x128xf32>
    %147 = arith.addf %133, %146 : vector<64x128xf32>
    %c10_i32 = arith.constant 10 : i32
    %148 = arith.index_cast %c10_i32 : i32 to index
    %149 = memref.load %arg3[%148] : memref<50xf32, #tpu.memory_space<smem>>
    %150 = arith.index_cast %c10_i32 : i32 to index
    %151 = memref.load %arg1[%150] : memref<50xf32, #tpu.memory_space<smem>>
    %152 = vector.broadcast %151 : f32 to vector<64x128xf32>
    %153 = arith.mulf %6, %152 : vector<64x128xf32>
    %154 = arith.index_cast %c10_i32 : i32 to index
    %155 = memref.load %arg2[%154] : memref<50xf32, #tpu.memory_space<smem>>
    %156 = vector.broadcast %155 : f32 to vector<64x128xf32>
    %157 = arith.addf %153, %156 : vector<64x128xf32>
    %158 = math.tanh %157 : vector<64x128xf32>
    %159 = vector.broadcast %149 : f32 to vector<64x128xf32>
    %160 = arith.mulf %159, %158 : vector<64x128xf32>
    %161 = arith.addf %147, %160 : vector<64x128xf32>
    %c11_i32 = arith.constant 11 : i32
    %162 = arith.index_cast %c11_i32 : i32 to index
    %163 = memref.load %arg3[%162] : memref<50xf32, #tpu.memory_space<smem>>
    %164 = arith.index_cast %c11_i32 : i32 to index
    %165 = memref.load %arg1[%164] : memref<50xf32, #tpu.memory_space<smem>>
    %166 = vector.broadcast %165 : f32 to vector<64x128xf32>
    %167 = arith.mulf %6, %166 : vector<64x128xf32>
    %168 = arith.index_cast %c11_i32 : i32 to index
    %169 = memref.load %arg2[%168] : memref<50xf32, #tpu.memory_space<smem>>
    %170 = vector.broadcast %169 : f32 to vector<64x128xf32>
    %171 = arith.addf %167, %170 : vector<64x128xf32>
    %172 = math.tanh %171 : vector<64x128xf32>
    %173 = vector.broadcast %163 : f32 to vector<64x128xf32>
    %174 = arith.mulf %173, %172 : vector<64x128xf32>
    %175 = arith.addf %161, %174 : vector<64x128xf32>
    %c12_i32 = arith.constant 12 : i32
    %176 = arith.index_cast %c12_i32 : i32 to index
    %177 = memref.load %arg3[%176] : memref<50xf32, #tpu.memory_space<smem>>
    %178 = arith.index_cast %c12_i32 : i32 to index
    %179 = memref.load %arg1[%178] : memref<50xf32, #tpu.memory_space<smem>>
    %180 = vector.broadcast %179 : f32 to vector<64x128xf32>
    %181 = arith.mulf %6, %180 : vector<64x128xf32>
    %182 = arith.index_cast %c12_i32 : i32 to index
    %183 = memref.load %arg2[%182] : memref<50xf32, #tpu.memory_space<smem>>
    %184 = vector.broadcast %183 : f32 to vector<64x128xf32>
    %185 = arith.addf %181, %184 : vector<64x128xf32>
    %186 = math.tanh %185 : vector<64x128xf32>
    %187 = vector.broadcast %177 : f32 to vector<64x128xf32>
    %188 = arith.mulf %187, %186 : vector<64x128xf32>
    %189 = arith.addf %175, %188 : vector<64x128xf32>
    %c13_i32 = arith.constant 13 : i32
    %190 = arith.index_cast %c13_i32 : i32 to index
    %191 = memref.load %arg3[%190] : memref<50xf32, #tpu.memory_space<smem>>
    %192 = arith.index_cast %c13_i32 : i32 to index
    %193 = memref.load %arg1[%192] : memref<50xf32, #tpu.memory_space<smem>>
    %194 = vector.broadcast %193 : f32 to vector<64x128xf32>
    %195 = arith.mulf %6, %194 : vector<64x128xf32>
    %196 = arith.index_cast %c13_i32 : i32 to index
    %197 = memref.load %arg2[%196] : memref<50xf32, #tpu.memory_space<smem>>
    %198 = vector.broadcast %197 : f32 to vector<64x128xf32>
    %199 = arith.addf %195, %198 : vector<64x128xf32>
    %200 = math.tanh %199 : vector<64x128xf32>
    %201 = vector.broadcast %191 : f32 to vector<64x128xf32>
    %202 = arith.mulf %201, %200 : vector<64x128xf32>
    %203 = arith.addf %189, %202 : vector<64x128xf32>
    %c14_i32 = arith.constant 14 : i32
    %204 = arith.index_cast %c14_i32 : i32 to index
    %205 = memref.load %arg3[%204] : memref<50xf32, #tpu.memory_space<smem>>
    %206 = arith.index_cast %c14_i32 : i32 to index
    %207 = memref.load %arg1[%206] : memref<50xf32, #tpu.memory_space<smem>>
    %208 = vector.broadcast %207 : f32 to vector<64x128xf32>
    %209 = arith.mulf %6, %208 : vector<64x128xf32>
    %210 = arith.index_cast %c14_i32 : i32 to index
    %211 = memref.load %arg2[%210] : memref<50xf32, #tpu.memory_space<smem>>
    %212 = vector.broadcast %211 : f32 to vector<64x128xf32>
    %213 = arith.addf %209, %212 : vector<64x128xf32>
    %214 = math.tanh %213 : vector<64x128xf32>
    %215 = vector.broadcast %205 : f32 to vector<64x128xf32>
    %216 = arith.mulf %215, %214 : vector<64x128xf32>
    %217 = arith.addf %203, %216 : vector<64x128xf32>
    %c15_i32 = arith.constant 15 : i32
    %218 = arith.index_cast %c15_i32 : i32 to index
    %219 = memref.load %arg3[%218] : memref<50xf32, #tpu.memory_space<smem>>
    %220 = arith.index_cast %c15_i32 : i32 to index
    %221 = memref.load %arg1[%220] : memref<50xf32, #tpu.memory_space<smem>>
    %222 = vector.broadcast %221 : f32 to vector<64x128xf32>
    %223 = arith.mulf %6, %222 : vector<64x128xf32>
    %224 = arith.index_cast %c15_i32 : i32 to index
    %225 = memref.load %arg2[%224] : memref<50xf32, #tpu.memory_space<smem>>
    %226 = vector.broadcast %225 : f32 to vector<64x128xf32>
    %227 = arith.addf %223, %226 : vector<64x128xf32>
    %228 = math.tanh %227 : vector<64x128xf32>
    %229 = vector.broadcast %219 : f32 to vector<64x128xf32>
    %230 = arith.mulf %229, %228 : vector<64x128xf32>
    %231 = arith.addf %217, %230 : vector<64x128xf32>
    %c16_i32 = arith.constant 16 : i32
    %232 = arith.index_cast %c16_i32 : i32 to index
    %233 = memref.load %arg3[%232] : memref<50xf32, #tpu.memory_space<smem>>
    %234 = arith.index_cast %c16_i32 : i32 to index
    %235 = memref.load %arg1[%234] : memref<50xf32, #tpu.memory_space<smem>>
    %236 = vector.broadcast %235 : f32 to vector<64x128xf32>
    %237 = arith.mulf %6, %236 : vector<64x128xf32>
    %238 = arith.index_cast %c16_i32 : i32 to index
    %239 = memref.load %arg2[%238] : memref<50xf32, #tpu.memory_space<smem>>
    %240 = vector.broadcast %239 : f32 to vector<64x128xf32>
    %241 = arith.addf %237, %240 : vector<64x128xf32>
    %242 = math.tanh %241 : vector<64x128xf32>
    %243 = vector.broadcast %233 : f32 to vector<64x128xf32>
    %244 = arith.mulf %243, %242 : vector<64x128xf32>
    %245 = arith.addf %231, %244 : vector<64x128xf32>
    %c17_i32 = arith.constant 17 : i32
    %246 = arith.index_cast %c17_i32 : i32 to index
    %247 = memref.load %arg3[%246] : memref<50xf32, #tpu.memory_space<smem>>
    %248 = arith.index_cast %c17_i32 : i32 to index
    %249 = memref.load %arg1[%248] : memref<50xf32, #tpu.memory_space<smem>>
    %250 = vector.broadcast %249 : f32 to vector<64x128xf32>
    %251 = arith.mulf %6, %250 : vector<64x128xf32>
    %252 = arith.index_cast %c17_i32 : i32 to index
    %253 = memref.load %arg2[%252] : memref<50xf32, #tpu.memory_space<smem>>
    %254 = vector.broadcast %253 : f32 to vector<64x128xf32>
    %255 = arith.addf %251, %254 : vector<64x128xf32>
    %256 = math.tanh %255 : vector<64x128xf32>
    %257 = vector.broadcast %247 : f32 to vector<64x128xf32>
    %258 = arith.mulf %257, %256 : vector<64x128xf32>
    %259 = arith.addf %245, %258 : vector<64x128xf32>
    %c18_i32 = arith.constant 18 : i32
    %260 = arith.index_cast %c18_i32 : i32 to index
    %261 = memref.load %arg3[%260] : memref<50xf32, #tpu.memory_space<smem>>
    %262 = arith.index_cast %c18_i32 : i32 to index
    %263 = memref.load %arg1[%262] : memref<50xf32, #tpu.memory_space<smem>>
    %264 = vector.broadcast %263 : f32 to vector<64x128xf32>
    %265 = arith.mulf %6, %264 : vector<64x128xf32>
    %266 = arith.index_cast %c18_i32 : i32 to index
    %267 = memref.load %arg2[%266] : memref<50xf32, #tpu.memory_space<smem>>
    %268 = vector.broadcast %267 : f32 to vector<64x128xf32>
    %269 = arith.addf %265, %268 : vector<64x128xf32>
    %270 = math.tanh %269 : vector<64x128xf32>
    %271 = vector.broadcast %261 : f32 to vector<64x128xf32>
    %272 = arith.mulf %271, %270 : vector<64x128xf32>
    %273 = arith.addf %259, %272 : vector<64x128xf32>
    %c19_i32 = arith.constant 19 : i32
    %274 = arith.index_cast %c19_i32 : i32 to index
    %275 = memref.load %arg3[%274] : memref<50xf32, #tpu.memory_space<smem>>
    %276 = arith.index_cast %c19_i32 : i32 to index
    %277 = memref.load %arg1[%276] : memref<50xf32, #tpu.memory_space<smem>>
    %278 = vector.broadcast %277 : f32 to vector<64x128xf32>
    %279 = arith.mulf %6, %278 : vector<64x128xf32>
    %280 = arith.index_cast %c19_i32 : i32 to index
    %281 = memref.load %arg2[%280] : memref<50xf32, #tpu.memory_space<smem>>
    %282 = vector.broadcast %281 : f32 to vector<64x128xf32>
    %283 = arith.addf %279, %282 : vector<64x128xf32>
    %284 = math.tanh %283 : vector<64x128xf32>
    %285 = vector.broadcast %275 : f32 to vector<64x128xf32>
    %286 = arith.mulf %285, %284 : vector<64x128xf32>
    %287 = arith.addf %273, %286 : vector<64x128xf32>
    %c20_i32 = arith.constant 20 : i32
    %288 = arith.index_cast %c20_i32 : i32 to index
    %289 = memref.load %arg3[%288] : memref<50xf32, #tpu.memory_space<smem>>
    %290 = arith.index_cast %c20_i32 : i32 to index
    %291 = memref.load %arg1[%290] : memref<50xf32, #tpu.memory_space<smem>>
    %292 = vector.broadcast %291 : f32 to vector<64x128xf32>
    %293 = arith.mulf %6, %292 : vector<64x128xf32>
    %294 = arith.index_cast %c20_i32 : i32 to index
    %295 = memref.load %arg2[%294] : memref<50xf32, #tpu.memory_space<smem>>
    %296 = vector.broadcast %295 : f32 to vector<64x128xf32>
    %297 = arith.addf %293, %296 : vector<64x128xf32>
    %298 = math.tanh %297 : vector<64x128xf32>
    %299 = vector.broadcast %289 : f32 to vector<64x128xf32>
    %300 = arith.mulf %299, %298 : vector<64x128xf32>
    %301 = arith.addf %287, %300 : vector<64x128xf32>
    %c21_i32 = arith.constant 21 : i32
    %302 = arith.index_cast %c21_i32 : i32 to index
    %303 = memref.load %arg3[%302] : memref<50xf32, #tpu.memory_space<smem>>
    %304 = arith.index_cast %c21_i32 : i32 to index
    %305 = memref.load %arg1[%304] : memref<50xf32, #tpu.memory_space<smem>>
    %306 = vector.broadcast %305 : f32 to vector<64x128xf32>
    %307 = arith.mulf %6, %306 : vector<64x128xf32>
    %308 = arith.index_cast %c21_i32 : i32 to index
    %309 = memref.load %arg2[%308] : memref<50xf32, #tpu.memory_space<smem>>
    %310 = vector.broadcast %309 : f32 to vector<64x128xf32>
    %311 = arith.addf %307, %310 : vector<64x128xf32>
    %312 = math.tanh %311 : vector<64x128xf32>
    %313 = vector.broadcast %303 : f32 to vector<64x128xf32>
    %314 = arith.mulf %313, %312 : vector<64x128xf32>
    %315 = arith.addf %301, %314 : vector<64x128xf32>
    %c22_i32 = arith.constant 22 : i32
    %316 = arith.index_cast %c22_i32 : i32 to index
    %317 = memref.load %arg3[%316] : memref<50xf32, #tpu.memory_space<smem>>
    %318 = arith.index_cast %c22_i32 : i32 to index
    %319 = memref.load %arg1[%318] : memref<50xf32, #tpu.memory_space<smem>>
    %320 = vector.broadcast %319 : f32 to vector<64x128xf32>
    %321 = arith.mulf %6, %320 : vector<64x128xf32>
    %322 = arith.index_cast %c22_i32 : i32 to index
    %323 = memref.load %arg2[%322] : memref<50xf32, #tpu.memory_space<smem>>
    %324 = vector.broadcast %323 : f32 to vector<64x128xf32>
    %325 = arith.addf %321, %324 : vector<64x128xf32>
    %326 = math.tanh %325 : vector<64x128xf32>
    %327 = vector.broadcast %317 : f32 to vector<64x128xf32>
    %328 = arith.mulf %327, %326 : vector<64x128xf32>
    %329 = arith.addf %315, %328 : vector<64x128xf32>
    %c23_i32 = arith.constant 23 : i32
    %330 = arith.index_cast %c23_i32 : i32 to index
    %331 = memref.load %arg3[%330] : memref<50xf32, #tpu.memory_space<smem>>
    %332 = arith.index_cast %c23_i32 : i32 to index
    %333 = memref.load %arg1[%332] : memref<50xf32, #tpu.memory_space<smem>>
    %334 = vector.broadcast %333 : f32 to vector<64x128xf32>
    %335 = arith.mulf %6, %334 : vector<64x128xf32>
    %336 = arith.index_cast %c23_i32 : i32 to index
    %337 = memref.load %arg2[%336] : memref<50xf32, #tpu.memory_space<smem>>
    %338 = vector.broadcast %337 : f32 to vector<64x128xf32>
    %339 = arith.addf %335, %338 : vector<64x128xf32>
    %340 = math.tanh %339 : vector<64x128xf32>
    %341 = vector.broadcast %331 : f32 to vector<64x128xf32>
    %342 = arith.mulf %341, %340 : vector<64x128xf32>
    %343 = arith.addf %329, %342 : vector<64x128xf32>
    %c24_i32 = arith.constant 24 : i32
    %344 = arith.index_cast %c24_i32 : i32 to index
    %345 = memref.load %arg3[%344] : memref<50xf32, #tpu.memory_space<smem>>
    %346 = arith.index_cast %c24_i32 : i32 to index
    %347 = memref.load %arg1[%346] : memref<50xf32, #tpu.memory_space<smem>>
    %348 = vector.broadcast %347 : f32 to vector<64x128xf32>
    %349 = arith.mulf %6, %348 : vector<64x128xf32>
    %350 = arith.index_cast %c24_i32 : i32 to index
    %351 = memref.load %arg2[%350] : memref<50xf32, #tpu.memory_space<smem>>
    %352 = vector.broadcast %351 : f32 to vector<64x128xf32>
    %353 = arith.addf %349, %352 : vector<64x128xf32>
    %354 = math.tanh %353 : vector<64x128xf32>
    %355 = vector.broadcast %345 : f32 to vector<64x128xf32>
    %356 = arith.mulf %355, %354 : vector<64x128xf32>
    %357 = arith.addf %343, %356 : vector<64x128xf32>
    %c25_i32 = arith.constant 25 : i32
    %358 = arith.index_cast %c25_i32 : i32 to index
    %359 = memref.load %arg3[%358] : memref<50xf32, #tpu.memory_space<smem>>
    %360 = arith.index_cast %c25_i32 : i32 to index
    %361 = memref.load %arg1[%360] : memref<50xf32, #tpu.memory_space<smem>>
    %362 = vector.broadcast %361 : f32 to vector<64x128xf32>
    %363 = arith.mulf %6, %362 : vector<64x128xf32>
    %364 = arith.index_cast %c25_i32 : i32 to index
    %365 = memref.load %arg2[%364] : memref<50xf32, #tpu.memory_space<smem>>
    %366 = vector.broadcast %365 : f32 to vector<64x128xf32>
    %367 = arith.addf %363, %366 : vector<64x128xf32>
    %368 = math.tanh %367 : vector<64x128xf32>
    %369 = vector.broadcast %359 : f32 to vector<64x128xf32>
    %370 = arith.mulf %369, %368 : vector<64x128xf32>
    %371 = arith.addf %357, %370 : vector<64x128xf32>
    %c26_i32 = arith.constant 26 : i32
    %372 = arith.index_cast %c26_i32 : i32 to index
    %373 = memref.load %arg3[%372] : memref<50xf32, #tpu.memory_space<smem>>
    %374 = arith.index_cast %c26_i32 : i32 to index
    %375 = memref.load %arg1[%374] : memref<50xf32, #tpu.memory_space<smem>>
    %376 = vector.broadcast %375 : f32 to vector<64x128xf32>
    %377 = arith.mulf %6, %376 : vector<64x128xf32>
    %378 = arith.index_cast %c26_i32 : i32 to index
    %379 = memref.load %arg2[%378] : memref<50xf32, #tpu.memory_space<smem>>
    %380 = vector.broadcast %379 : f32 to vector<64x128xf32>
    %381 = arith.addf %377, %380 : vector<64x128xf32>
    %382 = math.tanh %381 : vector<64x128xf32>
    %383 = vector.broadcast %373 : f32 to vector<64x128xf32>
    %384 = arith.mulf %383, %382 : vector<64x128xf32>
    %385 = arith.addf %371, %384 : vector<64x128xf32>
    %c27_i32 = arith.constant 27 : i32
    %386 = arith.index_cast %c27_i32 : i32 to index
    %387 = memref.load %arg3[%386] : memref<50xf32, #tpu.memory_space<smem>>
    %388 = arith.index_cast %c27_i32 : i32 to index
    %389 = memref.load %arg1[%388] : memref<50xf32, #tpu.memory_space<smem>>
    %390 = vector.broadcast %389 : f32 to vector<64x128xf32>
    %391 = arith.mulf %6, %390 : vector<64x128xf32>
    %392 = arith.index_cast %c27_i32 : i32 to index
    %393 = memref.load %arg2[%392] : memref<50xf32, #tpu.memory_space<smem>>
    %394 = vector.broadcast %393 : f32 to vector<64x128xf32>
    %395 = arith.addf %391, %394 : vector<64x128xf32>
    %396 = math.tanh %395 : vector<64x128xf32>
    %397 = vector.broadcast %387 : f32 to vector<64x128xf32>
    %398 = arith.mulf %397, %396 : vector<64x128xf32>
    %399 = arith.addf %385, %398 : vector<64x128xf32>
    %c28_i32 = arith.constant 28 : i32
    %400 = arith.index_cast %c28_i32 : i32 to index
    %401 = memref.load %arg3[%400] : memref<50xf32, #tpu.memory_space<smem>>
    %402 = arith.index_cast %c28_i32 : i32 to index
    %403 = memref.load %arg1[%402] : memref<50xf32, #tpu.memory_space<smem>>
    %404 = vector.broadcast %403 : f32 to vector<64x128xf32>
    %405 = arith.mulf %6, %404 : vector<64x128xf32>
    %406 = arith.index_cast %c28_i32 : i32 to index
    %407 = memref.load %arg2[%406] : memref<50xf32, #tpu.memory_space<smem>>
    %408 = vector.broadcast %407 : f32 to vector<64x128xf32>
    %409 = arith.addf %405, %408 : vector<64x128xf32>
    %410 = math.tanh %409 : vector<64x128xf32>
    %411 = vector.broadcast %401 : f32 to vector<64x128xf32>
    %412 = arith.mulf %411, %410 : vector<64x128xf32>
    %413 = arith.addf %399, %412 : vector<64x128xf32>
    %c29_i32 = arith.constant 29 : i32
    %414 = arith.index_cast %c29_i32 : i32 to index
    %415 = memref.load %arg3[%414] : memref<50xf32, #tpu.memory_space<smem>>
    %416 = arith.index_cast %c29_i32 : i32 to index
    %417 = memref.load %arg1[%416] : memref<50xf32, #tpu.memory_space<smem>>
    %418 = vector.broadcast %417 : f32 to vector<64x128xf32>
    %419 = arith.mulf %6, %418 : vector<64x128xf32>
    %420 = arith.index_cast %c29_i32 : i32 to index
    %421 = memref.load %arg2[%420] : memref<50xf32, #tpu.memory_space<smem>>
    %422 = vector.broadcast %421 : f32 to vector<64x128xf32>
    %423 = arith.addf %419, %422 : vector<64x128xf32>
    %424 = math.tanh %423 : vector<64x128xf32>
    %425 = vector.broadcast %415 : f32 to vector<64x128xf32>
    %426 = arith.mulf %425, %424 : vector<64x128xf32>
    %427 = arith.addf %413, %426 : vector<64x128xf32>
    %c30_i32 = arith.constant 30 : i32
    %428 = arith.index_cast %c30_i32 : i32 to index
    %429 = memref.load %arg3[%428] : memref<50xf32, #tpu.memory_space<smem>>
    %430 = arith.index_cast %c30_i32 : i32 to index
    %431 = memref.load %arg1[%430] : memref<50xf32, #tpu.memory_space<smem>>
    %432 = vector.broadcast %431 : f32 to vector<64x128xf32>
    %433 = arith.mulf %6, %432 : vector<64x128xf32>
    %434 = arith.index_cast %c30_i32 : i32 to index
    %435 = memref.load %arg2[%434] : memref<50xf32, #tpu.memory_space<smem>>
    %436 = vector.broadcast %435 : f32 to vector<64x128xf32>
    %437 = arith.addf %433, %436 : vector<64x128xf32>
    %438 = math.tanh %437 : vector<64x128xf32>
    %439 = vector.broadcast %429 : f32 to vector<64x128xf32>
    %440 = arith.mulf %439, %438 : vector<64x128xf32>
    %441 = arith.addf %427, %440 : vector<64x128xf32>
    %c31_i32 = arith.constant 31 : i32
    %442 = arith.index_cast %c31_i32 : i32 to index
    %443 = memref.load %arg3[%442] : memref<50xf32, #tpu.memory_space<smem>>
    %444 = arith.index_cast %c31_i32 : i32 to index
    %445 = memref.load %arg1[%444] : memref<50xf32, #tpu.memory_space<smem>>
    %446 = vector.broadcast %445 : f32 to vector<64x128xf32>
    %447 = arith.mulf %6, %446 : vector<64x128xf32>
    %448 = arith.index_cast %c31_i32 : i32 to index
    %449 = memref.load %arg2[%448] : memref<50xf32, #tpu.memory_space<smem>>
    %450 = vector.broadcast %449 : f32 to vector<64x128xf32>
    %451 = arith.addf %447, %450 : vector<64x128xf32>
    %452 = math.tanh %451 : vector<64x128xf32>
    %453 = vector.broadcast %443 : f32 to vector<64x128xf32>
    %454 = arith.mulf %453, %452 : vector<64x128xf32>
    %455 = arith.addf %441, %454 : vector<64x128xf32>
    %c32_i32 = arith.constant 32 : i32
    %456 = arith.index_cast %c32_i32 : i32 to index
    %457 = memref.load %arg3[%456] : memref<50xf32, #tpu.memory_space<smem>>
    %458 = arith.index_cast %c32_i32 : i32 to index
    %459 = memref.load %arg1[%458] : memref<50xf32, #tpu.memory_space<smem>>
    %460 = vector.broadcast %459 : f32 to vector<64x128xf32>
    %461 = arith.mulf %6, %460 : vector<64x128xf32>
    %462 = arith.index_cast %c32_i32 : i32 to index
    %463 = memref.load %arg2[%462] : memref<50xf32, #tpu.memory_space<smem>>
    %464 = vector.broadcast %463 : f32 to vector<64x128xf32>
    %465 = arith.addf %461, %464 : vector<64x128xf32>
    %466 = math.tanh %465 : vector<64x128xf32>
    %467 = vector.broadcast %457 : f32 to vector<64x128xf32>
    %468 = arith.mulf %467, %466 : vector<64x128xf32>
    %469 = arith.addf %455, %468 : vector<64x128xf32>
    %c33_i32 = arith.constant 33 : i32
    %470 = arith.index_cast %c33_i32 : i32 to index
    %471 = memref.load %arg3[%470] : memref<50xf32, #tpu.memory_space<smem>>
    %472 = arith.index_cast %c33_i32 : i32 to index
    %473 = memref.load %arg1[%472] : memref<50xf32, #tpu.memory_space<smem>>
    %474 = vector.broadcast %473 : f32 to vector<64x128xf32>
    %475 = arith.mulf %6, %474 : vector<64x128xf32>
    %476 = arith.index_cast %c33_i32 : i32 to index
    %477 = memref.load %arg2[%476] : memref<50xf32, #tpu.memory_space<smem>>
    %478 = vector.broadcast %477 : f32 to vector<64x128xf32>
    %479 = arith.addf %475, %478 : vector<64x128xf32>
    %480 = math.tanh %479 : vector<64x128xf32>
    %481 = vector.broadcast %471 : f32 to vector<64x128xf32>
    %482 = arith.mulf %481, %480 : vector<64x128xf32>
    %483 = arith.addf %469, %482 : vector<64x128xf32>
    %c34_i32 = arith.constant 34 : i32
    %484 = arith.index_cast %c34_i32 : i32 to index
    %485 = memref.load %arg3[%484] : memref<50xf32, #tpu.memory_space<smem>>
    %486 = arith.index_cast %c34_i32 : i32 to index
    %487 = memref.load %arg1[%486] : memref<50xf32, #tpu.memory_space<smem>>
    %488 = vector.broadcast %487 : f32 to vector<64x128xf32>
    %489 = arith.mulf %6, %488 : vector<64x128xf32>
    %490 = arith.index_cast %c34_i32 : i32 to index
    %491 = memref.load %arg2[%490] : memref<50xf32, #tpu.memory_space<smem>>
    %492 = vector.broadcast %491 : f32 to vector<64x128xf32>
    %493 = arith.addf %489, %492 : vector<64x128xf32>
    %494 = math.tanh %493 : vector<64x128xf32>
    %495 = vector.broadcast %485 : f32 to vector<64x128xf32>
    %496 = arith.mulf %495, %494 : vector<64x128xf32>
    %497 = arith.addf %483, %496 : vector<64x128xf32>
    %c35_i32 = arith.constant 35 : i32
    %498 = arith.index_cast %c35_i32 : i32 to index
    %499 = memref.load %arg3[%498] : memref<50xf32, #tpu.memory_space<smem>>
    %500 = arith.index_cast %c35_i32 : i32 to index
    %501 = memref.load %arg1[%500] : memref<50xf32, #tpu.memory_space<smem>>
    %502 = vector.broadcast %501 : f32 to vector<64x128xf32>
    %503 = arith.mulf %6, %502 : vector<64x128xf32>
    %504 = arith.index_cast %c35_i32 : i32 to index
    %505 = memref.load %arg2[%504] : memref<50xf32, #tpu.memory_space<smem>>
    %506 = vector.broadcast %505 : f32 to vector<64x128xf32>
    %507 = arith.addf %503, %506 : vector<64x128xf32>
    %508 = math.tanh %507 : vector<64x128xf32>
    %509 = vector.broadcast %499 : f32 to vector<64x128xf32>
    %510 = arith.mulf %509, %508 : vector<64x128xf32>
    %511 = arith.addf %497, %510 : vector<64x128xf32>
    %c36_i32 = arith.constant 36 : i32
    %512 = arith.index_cast %c36_i32 : i32 to index
    %513 = memref.load %arg3[%512] : memref<50xf32, #tpu.memory_space<smem>>
    %514 = arith.index_cast %c36_i32 : i32 to index
    %515 = memref.load %arg1[%514] : memref<50xf32, #tpu.memory_space<smem>>
    %516 = vector.broadcast %515 : f32 to vector<64x128xf32>
    %517 = arith.mulf %6, %516 : vector<64x128xf32>
    %518 = arith.index_cast %c36_i32 : i32 to index
    %519 = memref.load %arg2[%518] : memref<50xf32, #tpu.memory_space<smem>>
    %520 = vector.broadcast %519 : f32 to vector<64x128xf32>
    %521 = arith.addf %517, %520 : vector<64x128xf32>
    %522 = math.tanh %521 : vector<64x128xf32>
    %523 = vector.broadcast %513 : f32 to vector<64x128xf32>
    %524 = arith.mulf %523, %522 : vector<64x128xf32>
    %525 = arith.addf %511, %524 : vector<64x128xf32>
    %c37_i32 = arith.constant 37 : i32
    %526 = arith.index_cast %c37_i32 : i32 to index
    %527 = memref.load %arg3[%526] : memref<50xf32, #tpu.memory_space<smem>>
    %528 = arith.index_cast %c37_i32 : i32 to index
    %529 = memref.load %arg1[%528] : memref<50xf32, #tpu.memory_space<smem>>
    %530 = vector.broadcast %529 : f32 to vector<64x128xf32>
    %531 = arith.mulf %6, %530 : vector<64x128xf32>
    %532 = arith.index_cast %c37_i32 : i32 to index
    %533 = memref.load %arg2[%532] : memref<50xf32, #tpu.memory_space<smem>>
    %534 = vector.broadcast %533 : f32 to vector<64x128xf32>
    %535 = arith.addf %531, %534 : vector<64x128xf32>
    %536 = math.tanh %535 : vector<64x128xf32>
    %537 = vector.broadcast %527 : f32 to vector<64x128xf32>
    %538 = arith.mulf %537, %536 : vector<64x128xf32>
    %539 = arith.addf %525, %538 : vector<64x128xf32>
    %c38_i32 = arith.constant 38 : i32
    %540 = arith.index_cast %c38_i32 : i32 to index
    %541 = memref.load %arg3[%540] : memref<50xf32, #tpu.memory_space<smem>>
    %542 = arith.index_cast %c38_i32 : i32 to index
    %543 = memref.load %arg1[%542] : memref<50xf32, #tpu.memory_space<smem>>
    %544 = vector.broadcast %543 : f32 to vector<64x128xf32>
    %545 = arith.mulf %6, %544 : vector<64x128xf32>
    %546 = arith.index_cast %c38_i32 : i32 to index
    %547 = memref.load %arg2[%546] : memref<50xf32, #tpu.memory_space<smem>>
    %548 = vector.broadcast %547 : f32 to vector<64x128xf32>
    %549 = arith.addf %545, %548 : vector<64x128xf32>
    %550 = math.tanh %549 : vector<64x128xf32>
    %551 = vector.broadcast %541 : f32 to vector<64x128xf32>
    %552 = arith.mulf %551, %550 : vector<64x128xf32>
    %553 = arith.addf %539, %552 : vector<64x128xf32>
    %c39_i32 = arith.constant 39 : i32
    %554 = arith.index_cast %c39_i32 : i32 to index
    %555 = memref.load %arg3[%554] : memref<50xf32, #tpu.memory_space<smem>>
    %556 = arith.index_cast %c39_i32 : i32 to index
    %557 = memref.load %arg1[%556] : memref<50xf32, #tpu.memory_space<smem>>
    %558 = vector.broadcast %557 : f32 to vector<64x128xf32>
    %559 = arith.mulf %6, %558 : vector<64x128xf32>
    %560 = arith.index_cast %c39_i32 : i32 to index
    %561 = memref.load %arg2[%560] : memref<50xf32, #tpu.memory_space<smem>>
    %562 = vector.broadcast %561 : f32 to vector<64x128xf32>
    %563 = arith.addf %559, %562 : vector<64x128xf32>
    %564 = math.tanh %563 : vector<64x128xf32>
    %565 = vector.broadcast %555 : f32 to vector<64x128xf32>
    %566 = arith.mulf %565, %564 : vector<64x128xf32>
    %567 = arith.addf %553, %566 : vector<64x128xf32>
    %c40_i32 = arith.constant 40 : i32
    %568 = arith.index_cast %c40_i32 : i32 to index
    %569 = memref.load %arg3[%568] : memref<50xf32, #tpu.memory_space<smem>>
    %570 = arith.index_cast %c40_i32 : i32 to index
    %571 = memref.load %arg1[%570] : memref<50xf32, #tpu.memory_space<smem>>
    %572 = vector.broadcast %571 : f32 to vector<64x128xf32>
    %573 = arith.mulf %6, %572 : vector<64x128xf32>
    %574 = arith.index_cast %c40_i32 : i32 to index
    %575 = memref.load %arg2[%574] : memref<50xf32, #tpu.memory_space<smem>>
    %576 = vector.broadcast %575 : f32 to vector<64x128xf32>
    %577 = arith.addf %573, %576 : vector<64x128xf32>
    %578 = math.tanh %577 : vector<64x128xf32>
    %579 = vector.broadcast %569 : f32 to vector<64x128xf32>
    %580 = arith.mulf %579, %578 : vector<64x128xf32>
    %581 = arith.addf %567, %580 : vector<64x128xf32>
    %c41_i32 = arith.constant 41 : i32
    %582 = arith.index_cast %c41_i32 : i32 to index
    %583 = memref.load %arg3[%582] : memref<50xf32, #tpu.memory_space<smem>>
    %584 = arith.index_cast %c41_i32 : i32 to index
    %585 = memref.load %arg1[%584] : memref<50xf32, #tpu.memory_space<smem>>
    %586 = vector.broadcast %585 : f32 to vector<64x128xf32>
    %587 = arith.mulf %6, %586 : vector<64x128xf32>
    %588 = arith.index_cast %c41_i32 : i32 to index
    %589 = memref.load %arg2[%588] : memref<50xf32, #tpu.memory_space<smem>>
    %590 = vector.broadcast %589 : f32 to vector<64x128xf32>
    %591 = arith.addf %587, %590 : vector<64x128xf32>
    %592 = math.tanh %591 : vector<64x128xf32>
    %593 = vector.broadcast %583 : f32 to vector<64x128xf32>
    %594 = arith.mulf %593, %592 : vector<64x128xf32>
    %595 = arith.addf %581, %594 : vector<64x128xf32>
    %c42_i32 = arith.constant 42 : i32
    %596 = arith.index_cast %c42_i32 : i32 to index
    %597 = memref.load %arg3[%596] : memref<50xf32, #tpu.memory_space<smem>>
    %598 = arith.index_cast %c42_i32 : i32 to index
    %599 = memref.load %arg1[%598] : memref<50xf32, #tpu.memory_space<smem>>
    %600 = vector.broadcast %599 : f32 to vector<64x128xf32>
    %601 = arith.mulf %6, %600 : vector<64x128xf32>
    %602 = arith.index_cast %c42_i32 : i32 to index
    %603 = memref.load %arg2[%602] : memref<50xf32, #tpu.memory_space<smem>>
    %604 = vector.broadcast %603 : f32 to vector<64x128xf32>
    %605 = arith.addf %601, %604 : vector<64x128xf32>
    %606 = math.tanh %605 : vector<64x128xf32>
    %607 = vector.broadcast %597 : f32 to vector<64x128xf32>
    %608 = arith.mulf %607, %606 : vector<64x128xf32>
    %609 = arith.addf %595, %608 : vector<64x128xf32>
    %c43_i32 = arith.constant 43 : i32
    %610 = arith.index_cast %c43_i32 : i32 to index
    %611 = memref.load %arg3[%610] : memref<50xf32, #tpu.memory_space<smem>>
    %612 = arith.index_cast %c43_i32 : i32 to index
    %613 = memref.load %arg1[%612] : memref<50xf32, #tpu.memory_space<smem>>
    %614 = vector.broadcast %613 : f32 to vector<64x128xf32>
    %615 = arith.mulf %6, %614 : vector<64x128xf32>
    %616 = arith.index_cast %c43_i32 : i32 to index
    %617 = memref.load %arg2[%616] : memref<50xf32, #tpu.memory_space<smem>>
    %618 = vector.broadcast %617 : f32 to vector<64x128xf32>
    %619 = arith.addf %615, %618 : vector<64x128xf32>
    %620 = math.tanh %619 : vector<64x128xf32>
    %621 = vector.broadcast %611 : f32 to vector<64x128xf32>
    %622 = arith.mulf %621, %620 : vector<64x128xf32>
    %623 = arith.addf %609, %622 : vector<64x128xf32>
    %c44_i32 = arith.constant 44 : i32
    %624 = arith.index_cast %c44_i32 : i32 to index
    %625 = memref.load %arg3[%624] : memref<50xf32, #tpu.memory_space<smem>>
    %626 = arith.index_cast %c44_i32 : i32 to index
    %627 = memref.load %arg1[%626] : memref<50xf32, #tpu.memory_space<smem>>
    %628 = vector.broadcast %627 : f32 to vector<64x128xf32>
    %629 = arith.mulf %6, %628 : vector<64x128xf32>
    %630 = arith.index_cast %c44_i32 : i32 to index
    %631 = memref.load %arg2[%630] : memref<50xf32, #tpu.memory_space<smem>>
    %632 = vector.broadcast %631 : f32 to vector<64x128xf32>
    %633 = arith.addf %629, %632 : vector<64x128xf32>
    %634 = math.tanh %633 : vector<64x128xf32>
    %635 = vector.broadcast %625 : f32 to vector<64x128xf32>
    %636 = arith.mulf %635, %634 : vector<64x128xf32>
    %637 = arith.addf %623, %636 : vector<64x128xf32>
    %c45_i32 = arith.constant 45 : i32
    %638 = arith.index_cast %c45_i32 : i32 to index
    %639 = memref.load %arg3[%638] : memref<50xf32, #tpu.memory_space<smem>>
    %640 = arith.index_cast %c45_i32 : i32 to index
    %641 = memref.load %arg1[%640] : memref<50xf32, #tpu.memory_space<smem>>
    %642 = vector.broadcast %641 : f32 to vector<64x128xf32>
    %643 = arith.mulf %6, %642 : vector<64x128xf32>
    %644 = arith.index_cast %c45_i32 : i32 to index
    %645 = memref.load %arg2[%644] : memref<50xf32, #tpu.memory_space<smem>>
    %646 = vector.broadcast %645 : f32 to vector<64x128xf32>
    %647 = arith.addf %643, %646 : vector<64x128xf32>
    %648 = math.tanh %647 : vector<64x128xf32>
    %649 = vector.broadcast %639 : f32 to vector<64x128xf32>
    %650 = arith.mulf %649, %648 : vector<64x128xf32>
    %651 = arith.addf %637, %650 : vector<64x128xf32>
    %c46_i32 = arith.constant 46 : i32
    %652 = arith.index_cast %c46_i32 : i32 to index
    %653 = memref.load %arg3[%652] : memref<50xf32, #tpu.memory_space<smem>>
    %654 = arith.index_cast %c46_i32 : i32 to index
    %655 = memref.load %arg1[%654] : memref<50xf32, #tpu.memory_space<smem>>
    %656 = vector.broadcast %655 : f32 to vector<64x128xf32>
    %657 = arith.mulf %6, %656 : vector<64x128xf32>
    %658 = arith.index_cast %c46_i32 : i32 to index
    %659 = memref.load %arg2[%658] : memref<50xf32, #tpu.memory_space<smem>>
    %660 = vector.broadcast %659 : f32 to vector<64x128xf32>
    %661 = arith.addf %657, %660 : vector<64x128xf32>
    %662 = math.tanh %661 : vector<64x128xf32>
    %663 = vector.broadcast %653 : f32 to vector<64x128xf32>
    %664 = arith.mulf %663, %662 : vector<64x128xf32>
    %665 = arith.addf %651, %664 : vector<64x128xf32>
    %c47_i32 = arith.constant 47 : i32
    %666 = arith.index_cast %c47_i32 : i32 to index
    %667 = memref.load %arg3[%666] : memref<50xf32, #tpu.memory_space<smem>>
    %668 = arith.index_cast %c47_i32 : i32 to index
    %669 = memref.load %arg1[%668] : memref<50xf32, #tpu.memory_space<smem>>
    %670 = vector.broadcast %669 : f32 to vector<64x128xf32>
    %671 = arith.mulf %6, %670 : vector<64x128xf32>
    %672 = arith.index_cast %c47_i32 : i32 to index
    %673 = memref.load %arg2[%672] : memref<50xf32, #tpu.memory_space<smem>>
    %674 = vector.broadcast %673 : f32 to vector<64x128xf32>
    %675 = arith.addf %671, %674 : vector<64x128xf32>
    %676 = math.tanh %675 : vector<64x128xf32>
    %677 = vector.broadcast %667 : f32 to vector<64x128xf32>
    %678 = arith.mulf %677, %676 : vector<64x128xf32>
    %679 = arith.addf %665, %678 : vector<64x128xf32>
    %c48_i32 = arith.constant 48 : i32
    %680 = arith.index_cast %c48_i32 : i32 to index
    %681 = memref.load %arg3[%680] : memref<50xf32, #tpu.memory_space<smem>>
    %682 = arith.index_cast %c48_i32 : i32 to index
    %683 = memref.load %arg1[%682] : memref<50xf32, #tpu.memory_space<smem>>
    %684 = vector.broadcast %683 : f32 to vector<64x128xf32>
    %685 = arith.mulf %6, %684 : vector<64x128xf32>
    %686 = arith.index_cast %c48_i32 : i32 to index
    %687 = memref.load %arg2[%686] : memref<50xf32, #tpu.memory_space<smem>>
    %688 = vector.broadcast %687 : f32 to vector<64x128xf32>
    %689 = arith.addf %685, %688 : vector<64x128xf32>
    %690 = math.tanh %689 : vector<64x128xf32>
    %691 = vector.broadcast %681 : f32 to vector<64x128xf32>
    %692 = arith.mulf %691, %690 : vector<64x128xf32>
    %693 = arith.addf %679, %692 : vector<64x128xf32>
    %c49_i32 = arith.constant 49 : i32
    %694 = arith.index_cast %c49_i32 : i32 to index
    %695 = memref.load %arg3[%694] : memref<50xf32, #tpu.memory_space<smem>>
    %696 = arith.index_cast %c49_i32 : i32 to index
    %697 = memref.load %arg1[%696] : memref<50xf32, #tpu.memory_space<smem>>
    %698 = vector.broadcast %697 : f32 to vector<64x128xf32>
    %699 = arith.mulf %6, %698 : vector<64x128xf32>
    %700 = arith.index_cast %c49_i32 : i32 to index
    %701 = memref.load %arg2[%700] : memref<50xf32, #tpu.memory_space<smem>>
    %702 = vector.broadcast %701 : f32 to vector<64x128xf32>
    %703 = arith.addf %699, %702 : vector<64x128xf32>
    %704 = math.tanh %703 : vector<64x128xf32>
    %705 = vector.broadcast %695 : f32 to vector<64x128xf32>
    %706 = arith.mulf %705, %704 : vector<64x128xf32>
    %707 = arith.addf %693, %706 : vector<64x128xf32>
    %c50_i32 = arith.constant 50 : i32
    %708 = vector.broadcast %0 : f32 to vector<64x128xf32>
    %709 = arith.addf %707, %708 : vector<64x128xf32>
    %710 = arith.index_cast %4 : i32 to index
    %c0_4 = arith.constant 0 : index
    %711 = vector.load %arg6[%710, %c0_4] : memref<64x128xf32, #tpu.memory_space<vmem>>, vector<64x128xf32>
    tpu.vector_store %arg6[%710, %c0_4], %709 {strides = array<i32>} : memref<64x128xf32, #tpu.memory_space<vmem>>, vector<64x128xf32>,
    %c1_i32_5 = arith.constant 1 : i32
    return
  }
  func.func @transform_0(%arg0: i32) -> i32 {
    %c0_i32 = arith.constant 0 : i32
    %c0_i32_0 = arith.constant 0 : i32
    return %c0_i32 : i32
  }
  func.func @transform_1(%arg0: i32) -> i32 {
    %c0_i32 = arith.constant 0 : i32
    %c0_i32_0 = arith.constant 0 : i32
    return %c0_i32 : i32
  }
  func.func @transform_2(%arg0: i32) -> i32 {
    %c0_i32 = arith.constant 0 : i32
    %c0_i32_0 = arith.constant 0 : i32
    return %c0_i32 : i32
  }
  func.func @transform_3(%arg0: i32) -> i32 {
    %c0_i32 = arith.constant 0 : i32
    %c0_i32_0 = arith.constant 0 : i32
    return %c0_i32 : i32
  }
  func.func @transform_4(%arg0: i32) -> (i32, i32) {
    %c0_i32 = arith.constant 0 : i32
    %c0_i32_0 = arith.constant 0 : i32
    return %arg0, %c0_i32 : i32, i32
  }
  func.func @transform_5(%arg0: i32) -> (i32, i32) {
    %c0_i32 = arith.constant 0 : i32
    %c0_i32_0 = arith.constant 0 : i32
    return %arg0, %c0_i32 : i32, i32
  }
}

</mosaic_0001>

<bundles_post_ra>
// kernel: tpu_custom_call.1
= control target key start
LH: loop header
LB: loop body
LE: loop exit
PB: predicated region body
PF: predicated region fallthrough
CT: control target
= control target key end

     0   :  { %s5965_s0 = inlined_call_operand.vmem [shape: f32[50], index: 0, kind: input, shape index: {}]   ;;  %s5966_s1 = inlined_call_operand.vmem [shape: f32[50], index: 1, kind: input, shape index: {}]   ;;  %s5967_s2 = inlined_call_operand.vmem [shape: f32[50], index: 2, kind: input, shape index: {}]   ;;  %s5968_s3 = inlined_call_operand.<no memory space> [shape: f32[1], index: 3, kind: input, shape index: {}]   ;;  %s5969_s4 = inlined_call_operand.hbm [shape: f32[128,128], index: 4, kind: input, shape index: {}]   ;;  %s5970_s5 = inlined_call_operand.hbm [shape: f32[128,128], index: 5, kind: output, shape index: {}]  }
   0x1   :  { %10 = sst [smem:[#allocation2]] %s5968_s3 }
   0x2   :  { %11 = vsyncpa [#allocation6], 0 }
   0x3   :  { %12 = vsyncpa [#allocation8], 0 }
   0x4   :  { %13 = vsyncpa [#allocation4], 0 }
   0x5   :  { %15 = vsyncpa [#allocation4 + $0x1], 0 }
   0x6   :  { %16 = vsyncpa [#allocation5], 0 }
   0x7   :  { %18 = vsyncpa [#allocation5 + $0x1], 0  ;;  %s4004_s20 = smov 0   ;;  %s4006_s21 = smov 0  }
   0x8   :  { %s4008_s22 = smov 0   ;;  %s4010_s23 = smov 0  }
   0x9 LB: > { %s4025_s3 = sadd.s32 4294967295, %s3960_s23   ;;  %s2729_s24 = sadd.s32 4294967294, %s3960_s23   ;;  %s3960_s23 = sphi %s4010_s23, %s5992_s23   ;;  %s3956_s22 = sphi %s4008_s22, %s5991_s22   ;;  %s3952_s21 = sphi %s4006_s21, %s5990_s21   ;;  %s3948_s20 = sphi %s4004_s20, %s5989_s20  }
   0xa   : > { %p128_p0 = scmp.ne.s32.totalorder %s3952_s21, %s3948_s20  ;;  %p5971_p1 = scmp.eq.s32.totalorder %s4025_s3, 0 }
   0xb   : > { %p158_p3 = scmp.eq.s32.totalorder %s2729_s24, 1  ;;  %p2730_p5 = scmp.ge.s32.totalorder %s3960_s23, 1 }
   0xc   : > { %p4034_p4 = por %p5971_p1, %p128_p0  ;;  %p165_p7 = scmp.lt.s32.totalorder %s3960_s23, 3 }
   0xd   : > { %p4039_p6 = por %p158_p3, %p128_p0  ;;  %s189_s29 = sshll.u32 %s5966_s1, 4  ;;  %s190_s29 = int_to_ptr.vmem [resolvable:$true] %s189_s29 }
   0xe   : > { %s5974_s25 = scalar_select %p4034_p4, 1, 0 }
   0xf   : > { %s5975_s26 = scalar_select %p4039_p6, 1, 0 }
  0x10   : > { %p4047_p8 = pnand %p2730_p5, %p165_p7  ;;  %s178_s8 = sshll.u32 %s5965_s0, 4  ;;  %s179_s8 = int_to_ptr.vmem [resolvable:$true] %s178_s8 }
  0x11   : > { %s200_s12 = sshll.u32 %s5967_s2, 4  ;;  %s3811_s13 = scalar_lea.vmem %s190_s29, 16  ;;  %s4066_s12 = int_to_ptr.vmem [resolvable:$true] %s200_s12 }
  0x12   : > { %s5976_s30 = scalar_select %p4047_p8, 1, 0 }
  0x13   : > { %p2914_p10 = pneg %p4047_p8  ;;  %p3812_p12 = scmp.ne.s32.totalorder %s190_s29, %s3811_s13 }
  0x14   : > { %p3819_p5 = scmp.lt.s32.totalorder %s190_s29, %s190_s29  ;;  %p3820_p7 = scmp.lt.s32.totalorder %s3811_s13, %s3811_s13 }
  0x15   : > { %p4059_p11 = pnand %p2914_p10, %p5971_p1 }
  0x16   : > { %p3821_p10 = por %p3820_p7, %p3819_p5 }
  0x17   : > { %p3813_p13 = pneg %p4059_p11 }
  0x19   : > { %p3814_p0 = pnand %p3813_p13, %p3812_p12 }
  0x1b   : > { %p3815_p3 = pneg %p3814_p0 }
  0x1d   : > { %p3822_p9 = pnand %p3821_p10, %p3815_p3 }
  0x1f   : > { %3825 = shalt.err (!%p3822_p9)
}
  0x20   : > { %s3962_s14 = smov [#allocation7]   ;;  %s3826_s15 = scalar_lea.vmem %s179_s8, 16 }
  0x21   : > { %2920 = dma.vmem_to_smem (!%p4059_p11), %s190_s29, 16, %s3962_s14, [#allocation8]  }
  0x22   : > { %p3827_p1 = scmp.ne.s32.totalorder %s179_s8, %s3826_s15  ;;  %p3834_p4 = scmp.lt.s32.totalorder %s179_s8, %s179_s8 }
  0x23   : > { %p3835_p8 = scmp.lt.s32.totalorder %s3826_s15, %s3826_s15 }
  0x24   : > { %p3829_p2 = pnand %p3827_p1, %p3813_p13 }
  0x25   : > { %p3836_p12 = por %p3835_p8, %p3834_p4 }
  0x26   : > { %p3830_p6 = pneg %p3829_p2 }
  0x28   : > { %p3837_p0 = pnand %p3836_p12, %p3830_p6 }
  0x2a   : > { %3840 = shalt.err (!%p3837_p0)
}
  0x2b   : > { %s3963_s16 = smov [#allocation3]   ;;  %s3841_s17 = scalar_lea.vmem %s4066_s12, 16 }
  0x2c   : > { %2917 = dma.vmem_to_smem (!%p4059_p11), %s179_s8, 16, %s3963_s16, [#allocation6]  }
  0x2d   : > { %p3842_p9 = scmp.ne.s32.totalorder %s4066_s12, %s3841_s17  ;;  %p3849_p2 = scmp.lt.s32.totalorder %s4066_s12, %s4066_s12 }
  0x2e   : > { %p3850_p5 = scmp.lt.s32.totalorder %s3841_s17, %s3841_s17 }
  0x2f   : > { %p3844_p3 = pnand %p3842_p9, %p3813_p13 }
  0x30   : > { %p3851_p4 = por %p3850_p5, %p3849_p2 }
  0x31   : > { %p3845_p1 = pneg %p3844_p3 }
  0x33   : > { %p3852_p6 = pnand %p3851_p4, %p3845_p1 }
  0x35   : > { %3855 = shalt.err (!%p3852_p6)
}
  0x36   : > { %s3964_s18 = smov [#allocation9]   ;;  %s4091_s19 = sadd.s32 1, %s3960_s23  }
  0x37   : > { %2923 = dma.vmem_to_smem (!%p4059_p11), %s4066_s12, 16, %s3964_s18, [#allocation8]  }
  0x38   : > { %s112_s24 = ssub.s32 %s3960_s23, %s4091_s19  ;;  %s115_s27 = sadd.s32 1, %s3956_s22 }
  0x39   : > { %p113_p8 = scmp.eq.s32.totalorder %s112_s24, 0  ;;  %p122_p13 = scmp.ne.s32.totalorder %s3956_s22, %s3952_s21 }
  0x3a   : > { %p123_p7 = scmp.eq.s32.totalorder %s3960_s23, 0  ;;  %p2935_p10 = scmp.lt.s32.totalorder %s3960_s23, 2 }
  0x3b   : > { %s4101_s28 = scalar_select %p113_p8, %s3956_s22, %s115_s27  }
  0x3c   : > { %p124_p12 = por %p123_p7, %p122_p13  ;;  %p5978_p0 = scmp.eq.s32.totalorder %s4025_s3, 1 }
  0x3d   : > { %s214_s6 = sand.u32 1, %s3956_s22   ;;  %s2896_s7 = sshll.u32 %s3960_s23, 10 }
  0x3e   : > { %p4105_p9 = por %p5978_p0, %p122_p13  ;;  %s2735_s8 = sshll.u32 %s214_s6, 6 }
  0x3f   : > { %s4114_s11 = scalar_lea.hbm %s5969_s4, %s2896_s7  ;;  %s218_s12 = scalar_lea.vmem [#allocation10], %s2735_s8 }
  0x40   : > { %s225_s13 = sshll.u32 %s218_s12, 4  ;;  %p4116_p11 = pnand %p2935_p10, %p124_p12  ;;  %s4120_s13 = int_to_ptr.vmem [resolvable:$true] %s225_s13 }
  0x41   : > { %s4122_s15 = scalar_lea.sflag [#allocation4], %s214_s6  ;;  %s3856_s16 = scalar_lea.hbm %s4114_s11, 1024 }
  0x42   : > { %p3857_p3 = scmp.ne.s32.totalorder %s4114_s11, %s3856_s16  ;;  %p3858_p1 = pneg %p4116_p11 }
  0x43   : > { %s3861_s24 = scalar_lea.hbm %s5969_s4, 2048  ;;  %p3862_p4 = scmp.lt.u32.totalorder %s4114_s11, %s5969_s4 }
  0x44   : > { %p3859_p2 = pnand %p3858_p1, %p3857_p3  ;;  %p3863_p6 = scmp.lt.u32.totalorder %s3861_s24, %s3856_s16 }
  0x45   : > { %p3865_p13 = scmp.lt.u32.totalorder %s3856_s16, %s4114_s11 }
  0x46   : > { %p3860_p5 = pneg %p3859_p2  ;;  %p3864_p8 = por %p3863_p6, %p3862_p4 }
  0x48   : > { %p3866_p7 = por %p3865_p13, %p3864_p8 }
  0x4a   : > { %p3867_p10 = pnand %p3866_p7, %p3860_p5 }
  0x4c   : > { %3870 = shalt.err (!%p3867_p10)
}
  0x4d   : > { %s3871_s6 = scalar_lea.vmem %s4120_s13, 1024  ;;  %s3965_s8 = smov [#allocation10]  }
  0x4e   : > { %p3872_p12 = scmp.ne.s32.totalorder %s4120_s13, %s3871_s6  ;;  %s3876_s9 = sshll.u32 %s3965_s8, 4  ;;  %s3877_s9 = int_to_ptr.vmem [resolvable:$false] %s3876_s9 }
  0x4f   : > { %s3878_s10 = scalar_lea.vmem %s3877_s9, 2048  ;;  %p3879_p2 = scmp.lt.s32.totalorder %s4120_s13, %s3877_s9 }
  0x50   : > { %p3874_p0 = pnand %p3872_p12, %p3858_p1  ;;  %p3880_p4 = scmp.lt.s32.totalorder %s3878_s10, %s3871_s6 }
  0x52   : > { %p3875_p3 = pneg %p3874_p0  ;;  %p3881_p6 = por %p3880_p4, %p3879_p2 }
  0x54   : > { %p3882_p8 = pnand %p3881_p6, %p3875_p3 }
  0x56   : > { %3885 = shalt.err (!%p3882_p8)
}
  0x57   : > { %s3966_s12 = smov 128   ;;  %s3967_s16 = smov 8  }
  0x58   : > { %2927 = dma.hbm_to_vmem [thread:$0]  (!%p4116_p11), %s4114_s11, 1024, %s4120_s13, %s4122_s15, %s3966_s12, %s3966_s12, %s3967_s16  }
  0x59   : > { %p5981_p1 = scmp.ne.s32.totalorder %s5976_s30, 0 }
  0x5a   : > { %p5982_p5 = scmp.eq.s32.totalorder (!%p5981_p1), %s4025_s3, 0 }
  0x5b   : > { %237 = sbr.rel (%p5981_p1) target bundleno = 673 (0x2a1), region = 40 }
  0x62   : > { %3931 = dma.done.wait (%p5982_p5), [#allocation6], 16   ;;  %p5983_p13 = pmov %p5982_p5 }
  0x63   : > { %p5984_p7 = pmov %p5982_p5 }
  0x64   : > { %3933 = vsyncadd (%p5983_p13), [#allocation6], 4294967280 }
  0x65   : > { %3935 = dma.done.wait (%p5984_p7), [#allocation8], 32   ;;  %p5985_p10 = pmov %p5982_p5 }
  0x66   : > { %s4161_s17 = sand.u32 1, %s3952_s21   ;;  %p5986_p11 = scmp.ne.s32.totalorder %s5974_s25, 0 }
  0x67   : > { %3937 = vsyncadd (%p5985_p10), [#allocation8], 4294967264  ;;  %s2742_s30 = sshll.u32 %s4161_s17, 6  ;;  %s252_s11 = scalar_lea.sflag [#allocation4], %s4161_s17 }
  0x68   : > { %s4167_s13 = scalar_lea.vmem [#allocation10], %s2742_s30 }
  0x69   : > { %3939 = dma.done.wait (%p5986_p11), %s252_s11, 1024  }
  0x6a   : > { %3941 = vsyncadd (%p5986_p11), %s252_s11, 4294966272 }
  0x6b   : > { %260 = sfence }
  0x6c   : > { %s295_s14 = sld [smem:[#allocation3]]  ;;  %s2745_s18 = sld [smem:[#allocation3 + $0x1]]  ;;  %v4174_v0 = vld [vmem:[%s4167_s13] sm:$0xff]  ;;  %v4177_v1 = vld [vmem:[%s4167_s13 + $0x8] sm:$0xff]  ;;  %v4180_v2 = vld [vmem:[%s4167_s13 + $0x10] sm:$0xff] }
  0x6d   : > { %s305_s15 = sld [smem:[#allocation7]]  ;;  %v4183_v3 = vld [vmem:[%s4167_s13 + $0x18] sm:$0xff]  ;;  %v4186_v4 = vld [vmem:[%s4167_s13 + $0x20] sm:$0xff]  ;;  %s2746_s25 = sld [smem:[#allocation7 + $0x1]]  ;;  %v4189_v7 = vld [vmem:[%s4167_s13 + $0x28] sm:$0xff] }
  0x6e   : > { %v4195_v11 = vld [vmem:[%s4167_s13 + $0x30] sm:$0xff]  ;;  %v4199_v13 = vld [vmem:[%s4167_s13 + $0x38] sm:$0xff]  ;;  %s2748_s24 = sld [smem:[#allocation3 + $0x2]]  ;;  %s4209_s7 = sld [smem:[#allocation9]] }
  0x6f   : > { %s2749_s27 = sld [smem:[#allocation7 + $0x2]]  ;;  %s4214_s6 = sld [smem:[#allocation9 + $0x1]] }
  0x70   : > { %s4217_s8 = sld [smem:[#allocation3 + $0x3]]  ;;  %s4219_s9 = sld [smem:[#allocation9 + $0x2]] }
  0x71   : > { %s4230_s10 = sld [smem:[#allocation7 + $0x3]]  ;;  %s4243_s16 = sld [smem:[#allocation3 + $0x4]] }
  0x72   : > { %v296_v5 = vstv %s295_s14  ;;  %v342_v20 = vstv %s2745_s18  ;;  %s4235_s12 = sld [smem:[#allocation9 + $0x3]]  ;;  %s4257_s11 = sld [smem:[#allocation7 + $0x4]] }
  0x73   : > { %v306_v6 = vstv %s305_s15  ;;  %v297_v8 = vmul.f32 %v296_v5, %v4174_v0  ;;  %v298_v9 = vmul.f32 %v296_v5, %v4177_v1  ;;  %v299_v10 = vmul.f32 %v296_v5, %v4180_v2  ;;  %s4266_s14 = sld [smem:[#allocation3 + $0x5]]  ;;  %s4275_s15 = sld [smem:[#allocation9 + $0x4]] }
  0x74   : > { %v300_v12 = vmul.f32 %v296_v5, %v4183_v3  ;;  %v301_v14 = vmul.f32 %v296_v5, %v4186_v4  ;;  %v302_v16 = vmul.f32 %v296_v5, %v4189_v7  ;;  %v303_v18 = vmul.f32 %v296_v5, %v4195_v11  ;;  %s4282_s18 = sld [smem:[#allocation7 + $0x5]] }
  0x75   : > { %v307_v15 = vadd.f32 %v306_v6, %v297_v8  ;;  %v308_v17 = vadd.f32 %v306_v6, %v298_v9  ;;  %v309_v19 = vadd.f32 %v306_v6, %v299_v10  ;;  %v304_v21 = vmul.f32 %v296_v5, %v4199_v13 }
  0x76   : > { %v310_v22 = vadd.f32 %v306_v6, %v300_v12  ;;  %v311_v23 = vadd.f32 %v306_v6, %v301_v14  ;;  %v343_v24 = vmul.f32 %v342_v20, %v4174_v0  ;;  %v312_v25 = vadd.f32 %v306_v6, %v302_v16 }
  0x77   : > { %2979 = vtanh.f32 %v307_v15  ;;  %v344_v26 = vmul.f32 %v342_v20, %v4177_v1  ;;  %v352_v27 = vstv %s2746_s25  ;;  %v313_v28 = vadd.f32 %v306_v6, %v303_v18  ;;  %s4302_s25 = sld [smem:[#allocation3 + $0x6]] }
  0x78   : > { %2981 = vtanh.f32 %v308_v17  ;;  %v345_v29 = vmul.f32 %v342_v20, %v4180_v2  ;;  %v314_v30 = vadd.f32 %v306_v6, %v304_v21  ;;  %v346_v31 = vmul.f32 %v342_v20, %v4183_v3 }
  0x79   : > { %2983 = vtanh.f32 %v309_v19  ;;  %v347_v32 = vmul.f32 %v342_v20, %v4186_v4  ;;  %v353_v33 = vadd.f32 %v352_v27, %v343_v24  ;;  %v348_v34 = vmul.f32 %v342_v20, %v4189_v7 }
  0x7a   : > { %2985 = vtanh.f32 %v310_v22  ;;  %v354_v35 = vadd.f32 %v352_v27, %v344_v26  ;;  %v349_v36 = vmul.f32 %v342_v20, %v4195_v11  ;;  %v355_v37 = vadd.f32 %v352_v27, %v345_v29 }
  0x7b   : > { %2987 = vtanh.f32 %v311_v23  ;;  %v356_v38 = vadd.f32 %v352_v27, %v346_v31  ;;  %v388_v39 = vstv %s2748_s24  ;;  %v350_v40 = vmul.f32 %v342_v20, %v4199_v13  ;;  %s4310_s24 = sld [smem:[#allocation9 + $0x5]] }
  0x7c   : > { %2989 = vtanh.f32 %v312_v25  ;;  %v357_v41 = vadd.f32 %v352_v27, %v347_v32  ;;  %v358_v42 = vadd.f32 %v352_v27, %v348_v34  ;;  %v359_v44 = vadd.f32 %v352_v27, %v349_v36 }
  0x7d   : > { %2991 = vtanh.f32 %v313_v28  ;;  %v389_v45 = vmul.f32 %v388_v39, %v4174_v0  ;;  %v398_v46 = vstv %s2749_s27  ;;  %v390_v48 = vmul.f32 %v388_v39, %v4177_v1  ;;  %s4315_s27 = sld [smem:[#allocation7 + $0x6]] }
  0x7e   : > { %2993 = vtanh.f32 %v314_v30  ;;  %v391_v49 = vmul.f32 %v388_v39, %v4180_v2  ;;  %v392_v50 = vmul.f32 %v388_v39, %v4183_v3  ;;  %v323_v52 = vstv %s4209_s7  ;;  %s4326_s7 = sld [smem:[#allocation3 + $0x7]] }
  0x7f   : > { %2995 = vtanh.f32 %v353_v33  ;;  %v360_v53 = vadd.f32 %v352_v27, %v350_v40  ;;  %v393_v54 = vmul.f32 %v388_v39, %v4186_v4  ;;  %v394_v56 = vmul.f32 %v388_v39, %v4189_v7 }
  0x80   : > { %2997 = vtanh.f32 %v354_v35  ;;  %v395_v57 = vmul.f32 %v388_v39, %v4195_v11  ;;  %v396_v58 = vmul.f32 %v388_v39, %v4199_v13  ;;  %v399_v60 = vadd.f32 %v398_v46, %v389_v45 }
  0x81   : > { %v2980_v43 = vpop.eup %2979  ;;  %2999 = vtanh.f32 %v355_v37  ;;  %v4233_v62 = vstv %s4214_s6  ;;  %v400_v63 = vadd.f32 %v398_v46, %v390_v48  ;;  %v401_v5 = vadd.f32 %v398_v46, %v391_v49  ;;  %s4338_s6 = sld [smem:[#allocation9 + $0x6]] }
  0x82   : > { %v2982_v47 = vpop.eup %2981  ;;  %3001 = vtanh.f32 %v356_v38  ;;  %v402_v6 = vadd.f32 %v398_v46, %v392_v50  ;;  %v324_v9 = vmul.f32 %v2980_v43, %v323_v52  ;;  %v403_v10 = vadd.f32 %v398_v46, %v393_v54 }
  0x83   : > { %v2984_v51 = vpop.eup %2983  ;;  %3003 = vtanh.f32 %v357_v41  ;;  %v434_v12 = vstv %s4217_s8  ;;  %v325_v15 = vmul.f32 %v2982_v47, %v323_v52  ;;  %v404_v16 = vadd.f32 %v398_v46, %v394_v56  ;;  %s4348_s8 = sld [smem:[#allocation7 + $0x7]] }
  0x84   : > { %v2986_v55 = vpop.eup %2985  ;;  %3005 = vtanh.f32 %v358_v42  ;;  %v405_v17 = vadd.f32 %v398_v46, %v395_v57  ;;  %v406_v18 = vadd.f32 %v398_v46, %v396_v58  ;;  %v326_v20 = vmul.f32 %v2984_v51, %v323_v52 }
  0x85   : > { %v2988_v59 = vpop.eup %2987  ;;  %3007 = vtanh.f32 %v359_v44  ;;  %v327_v21 = vmul.f32 %v2986_v55, %v323_v52  ;;  %v4239_v22 = vstv %s4219_s9  ;;  %v435_v25 = vmul.f32 %v434_v12, %v4174_v0  ;;  %s4354_s9 = sld [smem:[#allocation3 + $0x8]] }
  0x86   : > { %v2990_v61 = vpop.eup %2989  ;;  %3009 = vtanh.f32 %v360_v53  ;;  %v328_v24 = vmul.f32 %v2988_v59, %v323_v52  ;;  %v436_v26 = vmul.f32 %v434_v12, %v4177_v1  ;;  %v437_v29 = vmul.f32 %v434_v12, %v4180_v2 }
  0x87   : > { %v2992_v8 = vpop.eup %2991  ;;  %3011 = vtanh.f32 %v399_v60  ;;  %v329_v28 = vmul.f32 %v2990_v61, %v323_v52  ;;  %v438_v30 = vmul.f32 %v434_v12, %v4183_v3  ;;  %v439_v32 = vmul.f32 %v434_v12, %v4186_v4 }
  0x88   : > { %v2994_v14 = vpop.eup %2993  ;;  %3013 = vtanh.f32 %v400_v63  ;;  %v440_v33 = vmul.f32 %v434_v12, %v4189_v7  ;;  %v444_v34 = vstv %s4230_s10  ;;  %v330_v36 = vmul.f32 %v2992_v8, %v323_v52  ;;  %s4373_s10 = sld [smem:[#allocation9 + $0x7]] }
  0x89   : > { %v2996_v19 = vpop.eup %2995  ;;  %3015 = vtanh.f32 %v401_v5  ;;  %v441_v38 = vmul.f32 %v434_v12, %v4195_v11  ;;  %v331_v40 = vmul.f32 %v2994_v14, %v323_v52  ;;  %v442_v42 = vmul.f32 %v434_v12, %v4199_v13 }
  0x8a   : > { %v2998_v23 = vpop.eup %2997  ;;  %3017 = vtanh.f32 %v402_v6  ;;  %v370_v37 = vmul.f32 %v2996_v19, %v4233_v62  ;;  %v4255_v43 = vstv %s4235_s12  ;;  %v445_v46 = vadd.f32 %v444_v34, %v435_v25  ;;  %s4376_s12 = sld [smem:[#allocation7 + $0x8]] }
  0x8b   : > { %v3000_v27 = vpop.eup %2999  ;;  %3019 = vtanh.f32 %v403_v10  ;;  %v371_v41 = vmul.f32 %v2998_v23, %v4233_v62  ;;  %v446_v47 = vadd.f32 %v444_v34, %v436_v26  ;;  %v447_v49 = vadd.f32 %v444_v34, %v437_v29 }
  0x8c   : > { %v3002_v31 = vpop.eup %3001  ;;  %v372_v45 = vmul.f32 %v3000_v27, %v4233_v62  ;;  %3021 = vtanh.f32 %v404_v16  ;;  %v448_v50 = vadd.f32 %v444_v34, %v438_v30  ;;  %v378_v54 = vadd.f32 %v370_v37, %v324_v9 }
  0x8d   : > { %v3004_v35 = vpop.eup %3003  ;;  %v373_v48 = vmul.f32 %v3002_v31, %v4233_v62  ;;  %3023 = vtanh.f32 %v405_v17  ;;  %v449_v55 = vadd.f32 %v444_v34, %v439_v32  ;;  %v379_v57 = vadd.f32 %v371_v41, %v325_v15 }
  0x8e   : > { %v3006_v39 = vpop.eup %3005  ;;  %v374_v52 = vmul.f32 %v3004_v35, %v4233_v62  ;;  %3025 = vtanh.f32 %v406_v18  ;;  %v480_v58 = vstv %s4243_s16  ;;  %v380_v60 = vadd.f32 %v372_v45, %v326_v20  ;;  %s4392_s16 = sld [smem:[#allocation3 + $0x9]] }
  0x8f   : > { %v3008_v44 = vpop.eup %3007  ;;  %v375_v53 = vmul.f32 %v3006_v39, %v4233_v62  ;;  %v450_v61 = vadd.f32 %v444_v34, %v440_v33  ;;  %v451_v63 = vadd.f32 %v444_v34, %v441_v38  ;;  %3027 = vtanh.f32 %v445_v46 }
  0x90   : > { %v3010_v51 = vpop.eup %3009  ;;  %v376_v56 = vmul.f32 %v3008_v44, %v4233_v62  ;;  %v381_v8 = vadd.f32 %v373_v48, %v327_v21  ;;  %v452_v10 = vadd.f32 %v444_v34, %v442_v42  ;;  %3029 = vtanh.f32 %v446_v47 }
  0x91   : > { %v3012_v59 = vpop.eup %3011  ;;  %v377_v6 = vmul.f32 %v3010_v51, %v4233_v62  ;;  %v382_v12 = vadd.f32 %v374_v52, %v328_v24  ;;  %v383_v14 = vadd.f32 %v375_v53, %v329_v28  ;;  %3031 = vtanh.f32 %v447_v49 }
  0x92   : > { %v3014_v5 = vpop.eup %3013  ;;  %v481_v15 = vmul.f32 %v480_v58, %v4174_v0  ;;  %v384_v17 = vadd.f32 %v376_v56, %v330_v36  ;;  %3033 = vtanh.f32 %v448_v50  ;;  %v482_v18 = vmul.f32 %v480_v58, %v4177_v1 }
  0x93   : > { %v3016_v9 = vpop.eup %3015  ;;  %v490_v19 = vstv %s4257_s11  ;;  %v416_v62 = vmul.f32 %v3012_v59, %v4239_v22  ;;  %v417_v21 = vmul.f32 %v3014_v5, %v4239_v22  ;;  %3035 = vtanh.f32 %v449_v55  ;;  %s4409_s11 = sld [smem:[#allocation7 + $0x9]] }
  0x94   : > { %v3018_v16 = vpop.eup %3017  ;;  %v483_v23 = vmul.f32 %v480_v58, %v4180_v2  ;;  %v385_v25 = vadd.f32 %v377_v6, %v331_v40  ;;  %v418_v24 = vmul.f32 %v3016_v9, %v4239_v22  ;;  %3037 = vtanh.f32 %v450_v61 }
  0x95   : > { %v3020_v20 = vpop.eup %3019  ;;  %v484_v26 = vmul.f32 %v480_v58, %v4183_v3  ;;  %v419_v28 = vmul.f32 %v3018_v16, %v4239_v22  ;;  %3039 = vtanh.f32 %v451_v63  ;;  %v485_v29 = vmul.f32 %v480_v58, %v4186_v4 }
  0x96   : > { %v3022_v27 = vpop.eup %3021  ;;  %v491_v30 = vadd.f32 %v490_v19, %v481_v15  ;;  %v420_v32 = vmul.f32 %v3020_v20, %v4239_v22  ;;  %3041 = vtanh.f32 %v452_v10  ;;  %v486_v33 = vmul.f32 %v480_v58, %v4189_v7 }
  0x97   : > { %v3024_v31 = vpop.eup %3023  ;;  %v492_v34 = vadd.f32 %v490_v19, %v482_v18  ;;  %v4284_v35 = vadd.f32 %v416_v62, %v378_v54  ;;  %v4286_v36 = vadd.f32 %v417_v21, %v379_v57  ;;  %v487_v37 = vmul.f32 %v480_v58, %v4195_v11 }
  0x98   : > { %v493_v38 = vadd.f32 %v490_v19, %v483_v23  ;;  %v3026_v39 = vpop.eup %3025  ;;  %v421_v40 = vmul.f32 %v3022_v27, %v4239_v22  ;;  %v4290_v41 = vadd.f32 %v418_v24, %v380_v60  ;;  %v494_v42 = vadd.f32 %v490_v19, %v484_v26 }
  0x99   : > { %v526_v44 = vstv %s4266_s14  ;;  %v3028_v45 = vpop.eup %3027  ;;  %v422_v46 = vmul.f32 %v3024_v31, %v4239_v22  ;;  %v488_v47 = vmul.f32 %v480_v58, %v4199_v13  ;;  %v495_v48 = vadd.f32 %v490_v19, %v485_v29  ;;  %s4415_s14 = sld [smem:[#allocation9 + $0x8]] }
  0x9a   : > { %3043 = vtanh.f32 %v491_v30  ;;  %v3030_v49 = vpop.eup %3029  ;;  %v427_v50 = vadd.f32 %v419_v28, %v381_v8  ;;  %v428_v51 = vadd.f32 %v420_v32, %v382_v12  ;;  %v496_v52 = vadd.f32 %v490_v19, %v486_v33 }
  0x9b   : > { %3045 = vtanh.f32 %v492_v34  ;;  %v3032_v53 = vpop.eup %3031  ;;  %v423_v54 = vmul.f32 %v3026_v39, %v4239_v22  ;;  %v497_v55 = vadd.f32 %v490_v19, %v487_v37  ;;  %v527_v56 = vmul.f32 %v526_v44, %v4174_v0 }
  0x9c   : > { %3047 = vtanh.f32 %v493_v38  ;;  %v3034_v57 = vpop.eup %3033  ;;  %v429_v59 = vadd.f32 %v421_v40, %v383_v14  ;;  %v4298_v58 = vstv %s4275_s15  ;;  %v528_v60 = vmul.f32 %v526_v44, %v4177_v1  ;;  %s4432_s15 = sld [smem:[#allocation3 + $0xa]] }
  0x9d   : > { %3049 = vtanh.f32 %v494_v42  ;;  %v3036_v61 = vpop.eup %3035  ;;  %v430_v63 = vadd.f32 %v422_v46, %v384_v17  ;;  %v498_v5 = vadd.f32 %v490_v19, %v488_v47  ;;  %v529_v6 = vmul.f32 %v526_v44, %v4180_v2 }
  0x9e   : > { %3051 = vtanh.f32 %v495_v48  ;;  %v3038_v22 = vpop.eup %3037  ;;  %v462_v8 = vmul.f32 %v3028_v45, %v4255_v43  ;;  %v530_v10 = vmul.f32 %v526_v44, %v4183_v3  ;;  %v536_v9 = vstv %s4282_s18  ;;  %s4447_s18 = sld [smem:[#allocation7 + $0xa]] }
  0x9f   : > { %3053 = vtanh.f32 %v496_v52  ;;  %v3040_v12 = vpop.eup %3039  ;;  %v431_v14 = vadd.f32 %v423_v54, %v385_v25  ;;  %v531_v15 = vmul.f32 %v526_v44, %v4186_v4  ;;  %v537_v16 = vadd.f32 %v536_v9, %v527_v56 }
  0xa0   : > { %3055 = vtanh.f32 %v497_v55  ;;  %v3042_v17 = vpop.eup %3041  ;;  %v463_v18 = vmul.f32 %v3030_v49, %v4255_v43  ;;  %v464_v19 = vmul.f32 %v3032_v53, %v4255_v43  ;;  %v532_v20 = vmul.f32 %v526_v44, %v4189_v7 }
  0xa1   : > { %v538_v62 = vadd.f32 %v536_v9, %v528_v60  ;;  %v465_v21 = vmul.f32 %v3034_v57, %v4255_v43  ;;  %3057 = vtanh.f32 %v498_v5  ;;  %v533_v23 = vmul.f32 %v526_v44, %v4195_v11 }
  0xa2   : > { %v539_v25 = vadd.f32 %v536_v9, %v529_v6  ;;  %v466_v24 = vmul.f32 %v3036_v61, %v4255_v43  ;;  %v467_v26 = vmul.f32 %v3038_v22, %v4255_v43  ;;  %v534_v27 = vmul.f32 %v526_v44, %v4199_v13 }
  0xa3   : > { %v540_v28 = vadd.f32 %v536_v9, %v530_v10  ;;  %v468_v30 = vmul.f32 %v3040_v12, %v4255_v43  ;;  %v469_v31 = vmul.f32 %v3042_v17, %v4255_v43  ;;  %v541_v32 = vadd.f32 %v536_v9, %v531_v15 }
  0xa4   : > { %v3044_v29 = vpop.eup %3043  ;;  %3059 = vtanh.f32 %v537_v16  ;;  %v470_v34 = vadd.f32 %v462_v8, %v4284_v35  ;;  %v471_v37 = vadd.f32 %v463_v18, %v4286_v36  ;;  %v542_v38 = vadd.f32 %v536_v9, %v532_v20 }
  0xa5   : > { %v3046_v33 = vpop.eup %3045  ;;  %3061 = vtanh.f32 %v538_v62  ;;  %v472_v40 = vadd.f32 %v464_v19, %v4290_v41  ;;  %v543_v42 = vadd.f32 %v536_v9, %v533_v23  ;;  %v572_v44 = vstv %s4302_s25  ;;  %s4450_s25 = sld [smem:[#allocation9 + $0x9]] }
  0xa6   : > { %v3048_v39 = vpop.eup %3047  ;;  %3063 = vtanh.f32 %v539_v25  ;;  %v473_v46 = vadd.f32 %v465_v21, %v427_v50  ;;  %v474_v47 = vadd.f32 %v466_v24, %v428_v51  ;;  %v544_v43 = vadd.f32 %v536_v9, %v534_v27 }
  0xa7   : > { %v3050_v45 = vpop.eup %3049  ;;  %3065 = vtanh.f32 %v540_v28  ;;  %v475_v49 = vadd.f32 %v467_v26, %v429_v59  ;;  %v476_v35 = vadd.f32 %v468_v30, %v430_v63  ;;  %v477_v52 = vadd.f32 %v469_v31, %v431_v14 }
  0xa8   : > { %v3052_v48 = vpop.eup %3051  ;;  %3067 = vtanh.f32 %v541_v32  ;;  %v508_v41 = vmul.f32 %v3044_v29, %v4298_v58  ;;  %v4330_v53 = vstv %s4310_s24  ;;  %v573_v54 = vmul.f32 %v572_v44, %v4174_v0  ;;  %s4462_s24 = sld [smem:[#allocation3 + $0xb]] }
  0xa9   : > { %v3054_v36 = vpop.eup %3053  ;;  %3069 = vtanh.f32 %v542_v38  ;;  %v509_v51 = vmul.f32 %v3046_v33, %v4298_v58  ;;  %v510_v55 = vmul.f32 %v3048_v39, %v4298_v58  ;;  %v582_v56 = vstv %s4315_s27  ;;  %s4470_s27 = sld [smem:[#allocation9 + $0xa]] }
  0xaa   : > { %v3056_v50 = vpop.eup %3055  ;;  %3071 = vtanh.f32 %v543_v42  ;;  %v511_v57 = vmul.f32 %v3050_v45, %v4298_v58  ;;  %v512_v59 = vmul.f32 %v3052_v48, %v4298_v58  ;;  %v574_v60 = vmul.f32 %v572_v44, %v4177_v1 }
  0xab   : > { %3073 = vtanh.f32 %v544_v43  ;;  %v3058_v61 = vpop.eup %3057  ;;  %v513_v63 = vmul.f32 %v3054_v36, %v4298_v58  ;;  %v575_v5 = vmul.f32 %v572_v44, %v4180_v2  ;;  %v576_v6 = vmul.f32 %v572_v44, %v4183_v3 }
  0xac   : > { %v577_v22 = vmul.f32 %v572_v44, %v4186_v4  ;;  %v514_v8 = vmul.f32 %v3056_v50, %v4298_v58  ;;  %v578_v10 = vmul.f32 %v572_v44, %v4189_v7  ;;  %v579_v9 = vmul.f32 %v572_v44, %v4195_v11 }
  0xad   : > { %v583_v12 = vadd.f32 %v582_v56, %v573_v54  ;;  %v516_v15 = vadd.f32 %v508_v41, %v470_v34  ;;  %v517_v16 = vadd.f32 %v509_v51, %v471_v37  ;;  %v518_v17 = vadd.f32 %v510_v55, %v472_v40 }
  0xae   : > { %v3060_v14 = vpop.eup %3059  ;;  %v580_v18 = vmul.f32 %v572_v44, %v4199_v13  ;;  %v515_v20 = vmul.f32 %v3058_v61, %v4298_v58  ;;  %v519_v62 = vadd.f32 %v511_v57, %v473_v46  ;;  %v520_v21 = vadd.f32 %v512_v59, %v474_v47 }
  0xaf   : > { %v3062_v19 = vpop.eup %3061  ;;  %v584_v23 = vadd.f32 %v582_v56, %v574_v60  ;;  %v521_v24 = vadd.f32 %v513_v63, %v475_v49  ;;  %v585_v26 = vadd.f32 %v582_v56, %v575_v5  ;;  %v586_v27 = vadd.f32 %v582_v56, %v576_v6 }
  0xb0   : > { %v3064_v25 = vpop.eup %3063  ;;  %v618_v28 = vstv %s4326_s7  ;;  %v522_v30 = vadd.f32 %v514_v8, %v476_v35  ;;  %v554_v31 = vmul.f32 %v3060_v14, %v4330_v53  ;;  %v587_v32 = vadd.f32 %v582_v56, %v577_v22  ;;  %s4476_s7 = sld [smem:[#allocation7 + $0xb]] }
  0xb1   : > { %v3066_v29 = vpop.eup %3065  ;;  %3075 = vtanh.f32 %v583_v12  ;;  %v555_v58 = vmul.f32 %v3062_v19, %v4330_v53  ;;  %v588_v34 = vadd.f32 %v582_v56, %v578_v10  ;;  %v589_v37 = vadd.f32 %v582_v56, %v579_v9 }
  0xb2   : > { %v3068_v33 = vpop.eup %3067  ;;  %v590_v38 = vadd.f32 %v582_v56, %v580_v18  ;;  %v523_v40 = vadd.f32 %v515_v20, %v477_v52  ;;  %3077 = vtanh.f32 %v584_v23  ;;  %v4358_v42 = vstv %s4338_s6  ;;  %s4504_s6 = sld [smem:[#allocation3 + $0xc]] }
  0xb3   : > { %v3070_v39 = vpop.eup %3069  ;;  %v619_v44 = vmul.f32 %v618_v28, %v4174_v0  ;;  %v556_v46 = vmul.f32 %v3064_v25, %v4330_v53  ;;  %3079 = vtanh.f32 %v585_v26  ;;  %v620_v47 = vmul.f32 %v618_v28, %v4177_v1 }
  0xb4   : > { %v3072_v45 = vpop.eup %3071  ;;  %v621_v43 = vmul.f32 %v618_v28, %v4180_v2  ;;  %v562_v49 = vadd.f32 %v554_v31, %v516_v15  ;;  %3081 = vtanh.f32 %v586_v27  ;;  %v622_v35 = vmul.f32 %v618_v28, %v4183_v3 }
  0xb5   : > { %v3074_v48 = vpop.eup %3073  ;;  %v628_v36 = vstv %s4348_s8  ;;  %v557_v52 = vmul.f32 %v3066_v29, %v4330_v53  ;;  %v558_v41 = vmul.f32 %v3068_v33, %v4330_v53  ;;  %v4368_v54 = vadd.f32 %v555_v58, %v517_v16  ;;  %s4533_s8 = sld [smem:[#allocation9 + $0xb]] }
  0xb6   : > { %v623_v50 = vmul.f32 %v618_v28, %v4186_v4  ;;  %v559_v51 = vmul.f32 %v3070_v39, %v4330_v53  ;;  %v560_v55 = vmul.f32 %v3072_v45, %v4330_v53  ;;  %3083 = vtanh.f32 %v587_v32 }
  0xb7   : > { %v624_v56 = vmul.f32 %v618_v28, %v4189_v7  ;;  %v561_v57 = vmul.f32 %v3074_v48, %v4330_v53  ;;  %v4379_v59 = vadd.f32 %v556_v46, %v518_v17  ;;  %3085 = vtanh.f32 %v588_v34 }
  0xb8   : > { %v629_v60 = vadd.f32 %v628_v36, %v619_v44  ;;  %3087 = vtanh.f32 %v589_v37  ;;  %v625_v61 = vmul.f32 %v618_v28, %v4195_v11  ;;  %v630_v63 = vadd.f32 %v628_v36, %v620_v47 }
  0xb9   : > { %v664_v5 = vstv %s4354_s9  ;;  %v4383_v6 = vadd.f32 %v557_v52, %v519_v62  ;;  %v4385_v22 = vadd.f32 %v558_v41, %v520_v21  ;;  %v626_v8 = vmul.f32 %v618_v28, %v4199_v13  ;;  %s4536_s9 = sld [smem:[#allocation7 + $0xc]] }
  0xba   : > { %v631_v10 = vadd.f32 %v628_v36, %v621_v43  ;;  %v4388_v12 = vadd.f32 %v559_v51, %v521_v24  ;;  %v4390_v53 = vadd.f32 %v560_v55, %v522_v30  ;;  %3089 = vtanh.f32 %v590_v38 }
  0xbb   : > { %v3076_v9 = vpop.eup %3075  ;;  %v632_v14 = vadd.f32 %v628_v36, %v622_v35  ;;  %v4394_v15 = vadd.f32 %v561_v57, %v523_v40  ;;  %v633_v16 = vadd.f32 %v628_v36, %v623_v50  ;;  %3091 = vtanh.f32 %v629_v60 }
  0xbc   : > { %v665_v17 = vmul.f32 %v664_v5, %v4174_v0  ;;  %v3078_v18 = vpop.eup %3077  ;;  %v634_v19 = vadd.f32 %v628_v36, %v624_v56  ;;  %v635_v20 = vadd.f32 %v628_v36, %v625_v61  ;;  %3093 = vtanh.f32 %v630_v63 }
  0xbd   : > { %v666_v62 = vmul.f32 %v664_v5, %v4177_v1  ;;  %v3080_v21 = vpop.eup %3079  ;;  %v600_v23 = vmul.f32 %v3076_v9, %v4358_v42  ;;  %v636_v25 = vadd.f32 %v628_v36, %v626_v8  ;;  %3095 = vtanh.f32 %v631_v10 }
  0xbe   : > { %v667_v24 = vmul.f32 %v664_v5, %v4180_v2  ;;  %v3082_v26 = vpop.eup %3081  ;;  %3097 = vtanh.f32 %v632_v14  ;;  %v4401_v27 = vstv %s4373_s10  ;;  %v668_v28 = vmul.f32 %v664_v5, %v4183_v3  ;;  %s4553_s10 = sld [smem:[#allocation3 + $0xd]] }
  0xbf   : > { %v674_v29 = vstv %s4376_s12  ;;  %v601_v30 = vmul.f32 %v3078_v18, %v4358_v42  ;;  %3099 = vtanh.f32 %v633_v16  ;;  %v669_v31 = vmul.f32 %v664_v5, %v4186_v4  ;;  %s4570_s12 = sld [smem:[#allocation7 + $0xd]] }
  0xc0   : > { %v675_v32 = vadd.f32 %v674_v29, %v665_v17  ;;  %v3084_v33 = vpop.eup %3083  ;;  %v602_v58 = vmul.f32 %v3080_v21, %v4358_v42  ;;  %3101 = vtanh.f32 %v634_v19  ;;  %v670_v34 = vmul.f32 %v664_v5, %v4189_v7 }
  0xc1   : > { %v676_v37 = vadd.f32 %v674_v29, %v666_v62  ;;  %v3086_v38 = vpop.eup %3085  ;;  %v4411_v39 = vadd.f32 %v600_v23, %v562_v49  ;;  %3103 = vtanh.f32 %v635_v20  ;;  %v671_v40 = vmul.f32 %v664_v5, %v4195_v11 }
  0xc2   : > { %v677_v44 = vadd.f32 %v674_v29, %v667_v24  ;;  %v3088_v45 = vpop.eup %3087  ;;  %v603_v46 = vmul.f32 %v3082_v26, %v4358_v42  ;;  %3105 = vtanh.f32 %v636_v25  ;;  %v678_v47 = vadd.f32 %v674_v29, %v668_v28 }
  0xc3   : > { %v710_v43 = vstv %s4392_s16  ;;  %v604_v48 = vmul.f32 %v3084_v33, %v4358_v42  ;;  %v672_v35 = vmul.f32 %v664_v5, %v4199_v13  ;;  %v679_v36 = vadd.f32 %v674_v29, %v669_v31  ;;  %s4577_s16 = sld [smem:[#allocation9 + $0xc]] }
  0xc4   : > { %3107 = vtanh.f32 %v675_v32  ;;  %v3090_v49 = vpop.eup %3089  ;;  %v605_v52 = vmul.f32 %v3086_v38, %v4358_v42  ;;  %v609_v41 = vadd.f32 %v601_v30, %v4368_v54  ;;  %v680_v50 = vadd.f32 %v674_v29, %v670_v34 }
  0xc5   : > { %3109 = vtanh.f32 %v676_v37  ;;  %v3092_v51 = vpop.eup %3091  ;;  %v606_v55 = vmul.f32 %v3088_v45, %v4358_v42  ;;  %v681_v56 = vadd.f32 %v674_v29, %v671_v40  ;;  %v711_v57 = vmul.f32 %v710_v43, %v4174_v0 }
  0xc6   : > { %3111 = vtanh.f32 %v677_v44  ;;  %v3094_v60 = vpop.eup %3093  ;;  %v610_v61 = vadd.f32 %v602_v58, %v4379_v59  ;;  %v611_v63 = vadd.f32 %v603_v46, %v4383_v6  ;;  %v712_v5 = vmul.f32 %v710_v43, %v4177_v1 }
  0xc7   : > { %3113 = vtanh.f32 %v678_v47  ;;  %v3096_v8 = vpop.eup %3095  ;;  %v612_v54 = vadd.f32 %v604_v48, %v4385_v22  ;;  %v682_v10 = vadd.f32 %v674_v29, %v672_v35  ;;  %v713_v9 = vmul.f32 %v710_v43, %v4180_v2 }
  0xc8   : > { %3115 = vtanh.f32 %v679_v36  ;;  %v3098_v14 = vpop.eup %3097  ;;  %v607_v16 = vmul.f32 %v3090_v49, %v4358_v42  ;;  %v613_v17 = vadd.f32 %v605_v52, %v4388_v12  ;;  %v720_v59 = vstv %s4409_s11  ;;  %s4594_s11 = sld [smem:[#allocation3 + $0xe]] }
  0xc9   : > { %3117 = vtanh.f32 %v680_v50  ;;  %v3100_v6 = vpop.eup %3099  ;;  %v614_v18 = vadd.f32 %v606_v55, %v4390_v53  ;;  %v714_v22 = vmul.f32 %v710_v43, %v4183_v3  ;;  %v721_v19 = vadd.f32 %v720_v59, %v711_v57 }
  0xca   : > { %3119 = vtanh.f32 %v681_v56  ;;  %v3102_v20 = vpop.eup %3101  ;;  %v646_v62 = vmul.f32 %v3092_v51, %v4401_v27  ;;  %v4438_v21 = vstv %s4415_s14  ;;  %v715_v42 = vmul.f32 %v710_v43, %v4186_v4  ;;  %s4609_s14 = sld [smem:[#allocation7 + $0xe]] }
  0xcb   : > { %v722_v23 = vadd.f32 %v720_v59, %v712_v5  ;;  %v3104_v12 = vpop.eup %3103  ;;  %v647_v25 = vmul.f32 %v3094_v60, %v4401_v27  ;;  %3121 = vtanh.f32 %v682_v10  ;;  %v716_v24 = vmul.f32 %v710_v43, %v4189_v7 }
  0xcc   : > { %v723_v26 = vadd.f32 %v720_v59, %v713_v9  ;;  %v3106_v53 = vpop.eup %3105  ;;  %v615_v28 = vadd.f32 %v607_v16, %v4394_v15  ;;  %v648_v3 = vmul.f32 %v3096_v8, %v4401_v27  ;;  %v649_v29 = vmul.f32 %v3098_v14, %v4401_v27 }
  0xcd   : > { %v717_v30 = vmul.f32 %v710_v43, %v4195_v11  ;;  %v650_v31 = vmul.f32 %v3100_v6, %v4401_v27  ;;  %v718_v32 = vmul.f32 %v710_v43, %v4199_v13  ;;  %v724_v7 = vadd.f32 %v720_v59, %v714_v22 }
  0xce   : > { %v3108_v4 = vpop.eup %3107  ;;  %3123 = vtanh.f32 %v721_v19  ;;  %v651_v15 = vmul.f32 %v3102_v20, %v4401_v27  ;;  %v652_v58 = vmul.f32 %v3104_v12, %v4401_v27  ;;  %v725_v34 = vadd.f32 %v720_v59, %v715_v42  ;;  %v4486_v20 = vld [vmem:[%s4167_s13 + $0x20] sm:$0xff] }
  0xcf   : > { %v3110_v33 = vpop.eup %3109  ;;  %3125 = vtanh.f32 %v722_v23  ;;  %v654_v37 = vadd.f32 %v646_v62, %v4411_v39  ;;  %v655_v38 = vadd.f32 %v647_v25, %v609_v41  ;;  %v726_v40 = vadd.f32 %v720_v59, %v716_v24  ;;  %v4490_v62 = vld [vmem:[%s4167_s13 + $0x28] sm:$0xff]  ;;  %v4494_v25 = vld [vmem:[%s4167_s13 + $0x30] sm:$0xff] }
  0xd0   : > { %v3112_v11 = vpop.eup %3111  ;;  %3127 = vtanh.f32 %v723_v26  ;;  %v653_v45 = vmul.f32 %v3106_v53, %v4401_v27  ;;  %v656_v13 = vadd.f32 %v648_v3, %v610_v61  ;;  %v727_v46 = vadd.f32 %v720_v59, %v717_v30  ;;  %v4498_v26 = vld [vmem:[%s4167_s13 + $0x38] sm:$0xff] }
  0xd1   : > { %v3114_v44 = vpop.eup %3113  ;;  %v756_v47 = vstv %s4432_s15  ;;  %v657_v48 = vadd.f32 %v649_v29, %v611_v63  ;;  %v658_v35 = vadd.f32 %v650_v31, %v612_v54  ;;  %v728_v36 = vadd.f32 %v720_v59, %v718_v32  ;;  %v4479_v59 = vld [vmem:[%s4167_s13 + $0x18] sm:$0xff]  ;;  %s4612_s15 = sld [smem:[#allocation9 + $0xd]] }
  0xd2   : > { %v3116_v43 = vpop.eup %3115  ;;  %3129 = vtanh.f32 %v724_v7  ;;  %v659_v52 = vadd.f32 %v651_v15, %v613_v17  ;;  %v660_v50 = vadd.f32 %v652_v58, %v614_v18  ;;  %v692_v39 = vmul.f32 %v3108_v4, %v4438_v21 }
  0xd3   : > { %v3118_v49 = vpop.eup %3117  ;;  %3131 = vtanh.f32 %v725_v34  ;;  %v693_v51 = vmul.f32 %v3110_v33, %v4438_v21  ;;  %v694_v27 = vmul.f32 %v3112_v11, %v4438_v21  ;;  %v757_v55 = vmul.f32 %v756_v47, %v4174_v0 }
  0xd4   : > { %v3120_v41 = vpop.eup %3119  ;;  %3133 = vtanh.f32 %v726_v40  ;;  %v661_v56 = vadd.f32 %v653_v45, %v615_v28  ;;  %v695_v57 = vmul.f32 %v3114_v44, %v4438_v21  ;;  %v766_v60 = vstv %s4447_s18  ;;  %s4624_s18 = sld [smem:[#allocation3 + $0xf]] }
  0xd5   : > { %3135 = vtanh.f32 %v727_v46  ;;  %v3122_v61 = vpop.eup %3121  ;;  %v696_v63 = vmul.f32 %v3116_v43, %v4438_v21  ;;  %v4468_v5 = vstv %s4450_s25  ;;  %v758_v8 = vmul.f32 %v756_v47, %v4177_v1  ;;  %v4513_v46 = vld [vmem:[%s4167_s13] sm:$0xff]  ;;  %s4632_s25 = sld [smem:[#allocation9 + $0xe]] }
  0xd6   : > { %3137 = vtanh.f32 %v728_v36  ;;  %v697_v0 = vmul.f32 %v3118_v49, %v4438_v21  ;;  %v698_v54 = vmul.f32 %v3120_v41, %v4438_v21  ;;  %v700_v10 = vadd.f32 %v692_v39, %v654_v37  ;;  %v4521_v49 = vld [vmem:[%s4167_s13 + $0x8] sm:$0xff]  ;;  %v4528_v41 = vld [vmem:[%s4167_s13 + $0x10] sm:$0xff] }
  0xd7   : > { %v759_v9 = vmul.f32 %v756_v47, %v4180_v2  ;;  %v701_v16 = vadd.f32 %v693_v51, %v655_v38  ;;  %v702_v17 = vadd.f32 %v694_v27, %v656_v13  ;;  %v760_v6 = vmul.f32 %v4479_v59, %v756_v47 }
  0xd8   : > { %v3124_v14 = vpop.eup %3123  ;;  %v767_v1 = vadd.f32 %v766_v60, %v757_v55  ;;  %v699_v22 = vmul.f32 %v3122_v61, %v4438_v21  ;;  %v4483_v19 = vadd.f32 %v695_v57, %v657_v48  ;;  %v761_v2 = vmul.f32 %v4486_v20, %v756_v47 }
  0xd9   : > { %v3126_v18 = vpop.eup %3125  ;;  %v762_v42 = vmul.f32 %v4490_v62, %v756_v47  ;;  %v704_v12 = vadd.f32 %v696_v63, %v658_v35  ;;  %v763_v24 = vmul.f32 %v4494_v25, %v756_v47  ;;  %v764_v21 = vmul.f32 %v4498_v26, %v756_v47 }
  0xda   : > { %v3128_v23 = vpop.eup %3127  ;;  %v768_v53 = vadd.f32 %v766_v60, %v758_v8  ;;  %v705_v28 = vadd.f32 %v697_v0, %v659_v52  ;;  %v706_v3 = vadd.f32 %v698_v54, %v660_v50  ;;  %v738_v29 = vmul.f32 %v3124_v14, %v4468_v5 }
  0xdb   : > { %v769_v30 = vadd.f32 %v766_v60, %v759_v9  ;;  %v739_v31 = vmul.f32 %v3126_v18, %v4468_v5  ;;  %v770_v32 = vadd.f32 %v766_v60, %v760_v6  ;;  %3139 = vtanh.f32 %v767_v1 }
  0xdc   : > { %v3130_v4 = vpop.eup %3129  ;;  %v802_v7 = vstv %s4462_s24  ;;  %v707_v15 = vadd.f32 %v699_v22, %v661_v56  ;;  %v740_v58 = vmul.f32 %v3128_v23, %v4468_v5  ;;  %v771_v34 = vadd.f32 %v766_v60, %v761_v2  ;;  %s4638_s24 = sld [smem:[#allocation7 + $0xf]] }
  0xdd   : > { %v3132_v33 = vpop.eup %3131  ;;  %v772_v11 = vadd.f32 %v766_v60, %v762_v42  ;;  %v773_v38 = vadd.f32 %v766_v60, %v763_v24  ;;  %v774_v40 = vadd.f32 %v766_v60, %v764_v21  ;;  %3141 = vtanh.f32 %v768_v53 }
  0xde   : > { %v3134_v37 = vpop.eup %3133  ;;  %v4508_v44 = vstv %s4470_s27  ;;  %v4510_v13 = vadd.f32 %v738_v29, %v700_v10  ;;  %3143 = vtanh.f32 %v769_v30  ;;  %v803_v47 = vmul.f32 %v4513_v46, %v802_v7  ;;  %s4649_s27 = sld [smem:[#allocation3 + $0x10]] }
  0xdf   : > { %v3136_v45 = vpop.eup %3135  ;;  %v812_v43 = vstv %s4476_s7  ;;  %v741_v35 = vmul.f32 %v3130_v4, %v4468_v5  ;;  %v4518_v36 = vadd.f32 %v739_v31, %v701_v16  ;;  %3145 = vtanh.f32 %v770_v32  ;;  %s4669_s7 = sld [smem:[#allocation9 + $0xf]] }
  0xe0   : > { %v3138_v48 = vpop.eup %3137  ;;  %v804_v52 = vmul.f32 %v4521_v49, %v802_v7  ;;  %v742_v50 = vmul.f32 %v3132_v33, %v4468_v5  ;;  %v4525_v39 = vadd.f32 %v740_v58, %v702_v17  ;;  %3147 = vtanh.f32 %v771_v34 }
  0xe1   : > { %v805_v51 = vmul.f32 %v4528_v41, %v802_v7  ;;  %v743_v27 = vmul.f32 %v3134_v37, %v4468_v5  ;;  %v744_v55 = vmul.f32 %v3136_v45, %v4468_v5  ;;  %3149 = vtanh.f32 %v772_v11 }
  0xe2   : > { %v806_v56 = vmul.f32 %v4479_v59, %v802_v7  ;;  %v745_v57 = vmul.f32 %v3138_v48, %v4468_v5  ;;  %3151 = vtanh.f32 %v773_v38  ;;  %v807_v60 = vmul.f32 %v4486_v20, %v802_v7 }
  0xe3   : > { %v813_v61 = vadd.f32 %v812_v43, %v803_v47  ;;  %v808_v63 = vmul.f32 %v4490_v62, %v802_v7  ;;  %v809_v8 = vmul.f32 %v4494_v25, %v802_v7  ;;  %v814_v0 = vadd.f32 %v812_v43, %v804_v52 }
  0xe4   : > { %v848_v54 = vstv %s4504_s6  ;;  %v4544_v10 = vadd.f32 %v741_v35, %v4483_v19  ;;  %v4546_v9 = vadd.f32 %v742_v50, %v704_v12  ;;  %v810_v14 = vmul.f32 %v4498_v26, %v802_v7  ;;  %s4672_s6 = sld [smem:[#allocation7 + $0x10]] }
  0xe5   : > { %v815_v16 = vadd.f32 %v812_v43, %v805_v51  ;;  %v3140_v17 = vpop.eup %3139  ;;  %v4549_v5 = vadd.f32 %v743_v27, %v705_v28  ;;  %v4551_v6 = vadd.f32 %v744_v55, %v706_v3  ;;  %3153 = vtanh.f32 %v774_v40 }
  0xe6   : > { %v816_v1 = vadd.f32 %v812_v43, %v806_v56  ;;  %v4555_v18 = vadd.f32 %v745_v57, %v707_v15  ;;  %v817_v22 = vadd.f32 %v812_v43, %v807_v60  ;;  %3155 = vtanh.f32 %v813_v61 }
  0xe7   : > { %v849_v19 = vmul.f32 %v4513_v46, %v848_v54  ;;  %v3142_v2 = vpop.eup %3141  ;;  %v818_v42 = vadd.f32 %v812_v43, %v808_v63  ;;  %v819_v23 = vadd.f32 %v812_v43, %v809_v8  ;;  %3157 = vtanh.f32 %v814_v0 }
  0xe8   : > { %v850_v12 = vmul.f32 %v4521_v49, %v848_v54  ;;  %v3144_v24 = vpop.eup %3143  ;;  %v784_v21 = vmul.f32 %v3140_v17, %v4508_v44  ;;  %v820_v53 = vadd.f32 %v812_v43, %v810_v14  ;;  %3159 = vtanh.f32 %v815_v16 }
  0xe9   : > { %v851_v28 = vmul.f32 %v4528_v41, %v848_v54  ;;  %v3146_v3 = vpop.eup %3145  ;;  %3161 = vtanh.f32 %v816_v1  ;;  %v4562_v29 = vstv %s4533_s8  ;;  %v852_v30 = vmul.f32 %v4479_v59, %v848_v54  ;;  %s4688_s8 = sld [smem:[#allocation3 + $0x11]] }
  0xea   : > { %v858_v4 = vstv %s4536_s9  ;;  %v3148_v31 = vpop.eup %3147  ;;  %v785_v32 = vmul.f32 %v3142_v2, %v4508_v44  ;;  %3163 = vtanh.f32 %v817_v22  ;;  %v853_v7 = vmul.f32 %v4486_v20, %v848_v54  ;;  %s4705_s9 = sld [smem:[#allocation7 + $0x11]] }
  0xeb   : > { %v859_v33 = vadd.f32 %v858_v4, %v849_v19  ;;  %v3150_v15 = vpop.eup %3149  ;;  %v786_v58 = vmul.f32 %v3144_v24, %v4508_v44  ;;  %3165 = vtanh.f32 %v818_v42  ;;  %v854_v34 = vmul.f32 %v4490_v62, %v848_v54 }
  0xec   : > { %v860_v11 = vadd.f32 %v858_v4, %v850_v12  ;;  %v3152_v37 = vpop.eup %3151  ;;  %v4573_v38 = vadd.f32 %v784_v21, %v4510_v13  ;;  %3167 = vtanh.f32 %v819_v23  ;;  %v855_v40 = vmul.f32 %v4494_v25, %v848_v54 }
  0xed   : > { %v861_v45 = vadd.f32 %v858_v4, %v851_v28  ;;  %v787_v47 = vmul.f32 %v3146_v3, %v4508_v44  ;;  %3169 = vtanh.f32 %v820_v53  ;;  %v862_v43 = vadd.f32 %v858_v4, %v852_v30 }
  0xee   : > { %v894_v48 = vstv %s4553_s10  ;;  %v788_v35 = vmul.f32 %v3148_v31, %v4508_v44  ;;  %v856_v52 = vmul.f32 %v4498_v26, %v848_v54  ;;  %v863_v50 = vadd.f32 %v858_v4, %v853_v7  ;;  %s4712_s10 = sld [smem:[#allocation9 + $0x10]] }
  0xef   : > { %3171 = vtanh.f32 %v859_v33  ;;  %v3154_v51 = vpop.eup %3153  ;;  %v789_v13 = vmul.f32 %v3150_v15, %v4508_v44  ;;  %v793_v27 = vadd.f32 %v785_v32, %v4518_v36  ;;  %v864_v55 = vadd.f32 %v858_v4, %v854_v34 }
  0xf0   : > { %3173 = vtanh.f32 %v860_v11  ;;  %v3156_v56 = vpop.eup %3155  ;;  %v790_v57 = vmul.f32 %v3152_v37, %v4508_v44  ;;  %v865_v60 = vadd.f32 %v858_v4, %v855_v40  ;;  %v895_v61 = vmul.f32 %v4513_v46, %v894_v48 }
  0xf1   : > { %3175 = vtanh.f32 %v861_v45  ;;  %v3158_v63 = vpop.eup %3157  ;;  %v794_v8 = vadd.f32 %v786_v58, %v4525_v39  ;;  %v795_v0 = vadd.f32 %v787_v47, %v4544_v10  ;;  %v896_v54 = vmul.f32 %v4521_v49, %v894_v48 }
  0xf2   : > { %3177 = vtanh.f32 %v862_v43  ;;  %v3160_v14 = vpop.eup %3159  ;;  %v796_v36 = vadd.f32 %v788_v35, %v4546_v9  ;;  %v866_v16 = vadd.f32 %v858_v4, %v856_v52  ;;  %v897_v17 = vmul.f32 %v4528_v41, %v894_v48 }
  0xf3   : > { %3179 = vtanh.f32 %v863_v50  ;;  %v3162_v1 = vpop.eup %3161  ;;  %v791_v22 = vmul.f32 %v3154_v51, %v4508_v44  ;;  %v797_v19 = vadd.f32 %v789_v13, %v4549_v5  ;;  %v904_v39 = vstv %s4570_s12  ;;  %s4729_s12 = sld [smem:[#allocation3 + $0x12]] }
  0xf4   : > { %3181 = vtanh.f32 %v864_v55  ;;  %v3164_v10 = vpop.eup %3163  ;;  %v798_v2 = vadd.f32 %v790_v57, %v4551_v6  ;;  %v898_v9 = vmul.f32 %v4479_v59, %v894_v48  ;;  %v905_v42 = vadd.f32 %v904_v39, %v895_v61 }
  0xf5   : > { %3183 = vtanh.f32 %v865_v60  ;;  %v3166_v23 = vpop.eup %3165  ;;  %v830_v12 = vmul.f32 %v3156_v56, %v4562_v29  ;;  %v4600_v24 = vstv %s4577_s16  ;;  %v899_v44 = vmul.f32 %v4486_v20, %v894_v48  ;;  %s4744_s16 = sld [smem:[#allocation7 + $0x12]] }
  0xf6   : > { %v906_v21 = vadd.f32 %v904_v39, %v896_v54  ;;  %v3168_v5 = vpop.eup %3167  ;;  %v831_v53 = vmul.f32 %v3158_v63, %v4562_v29  ;;  %3185 = vtanh.f32 %v866_v16  ;;  %v900_v28 = vmul.f32 %v4490_v62, %v894_v48 }
  0xf7   : > { %v907_v3 = vadd.f32 %v904_v39, %v897_v17  ;;  %v3170_v6 = vpop.eup %3169  ;;  %v799_v30 = vadd.f32 %v791_v22, %v4555_v18  ;;  %v832_v4 = vmul.f32 %v3160_v14, %v4562_v29  ;;  %v833_v31 = vmul.f32 %v3162_v1, %v4562_v29 }
  0xf8   : > { %v901_v32 = vmul.f32 %v4494_v25, %v894_v48  ;;  %v834_v33 = vmul.f32 %v3164_v10, %v4562_v29  ;;  %v902_v15 = vmul.f32 %v4498_v26, %v894_v48  ;;  %v908_v58 = vadd.f32 %v904_v39, %v898_v9 }
  0xf9   : > { %v3172_v7 = vpop.eup %3171  ;;  %3187 = vtanh.f32 %v905_v42  ;;  %v835_v18 = vmul.f32 %v3166_v23, %v4562_v29  ;;  %v836_v11 = vmul.f32 %v3168_v5, %v4562_v29  ;;  %v909_v37 = vadd.f32 %v904_v39, %v899_v44 }
  0xfa   : > { %v3174_v34 = vpop.eup %3173  ;;  %3189 = vtanh.f32 %v906_v21  ;;  %v838_v45 = vadd.f32 %v830_v12, %v4573_v38  ;;  %v839_v47 = vadd.f32 %v831_v53, %v793_v27  ;;  %v910_v43 = vadd.f32 %v904_v39, %v900_v28 }
  0xfb   : > { %v3176_v40 = vpop.eup %3175  ;;  %3191 = vtanh.f32 %v907_v3  ;;  %v837_v52 = vmul.f32 %v3170_v6, %v4562_v29  ;;  %v840_v48 = vadd.f32 %v832_v4, %v794_v8  ;;  %v911_v50 = vadd.f32 %v904_v39, %v901_v32 }
  0xfc   : > { %v3178_v35 = vpop.eup %3177  ;;  %v940_v51 = vstv %s4594_s11  ;;  %v841_v55 = vadd.f32 %v833_v31, %v795_v0  ;;  %v842_v56 = vadd.f32 %v834_v33, %v796_v36  ;;  %v912_v57 = vadd.f32 %v904_v39, %v902_v15  ;;  %s4747_s11 = sld [smem:[#allocation9 + $0x11]] }
  0xfd   : > { %v3180_v13 = vpop.eup %3179  ;;  %3193 = vtanh.f32 %v908_v58  ;;  %v843_v61 = vadd.f32 %v835_v18, %v797_v19  ;;  %v844_v63 = vadd.f32 %v836_v11, %v798_v2  ;;  %v876_v38 = vmul.f32 %v3172_v7, %v4600_v24 }
  0xfe   : > { %v3182_v60 = vpop.eup %3181  ;;  %3195 = vtanh.f32 %v909_v37  ;;  %v877_v54 = vmul.f32 %v3174_v34, %v4600_v24  ;;  %v878_v29 = vmul.f32 %v3176_v40, %v4600_v24  ;;  %v941_v8 = vmul.f32 %v4513_v46, %v940_v51 }
  0xff   : > { %v3184_v27 = vpop.eup %3183  ;;  %3197 = vtanh.f32 %v910_v43  ;;  %v845_v0 = vadd.f32 %v837_v52, %v799_v30  ;;  %v879_v14 = vmul.f32 %v3178_v35, %v4600_v24  ;;  %v950_v36 = vstv %s4609_s14  ;;  %s4759_s14 = sld [smem:[#allocation3 + $0x13]] }
 0x100   : > { %3199 = vtanh.f32 %v911_v50  ;;  %v3186_v16 = vpop.eup %3185  ;;  %v880_v17 = vmul.f32 %v3180_v13, %v4600_v24  ;;  %v4630_v1 = vstv %s4612_s15  ;;  %v942_v22 = vmul.f32 %v4521_v49, %v940_v51  ;;  %s4767_s15 = sld [smem:[#allocation9 + $0x12]] }
 0x101   : > { %3201 = vtanh.f32 %v912_v57  ;;  %v881_v19 = vmul.f32 %v3182_v60, %v4600_v24  ;;  %v882_v39 = vmul.f32 %v3184_v27, %v4600_v24  ;;  %v884_v10 = vadd.f32 %v876_v38, %v838_v45 }
 0x102   : > { %v943_v2 = vmul.f32 %v4528_v41, %v940_v51  ;;  %v885_v42 = vadd.f32 %v877_v54, %v839_v47  ;;  %v886_v23 = vadd.f32 %v878_v29, %v840_v48  ;;  %v944_v12 = vmul.f32 %v4479_v59, %v940_v51 }
 0x103   : > { %v3188_v9 = vpop.eup %3187  ;;  %v951_v44 = vadd.f32 %v950_v36, %v941_v8  ;;  %v883_v5 = vmul.f32 %v3186_v16, %v4600_v24  ;;  %v887_v53 = vadd.f32 %v879_v14, %v841_v55  ;;  %v945_v28 = vmul.f32 %v4486_v20, %v940_v51 }
 0x104   : > { %v3190_v21 = vpop.eup %3189  ;;  %v946_v3 = vmul.f32 %v4490_v62, %v940_v51  ;;  %v888_v30 = vadd.f32 %v880_v17, %v842_v56  ;;  %v947_v4 = vmul.f32 %v4494_v25, %v940_v51  ;;  %v948_v31 = vmul.f32 %v4498_v26, %v940_v51 }
 0x105   : > { %v3192_v6 = vpop.eup %3191  ;;  %v952_v32 = vadd.f32 %v950_v36, %v942_v22  ;;  %v889_v7 = vadd.f32 %v881_v19, %v843_v61  ;;  %v890_v33 = vadd.f32 %v882_v39, %v844_v63  ;;  %v922_v15 = vmul.f32 %v3188_v9, %v4630_v1 }
 0x106   : > { %v953_v58 = vadd.f32 %v950_v36, %v943_v2  ;;  %v923_v34 = vmul.f32 %v3190_v21, %v4630_v1  ;;  %v954_v18 = vadd.f32 %v950_v36, %v944_v12  ;;  %3203 = vtanh.f32 %v951_v44 }
 0x107   : > { %v3194_v24 = vpop.eup %3193  ;;  %v986_v11 = vstv %s4624_s18  ;;  %v891_v40 = vadd.f32 %v883_v5, %v845_v0  ;;  %v924_v45 = vmul.f32 %v3192_v6, %v4630_v1  ;;  %v955_v47 = vadd.f32 %v950_v36, %v945_v28  ;;  %s4773_s18 = sld [smem:[#allocation7 + $0x13]] }
 0x108   : > { %v3196_v37 = vpop.eup %3195  ;;  %v956_v43 = vadd.f32 %v950_v36, %v946_v3  ;;  %v957_v52 = vadd.f32 %v950_v36, %v947_v4  ;;  %v958_v48 = vadd.f32 %v950_v36, %v948_v31  ;;  %3205 = vtanh.f32 %v952_v32 }
 0x109   : > { %v3198_v35 = vpop.eup %3197  ;;  %v4653_v50 = vstv %s4632_s25  ;;  %v4655_v13 = vadd.f32 %v922_v15, %v884_v10  ;;  %3207 = vtanh.f32 %v953_v58  ;;  %v987_v55 = vmul.f32 %v4513_v46, %v986_v11  ;;  %s4784_s25 = sld [smem:[#allocation3 + $0x14]] }
 0x10a   : > { %v3200_v51 = vpop.eup %3199  ;;  %v996_v56 = vstv %s4638_s24  ;;  %v925_v60 = vmul.f32 %v3194_v24, %v4630_v1  ;;  %v4660_v61 = vadd.f32 %v923_v34, %v885_v42  ;;  %3209 = vtanh.f32 %v954_v18  ;;  %s4804_s24 = sld [smem:[#allocation9 + $0x13]] }
 0x10b   : > { %v3202_v57 = vpop.eup %3201  ;;  %v988_v63 = vmul.f32 %v4521_v49, %v986_v11  ;;  %v926_v38 = vmul.f32 %v3196_v37, %v4630_v1  ;;  %v4664_v27 = vadd.f32 %v924_v45, %v886_v23  ;;  %3211 = vtanh.f32 %v955_v47 }
 0x10c   : > { %v989_v54 = vmul.f32 %v4528_v41, %v986_v11  ;;  %v927_v29 = vmul.f32 %v3198_v35, %v4630_v1  ;;  %v928_v8 = vmul.f32 %v3200_v51, %v4630_v1  ;;  %3213 = vtanh.f32 %v956_v43 }
 0x10d   : > { %v990_v0 = vmul.f32 %v4479_v59, %v986_v11  ;;  %v929_v14 = vmul.f32 %v3202_v57, %v4630_v1  ;;  %3215 = vtanh.f32 %v957_v52  ;;  %v991_v36 = vmul.f32 %v4486_v20, %v986_v11 }
 0x10e   : > { %v997_v16 = vadd.f32 %v996_v56, %v987_v55  ;;  %v992_v17 = vmul.f32 %v4490_v62, %v986_v11  ;;  %v993_v22 = vmul.f32 %v4494_v25, %v986_v11  ;;  %v998_v19 = vadd.f32 %v996_v56, %v988_v63 }
 0x10f   : > { %v1032_v39 = vstv %s4649_s27  ;;  %v4679_v10 = vadd.f32 %v925_v60, %v887_v53  ;;  %v4681_v2 = vadd.f32 %v926_v38, %v888_v30  ;;  %v994_v9 = vmul.f32 %v4498_v26, %v986_v11  ;;  %s4807_s27 = sld [smem:[#allocation7 + $0x14]] }
 0x110   : > { %v999_v42 = vadd.f32 %v996_v56, %v989_v54  ;;  %v3204_v23 = vpop.eup %3203  ;;  %v4684_v12 = vadd.f32 %v927_v29, %v889_v7  ;;  %v4686_v1 = vadd.f32 %v928_v8, %v890_v33  ;;  %3217 = vtanh.f32 %v958_v48 }
 0x111   : > { %v1000_v44 = vadd.f32 %v996_v56, %v990_v0  ;;  %v4690_v21 = vadd.f32 %v929_v14, %v891_v40  ;;  %v1001_v5 = vadd.f32 %v996_v56, %v991_v36  ;;  %3219 = vtanh.f32 %v997_v16 }
 0x112   : > { %v1033_v53 = vmul.f32 %v4513_v46, %v1032_v39  ;;  %v3206_v28 = vpop.eup %3205  ;;  %v1002_v3 = vadd.f32 %v996_v56, %v992_v17  ;;  %v1003_v6 = vadd.f32 %v996_v56, %v993_v22  ;;  %3221 = vtanh.f32 %v998_v19 }
 0x113   : > { %v1034_v30 = vmul.f32 %v4521_v49, %v1032_v39  ;;  %v3208_v4 = vpop.eup %3207  ;;  %v968_v31 = vmul.f32 %v3204_v23, %v4653_v50  ;;  %v1004_v32 = vadd.f32 %v996_v56, %v994_v9  ;;  %3223 = vtanh.f32 %v999_v42 }
 0x114   : > { %v1035_v7 = vmul.f32 %v4528_v41, %v1032_v39  ;;  %v3210_v33 = vpop.eup %3209  ;;  %3225 = vtanh.f32 %v1000_v44  ;;  %v4697_v15 = vstv %s4669_s7  ;;  %v1036_v58 = vmul.f32 %v4479_v59, %v1032_v39  ;;  %s4823_s7 = sld [smem:[#allocation3 + $0x15]] }
 0x115   : > { %v1042_v24 = vstv %s4672_s6  ;;  %v3212_v34 = vpop.eup %3211  ;;  %v969_v18 = vmul.f32 %v3206_v28, %v4653_v50  ;;  %3227 = vtanh.f32 %v1001_v5  ;;  %v1037_v11 = vmul.f32 %v4486_v20, %v1032_v39  ;;  %s4849_s6 = sld [smem:[#allocation7 + $0x15]] }
 0x116   : > { %v1043_v37 = vadd.f32 %v1042_v24, %v1033_v53  ;;  %v3214_v40 = vpop.eup %3213  ;;  %v970_v45 = vmul.f32 %v3208_v4, %v4653_v50  ;;  %3229 = vtanh.f32 %v1002_v3  ;;  %v1038_v47 = vmul.f32 %v4490_v62, %v1032_v39 }
 0x117   : > { %v1044_v43 = vadd.f32 %v1042_v24, %v1034_v30  ;;  %v3216_v35 = vpop.eup %3215  ;;  %v4708_v52 = vadd.f32 %v968_v31, %v4655_v13  ;;  %3231 = vtanh.f32 %v1003_v6  ;;  %v1039_v48 = vmul.f32 %v4494_v25, %v1032_v39 }
 0x118   : > { %v1045_v51 = vadd.f32 %v1042_v24, %v1035_v7  ;;  %v971_v55 = vmul.f32 %v3210_v33, %v4653_v50  ;;  %3233 = vtanh.f32 %v1004_v32  ;;  %v1046_v56 = vadd.f32 %v1042_v24, %v1036_v58 }
 0x119   : > { %v1078_v57 = vstv %s4688_s8  ;;  %v972_v60 = vmul.f32 %v3212_v34, %v4653_v50  ;;  %v1040_v63 = vmul.f32 %v4498_v26, %v1032_v39  ;;  %v1047_v38 = vadd.f32 %v1042_v24, %v1037_v11  ;;  %s4859_s8 = sld [smem:[#allocation9 + $0x14]] }
 0x11a   : > { %3235 = vtanh.f32 %v1043_v37  ;;  %v3218_v54 = vpop.eup %3217  ;;  %v973_v13 = vmul.f32 %v3214_v40, %v4653_v50  ;;  %v977_v29 = vadd.f32 %v969_v18, %v4660_v61  ;;  %v1048_v8 = vadd.f32 %v1042_v24, %v1038_v47 }
 0x11b   : > { %3237 = vtanh.f32 %v1044_v43  ;;  %v3220_v0 = vpop.eup %3219  ;;  %v974_v14 = vmul.f32 %v3216_v35, %v4653_v50  ;;  %v1049_v36 = vadd.f32 %v1042_v24, %v1039_v48  ;;  %v1079_v16 = vmul.f32 %v4513_v46, %v1078_v57 }
 0x11c   : > { %3239 = vtanh.f32 %v1045_v51  ;;  %v3222_v17 = vpop.eup %3221  ;;  %v978_v22 = vadd.f32 %v970_v45, %v4664_v27  ;;  %v979_v19 = vadd.f32 %v971_v55, %v4679_v10  ;;  %v1080_v39 = vmul.f32 %v4521_v49, %v1078_v57 }
 0x11d   : > { %3241 = vtanh.f32 %v1046_v56  ;;  %v3224_v9 = vpop.eup %3223  ;;  %v980_v61 = vadd.f32 %v972_v60, %v4681_v2  ;;  %v1050_v42 = vadd.f32 %v1042_v24, %v1040_v63  ;;  %v1081_v23 = vmul.f32 %v4528_v41, %v1078_v57 }
 0x11e   : > { %3243 = vtanh.f32 %v1047_v38  ;;  %v3226_v44 = vpop.eup %3225  ;;  %v975_v5 = vmul.f32 %v3218_v54, %v4653_v50  ;;  %v981_v53 = vadd.f32 %v973_v13, %v4684_v12  ;;  %v1088_v27 = vstv %s4705_s9  ;;  %s4888_s9 = sld [smem:[#allocation3 + $0x16]] }
 0x11f   : > { %3245 = vtanh.f32 %v1048_v8  ;;  %v3228_v10 = vpop.eup %3227  ;;  %v982_v28 = vadd.f32 %v974_v14, %v4686_v1  ;;  %v1082_v2 = vmul.f32 %v4479_v59, %v1078_v57  ;;  %v1089_v3 = vadd.f32 %v1088_v27, %v1079_v16 }
 0x120   : > { %3247 = vtanh.f32 %v1049_v36  ;;  %v3230_v6 = vpop.eup %3229  ;;  %v1014_v30 = vmul.f32 %v3220_v0, %v4697_v15  ;;  %v4735_v4 = vstv %s4712_s10  ;;  %v1083_v50 = vmul.f32 %v4486_v20, %v1078_v57  ;;  %s4903_s10 = sld [smem:[#allocation7 + $0x16]] }
 0x121   : > { %v1090_v31 = vadd.f32 %v1088_v27, %v1080_v39  ;;  %v3232_v12 = vpop.eup %3231  ;;  %v1015_v32 = vmul.f32 %v3222_v17, %v4697_v15  ;;  %3249 = vtanh.f32 %v1050_v42  ;;  %v1084_v7 = vmul.f32 %v4490_v62, %v1078_v57 }
 0x122   : > { %v1091_v33 = vadd.f32 %v1088_v27, %v1081_v23  ;;  %v3234_v1 = vpop.eup %3233  ;;  %v983_v58 = vadd.f32 %v975_v5, %v4690_v21  ;;  %v1016_v24 = vmul.f32 %v3224_v9, %v4697_v15  ;;  %v1017_v34 = vmul.f32 %v3226_v44, %v4697_v15 }
 0x123   : > { %v1085_v18 = vmul.f32 %v4494_v25, %v1078_v57  ;;  %v1018_v37 = vmul.f32 %v3228_v10, %v4697_v15  ;;  %v1086_v40 = vmul.f32 %v4498_v26, %v1078_v57  ;;  %v1092_v45 = vadd.f32 %v1088_v27, %v1082_v2 }
 0x124   : > { %v3236_v11 = vpop.eup %3235  ;;  %3251 = vtanh.f32 %v1089_v3  ;;  %v1019_v21 = vmul.f32 %v3230_v6, %v4697_v15  ;;  %v1020_v43 = vmul.f32 %v3232_v12, %v4697_v15  ;;  %v1093_v35 = vadd.f32 %v1088_v27, %v1083_v50 }
 0x125   : > { %v3238_v47 = vpop.eup %3237  ;;  %3253 = vtanh.f32 %v1090_v31  ;;  %v1022_v51 = vadd.f32 %v1014_v30, %v4708_v52  ;;  %v1023_v55 = vadd.f32 %v1015_v32, %v977_v29  ;;  %v1094_v56 = vadd.f32 %v1088_v27, %v1084_v7 }
 0x126   : > { %v3240_v48 = vpop.eup %3239  ;;  %3255 = vtanh.f32 %v1091_v33  ;;  %v1021_v63 = vmul.f32 %v3234_v1, %v4697_v15  ;;  %v1024_v57 = vadd.f32 %v1016_v24, %v978_v22  ;;  %v1095_v38 = vadd.f32 %v1088_v27, %v1085_v18 }
 0x127   : > { %v3242_v60 = vpop.eup %3241  ;;  %v1124_v54 = vstv %s4729_s12  ;;  %v1025_v8 = vadd.f32 %v1017_v34, %v979_v19  ;;  %v1026_v0 = vadd.f32 %v1018_v37, %v980_v61  ;;  %v1096_v14 = vadd.f32 %v1088_v27, %v1086_v40  ;;  %s4906_s12 = sld [smem:[#allocation9 + $0x15]] }
 0x128   : > { %v3244_v13 = vpop.eup %3243  ;;  %3257 = vtanh.f32 %v1092_v45  ;;  %v1027_v16 = vadd.f32 %v1019_v21, %v981_v53  ;;  %v1028_v17 = vadd.f32 %v1020_v43, %v982_v28  ;;  %v1060_v52 = vmul.f32 %v3236_v11, %v4735_v4 }
 0x129   : > { %v3246_v36 = vpop.eup %3245  ;;  %3259 = vtanh.f32 %v1093_v35  ;;  %v1061_v39 = vmul.f32 %v3238_v47, %v4735_v4  ;;  %v1062_v15 = vmul.f32 %v3240_v48, %v4735_v4  ;;  %v1125_v22 = vmul.f32 %v4513_v46, %v1124_v54 }
 0x12a   : > { %v3248_v29 = vpop.eup %3247  ;;  %3261 = vtanh.f32 %v1094_v56  ;;  %v1029_v19 = vadd.f32 %v1021_v63, %v983_v58  ;;  %v1063_v9 = vmul.f32 %v3242_v60, %v4735_v4  ;;  %v1134_v61 = vstv %s4744_s16  ;;  %s4918_s16 = sld [smem:[#allocation3 + $0x17]] }
 0x12b   : > { %3263 = vtanh.f32 %v1095_v38  ;;  %v3250_v42 = vpop.eup %3249  ;;  %v1064_v23 = vmul.f32 %v3244_v13, %v4735_v4  ;;  %v4765_v44 = vstv %s4747_s11  ;;  %v1126_v5 = vmul.f32 %v4521_v49, %v1124_v54  ;;  %s4926_s11 = sld [smem:[#allocation9 + $0x16]] }
 0x12c   : > { %3265 = vtanh.f32 %v1096_v14  ;;  %v1065_v53 = vmul.f32 %v3246_v36, %v4735_v4  ;;  %v1066_v27 = vmul.f32 %v3248_v29, %v4735_v4  ;;  %v1068_v10 = vadd.f32 %v1060_v52, %v1022_v51 }
 0x12d   : > { %v1127_v28 = vmul.f32 %v4528_v41, %v1124_v54  ;;  %v1069_v3 = vadd.f32 %v1061_v39, %v1023_v55  ;;  %v1070_v6 = vadd.f32 %v1062_v15, %v1024_v57  ;;  %v1128_v30 = vmul.f32 %v4479_v59, %v1124_v54 }
 0x12e   : > { %v3252_v2 = vpop.eup %3251  ;;  %v1135_v50 = vadd.f32 %v1134_v61, %v1125_v22  ;;  %v1067_v12 = vmul.f32 %v3250_v42, %v4735_v4  ;;  %v1071_v32 = vadd.f32 %v1063_v9, %v1025_v8  ;;  %v1129_v7 = vmul.f32 %v4486_v20, %v1124_v54 }
 0x12f   : > { %v3254_v31 = vpop.eup %3253  ;;  %v1130_v33 = vmul.f32 %v4490_v62, %v1124_v54  ;;  %v1072_v58 = vadd.f32 %v1064_v23, %v1026_v0  ;;  %v1131_v24 = vmul.f32 %v4494_v25, %v1124_v54  ;;  %v1132_v34 = vmul.f32 %v4498_v26, %v1124_v54 }
 0x130   : > { %v3256_v1 = vpop.eup %3255  ;;  %v1136_v18 = vadd.f32 %v1134_v61, %v1126_v5  ;;  %v1073_v11 = vadd.f32 %v1065_v53, %v1027_v16  ;;  %v1074_v37 = vadd.f32 %v1066_v27, %v1028_v17  ;;  %v1106_v40 = vmul.f32 %v3252_v2, %v4765_v44 }
 0x131   : > { %v1137_v45 = vadd.f32 %v1134_v61, %v1127_v28  ;;  %v1107_v47 = vmul.f32 %v3254_v31, %v4765_v44  ;;  %v1138_v21 = vadd.f32 %v1134_v61, %v1128_v30  ;;  %3267 = vtanh.f32 %v1135_v50 }
 0x132   : > { %v3258_v4 = vpop.eup %3257  ;;  %v1170_v43 = vstv %s4759_s14  ;;  %v1075_v48 = vadd.f32 %v1067_v12, %v1029_v19  ;;  %v1108_v51 = vmul.f32 %v3256_v1, %v4765_v44  ;;  %v1139_v55 = vadd.f32 %v1134_v61, %v1129_v7  ;;  %s4932_s14 = sld [smem:[#allocation7 + $0x17]] }
 0x133   : > { %v3260_v35 = vpop.eup %3259  ;;  %v1140_v56 = vadd.f32 %v1134_v61, %v1130_v33  ;;  %v1141_v63 = vadd.f32 %v1134_v61, %v1131_v24  ;;  %v1142_v57 = vadd.f32 %v1134_v61, %v1132_v34  ;;  %3269 = vtanh.f32 %v1136_v18 }
 0x134   : > { %v3262_v60 = vpop.eup %3261  ;;  %v4788_v38 = vstv %s4767_s15  ;;  %v4790_v13 = vadd.f32 %v1106_v40, %v1068_v10  ;;  %3271 = vtanh.f32 %v1137_v45  ;;  %v1171_v8 = vmul.f32 %v4513_v46, %v1170_v43  ;;  %s4943_s15 = sld [smem:[#allocation3 + $0x18]] }
 0x135   : > { %v3264_v54 = vpop.eup %3263  ;;  %v1180_v0 = vstv %s4773_s18  ;;  %v1109_v36 = vmul.f32 %v3258_v4, %v4765_v44  ;;  %v4795_v16 = vadd.f32 %v1107_v47, %v1069_v3  ;;  %3273 = vtanh.f32 %v1138_v21  ;;  %v4846_v47 = vld [vmem:[%s4167_s13 + $0x28] sm:$0xff]  ;;  %s4963_s18 = sld [smem:[#allocation9 + $0x17]] }
 0x136   : > { %v3266_v14 = vpop.eup %3265  ;;  %v1172_v17 = vmul.f32 %v4521_v49, %v1170_v43  ;;  %v1110_v52 = vmul.f32 %v3260_v35, %v4765_v44  ;;  %v4799_v29 = vadd.f32 %v1108_v51, %v1070_v6  ;;  %3275 = vtanh.f32 %v1139_v55  ;;  %v4855_v51 = vld [vmem:[%s4167_s13 + $0x30] sm:$0xff] }
 0x137   : > { %v1173_v39 = vmul.f32 %v4528_v41, %v1170_v43  ;;  %v1111_v15 = vmul.f32 %v3262_v60, %v4765_v44  ;;  %v1112_v22 = vmul.f32 %v3264_v54, %v4765_v44  ;;  %3277 = vtanh.f32 %v1140_v56 }
 0x138   : > { %v1174_v19 = vmul.f32 %v4479_v59, %v1170_v43  ;;  %v1113_v9 = vmul.f32 %v3266_v14, %v4765_v44  ;;  %3279 = vtanh.f32 %v1141_v63  ;;  %v1175_v61 = vmul.f32 %v4486_v20, %v1170_v43 }
 0x139   : > { %v1181_v42 = vadd.f32 %v1180_v0, %v1171_v8  ;;  %v1176_v23 = vmul.f32 %v4490_v62, %v1170_v43  ;;  %v1177_v5 = vmul.f32 %v4494_v25, %v1170_v43  ;;  %v1182_v53 = vadd.f32 %v1180_v0, %v1172_v17  ;;  %v4864_v8 = vld [vmem:[%s4167_s13 + $0x38] sm:$0xff] }
 0x13a   : > { %v1216_v27 = vstv %s4784_s25  ;;  %v4814_v10 = vadd.f32 %v1109_v36, %v1071_v32  ;;  %v4816_v28 = vadd.f32 %v1110_v52, %v1072_v58  ;;  %v1178_v59 = vmul.f32 %v4498_v26, %v1170_v43  ;;  %s4966_s25 = sld [smem:[#allocation7 + $0x18]] }
 0x13b   : > { %v1183_v2 = vadd.f32 %v1180_v0, %v1173_v39  ;;  %v3268_v3 = vpop.eup %3267  ;;  %v4819_v6 = vadd.f32 %v1111_v15, %v1073_v11  ;;  %v4821_v44 = vadd.f32 %v1112_v22, %v1074_v37  ;;  %3281 = vtanh.f32 %v1142_v57  ;;  %v4841_v37 = vld [vmem:[%s4167_s13 + $0x20] sm:$0xff] }
 0x13c   : > { %v1184_v20 = vadd.f32 %v1180_v0, %v1174_v19  ;;  %v4825_v62 = vadd.f32 %v1113_v9, %v1075_v48  ;;  %v1185_v25 = vadd.f32 %v1180_v0, %v1175_v61  ;;  %3283 = vtanh.f32 %v1181_v42  ;;  %v4871_v19 = vld [vmem:[%s4167_s13] sm:$0xff] }
 0x13d   : > { %v1217_v30 = vmul.f32 %v4513_v46, %v1216_v27  ;;  %v3270_v26 = vpop.eup %3269  ;;  %v1186_v50 = vadd.f32 %v1180_v0, %v1176_v23  ;;  %v1187_v31 = vadd.f32 %v1180_v0, %v1177_v5  ;;  %3285 = vtanh.f32 %v1182_v53  ;;  %v4835_v46 = vld [vmem:[%s4167_s13 + $0x18] sm:$0xff] }
 0x13e   : > { %v1218_v12 = vmul.f32 %v4521_v49, %v1216_v27  ;;  %v3272_v32 = vpop.eup %3271  ;;  %v1152_v7 = vmul.f32 %v3268_v3, %v4788_v38  ;;  %v1188_v33 = vadd.f32 %v1180_v0, %v1178_v59  ;;  %3287 = vtanh.f32 %v1183_v2  ;;  %v4882_v2 = vld [vmem:[%s4167_s13 + $0x10] sm:$0xff] }
 0x13f   : > { %v1219_v1 = vmul.f32 %v4528_v41, %v1216_v27  ;;  %v3274_v58 = vpop.eup %3273  ;;  %3289 = vtanh.f32 %v1184_v20  ;;  %v4832_v24 = vstv %s4804_s24  ;;  %v1220_v34 = vmul.f32 %v4835_v46, %v1216_v27  ;;  %s4982_s24 = sld [smem:[#allocation3 + $0x19]] }
 0x140   : > { %v1226_v18 = vstv %s4807_s27  ;;  %v3276_v11 = vpop.eup %3275  ;;  %v1153_v49 = vmul.f32 %v3270_v26, %v4788_v38  ;;  %3291 = vtanh.f32 %v1185_v25  ;;  %v1221_v40 = vmul.f32 %v4841_v37, %v1216_v27  ;;  %s4999_s27 = sld [smem:[#allocation7 + $0x19]] }
 0x141   : > { %v1227_v41 = vadd.f32 %v1226_v18, %v1217_v30  ;;  %v3278_v45 = vpop.eup %3277  ;;  %v1154_v4 = vmul.f32 %v3272_v32, %v4788_v38  ;;  %3293 = vtanh.f32 %v1186_v50  ;;  %v1222_v21 = vmul.f32 %v4846_v47, %v1216_v27 }
 0x142   : > { %v1228_v43 = vadd.f32 %v1226_v18, %v1218_v12  ;;  %v3280_v35 = vpop.eup %3279  ;;  %v4852_v48 = vadd.f32 %v1152_v7, %v4790_v13  ;;  %3295 = vtanh.f32 %v1187_v31  ;;  %v1223_v55 = vmul.f32 %v4855_v51, %v1216_v27 }
 0x143   : > { %v1229_v56 = vadd.f32 %v1226_v18, %v1219_v1  ;;  %v1155_v60 = vmul.f32 %v3274_v58, %v4788_v38  ;;  %3297 = vtanh.f32 %v1188_v33  ;;  %v1230_v63 = vadd.f32 %v1226_v18, %v1220_v34 }
 0x144   : > { %v1262_v57 = vstv %s4823_s7  ;;  %v1156_v54 = vmul.f32 %v3276_v11, %v4788_v38  ;;  %v1224_v13 = vmul.f32 %v4864_v8, %v1216_v27  ;;  %v1231_v0 = vadd.f32 %v1226_v18, %v1221_v40  ;;  %s5006_s7 = sld [smem:[#allocation9 + $0x18]] }
 0x145   : > { %3299 = vtanh.f32 %v1227_v41  ;;  %v3282_v14 = vpop.eup %3281  ;;  %v1157_v36 = vmul.f32 %v3278_v45, %v4788_v38  ;;  %v1161_v17 = vadd.f32 %v1153_v49, %v4795_v16  ;;  %v1232_v52 = vadd.f32 %v1226_v18, %v1222_v21  ;;  %v4877_v16 = vld [vmem:[%s4167_s13 + $0x8] sm:$0xff] }
 0x146   : > { %3301 = vtanh.f32 %v1228_v43  ;;  %v3284_v39 = vpop.eup %3283  ;;  %v1158_v15 = vmul.f32 %v3280_v35, %v4788_v38  ;;  %v1233_v22 = vadd.f32 %v1226_v18, %v1223_v55  ;;  %v1263_v9 = vmul.f32 %v4871_v19, %v1262_v57 }
 0x147   : > { %3303 = vtanh.f32 %v1229_v56  ;;  %v3286_v61 = vpop.eup %3285  ;;  %v1162_v42 = vadd.f32 %v1154_v4, %v4799_v29  ;;  %v1163_v23 = vadd.f32 %v1155_v60, %v4814_v10  ;;  %v1264_v5 = vmul.f32 %v4877_v16, %v1262_v57 }
 0x148   : > { %3305 = vtanh.f32 %v1230_v63  ;;  %v3288_v53 = vpop.eup %3287  ;;  %v1164_v27 = vadd.f32 %v1156_v54, %v4816_v28  ;;  %v1234_v59 = vadd.f32 %v1226_v18, %v1224_v13  ;;  %v1265_v3 = vmul.f32 %v4882_v2, %v1262_v57 }
 0x149   : > { %3307 = vtanh.f32 %v1231_v0  ;;  %v3290_v20 = vpop.eup %3289  ;;  %v1159_v29 = vmul.f32 %v3282_v14, %v4788_v38  ;;  %v1165_v10 = vadd.f32 %v1157_v36, %v4819_v6  ;;  %v1272_v25 = vstv %s4849_s6  ;;  %s5023_s6 = sld [smem:[#allocation3 + $0x1a]] }
 0x14a   : > { %3309 = vtanh.f32 %v1232_v52  ;;  %v3292_v30 = vpop.eup %3291  ;;  %v1166_v26 = vadd.f32 %v1158_v15, %v4821_v44  ;;  %v1266_v28 = vmul.f32 %v4835_v46, %v1262_v57  ;;  %v1273_v50 = vadd.f32 %v1272_v25, %v1263_v9 }
 0x14b   : > { %3311 = vtanh.f32 %v1233_v22  ;;  %v3294_v31 = vpop.eup %3293  ;;  %v1198_v12 = vmul.f32 %v3284_v39, %v4832_v24  ;;  %v4894_v32 = vstv %s4859_s8  ;;  %v1267_v38 = vmul.f32 %v4841_v37, %v1262_v57  ;;  %s5038_s8 = sld [smem:[#allocation7 + $0x1a]] }
 0x14c   : > { %v1274_v7 = vadd.f32 %v1272_v25, %v1264_v5  ;;  %v3296_v6 = vpop.eup %3295  ;;  %v1199_v33 = vmul.f32 %v3286_v61, %v4832_v24  ;;  %3313 = vtanh.f32 %v1234_v59  ;;  %v1268_v1 = vmul.f32 %v4846_v47, %v1262_v57 }
 0x14d   : > { %v1275_v58 = vadd.f32 %v1272_v25, %v1265_v3  ;;  %v3298_v44 = vpop.eup %3297  ;;  %v1167_v34 = vadd.f32 %v1159_v29, %v4825_v62  ;;  %v1200_v18 = vmul.f32 %v3288_v53, %v4832_v24  ;;  %v1201_v11 = vmul.f32 %v3290_v20, %v4832_v24 }
 0x14e   : > { %v1269_v49 = vmul.f32 %v4855_v51, %v1262_v57  ;;  %v1202_v41 = vmul.f32 %v3292_v30, %v4832_v24  ;;  %v1270_v45 = vmul.f32 %v4864_v8, %v1262_v57  ;;  %v1276_v4 = vadd.f32 %v1272_v25, %v1266_v28 }
 0x14f   : > { %v3300_v40 = vpop.eup %3299  ;;  %3315 = vtanh.f32 %v1273_v50  ;;  %v1203_v62 = vmul.f32 %v3294_v31, %v4832_v24  ;;  %v1204_v43 = vmul.f32 %v3296_v6, %v4832_v24  ;;  %v1277_v35 = vadd.f32 %v1272_v25, %v1267_v38 }
 0x150   : > { %v3302_v21 = vpop.eup %3301  ;;  %3317 = vtanh.f32 %v1274_v7  ;;  %v1206_v56 = vadd.f32 %v1198_v12, %v4852_v48  ;;  %v1207_v60 = vadd.f32 %v1199_v33, %v1161_v17  ;;  %v1278_v63 = vadd.f32 %v1272_v25, %v1268_v1 }
 0x151   : > { %v3304_v55 = vpop.eup %3303  ;;  %3319 = vtanh.f32 %v1275_v58  ;;  %v1205_v13 = vmul.f32 %v3298_v44, %v4832_v24  ;;  %v1208_v57 = vadd.f32 %v1200_v18, %v1162_v42  ;;  %v1279_v0 = vadd.f32 %v1272_v25, %v1269_v49 }
 0x152   : > { %v3306_v54 = vpop.eup %3305  ;;  %v1308_v14 = vstv %s4888_s9  ;;  %v1209_v52 = vadd.f32 %v1201_v11, %v1163_v23  ;;  %v1210_v39 = vadd.f32 %v1202_v41, %v1164_v27  ;;  %v1280_v15 = vadd.f32 %v1272_v25, %v1270_v45  ;;  %s5041_s9 = sld [smem:[#allocation9 + $0x19]] }
 0x153   : > { %v3308_v36 = vpop.eup %3307  ;;  %3321 = vtanh.f32 %v1276_v4  ;;  %v1211_v9 = vadd.f32 %v1203_v62, %v1165_v10  ;;  %v1212_v61 = vadd.f32 %v1204_v43, %v1166_v26  ;;  %v1244_v48 = vmul.f32 %v3300_v40, %v4894_v32 }
 0x154   : > { %v3310_v22 = vpop.eup %3309  ;;  %3323 = vtanh.f32 %v1277_v35  ;;  %v1245_v5 = vmul.f32 %v3302_v21, %v4894_v32  ;;  %v1246_v24 = vmul.f32 %v3304_v55, %v4894_v32  ;;  %v1309_v42 = vmul.f32 %v4871_v19, %v1308_v14 }
 0x155   : > { %v3312_v17 = vpop.eup %3311  ;;  %3325 = vtanh.f32 %v1278_v63  ;;  %v1213_v23 = vadd.f32 %v1205_v13, %v1167_v34  ;;  %v1247_v53 = vmul.f32 %v3306_v54, %v4894_v32  ;;  %v1318_v27 = vstv %s4903_s10  ;;  %s5053_s10 = sld [smem:[#allocation3 + $0x1b]] }
 0x156   : > { %3327 = vtanh.f32 %v1279_v0  ;;  %v3314_v59 = vpop.eup %3313  ;;  %v1248_v3 = vmul.f32 %v3308_v36, %v4894_v32  ;;  %v4924_v20 = vstv %s4906_s12  ;;  %v1310_v29 = vmul.f32 %v4877_v16, %v1308_v14  ;;  %s5061_s12 = sld [smem:[#allocation9 + $0x1a]] }
 0x157   : > { %3329 = vtanh.f32 %v1280_v15  ;;  %v1249_v10 = vmul.f32 %v3310_v22, %v4894_v32  ;;  %v1250_v25 = vmul.f32 %v3312_v17, %v4894_v32  ;;  %v1252_v30 = vadd.f32 %v1244_v48, %v1206_v56 }
 0x158   : > { %v1311_v26 = vmul.f32 %v4882_v2, %v1308_v14  ;;  %v1253_v50 = vadd.f32 %v1245_v5, %v1207_v60  ;;  %v1254_v31 = vadd.f32 %v1246_v24, %v1208_v57  ;;  %v1312_v12 = vmul.f32 %v4835_v46, %v1308_v14 }
 0x159   : > { %v3316_v28 = vpop.eup %3315  ;;  %v1319_v38 = vadd.f32 %v1318_v27, %v1309_v42  ;;  %v1251_v6 = vmul.f32 %v3314_v59, %v4894_v32  ;;  %v1255_v33 = vadd.f32 %v1247_v53, %v1209_v52  ;;  %v1313_v1 = vmul.f32 %v4841_v37, %v1308_v14 }
 0x15a   : > { %v3318_v7 = vpop.eup %3317  ;;  %v1314_v58 = vmul.f32 %v4846_v47, %v1308_v14  ;;  %v1256_v34 = vadd.f32 %v1248_v3, %v1210_v39  ;;  %v1315_v18 = vmul.f32 %v4855_v51, %v1308_v14  ;;  %v1316_v11 = vmul.f32 %v4864_v8, %v1308_v14 }
 0x15b   : > { %v3320_v44 = vpop.eup %3319  ;;  %v1320_v49 = vadd.f32 %v1318_v27, %v1310_v29  ;;  %v1257_v40 = vadd.f32 %v1249_v10, %v1211_v9  ;;  %v1258_v41 = vadd.f32 %v1250_v25, %v1212_v61  ;;  %v1290_v45 = vmul.f32 %v3316_v28, %v4924_v20 }
 0x15c   : > { %v1321_v4 = vadd.f32 %v1318_v27, %v1311_v26  ;;  %v1291_v21 = vmul.f32 %v3318_v7, %v4924_v20  ;;  %v1322_v62 = vadd.f32 %v1318_v27, %v1312_v12  ;;  %3331 = vtanh.f32 %v1319_v38 }
 0x15d   : > { %v3322_v32 = vpop.eup %3321  ;;  %v1354_v43 = vstv %s4918_s16  ;;  %v1259_v55 = vadd.f32 %v1251_v6, %v1213_v23  ;;  %v1292_v56 = vmul.f32 %v3320_v44, %v4924_v20  ;;  %v1323_v60 = vadd.f32 %v1318_v27, %v1313_v1  ;;  %s5067_s16 = sld [smem:[#allocation7 + $0x1b]] }
 0x15e   : > { %v3324_v35 = vpop.eup %3323  ;;  %v1324_v63 = vadd.f32 %v1318_v27, %v1314_v58  ;;  %v1325_v13 = vadd.f32 %v1318_v27, %v1315_v18  ;;  %v1326_v57 = vadd.f32 %v1318_v27, %v1316_v11  ;;  %3333 = vtanh.f32 %v1320_v49 }
 0x15f   : > { %v3326_v54 = vpop.eup %3325  ;;  %v4947_v0 = vstv %s4926_s11  ;;  %v4949_v36 = vadd.f32 %v1290_v45, %v1252_v30  ;;  %3335 = vtanh.f32 %v1321_v4  ;;  %v1355_v52 = vmul.f32 %v4871_v19, %v1354_v43  ;;  %s5078_s11 = sld [smem:[#allocation3 + $0x1c]] }
 0x160   : > { %v3328_v14 = vpop.eup %3327  ;;  %v1364_v39 = vstv %s4932_s14  ;;  %v1293_v22 = vmul.f32 %v3322_v32, %v4924_v20  ;;  %v4954_v9 = vadd.f32 %v1291_v21, %v1253_v50  ;;  %3337 = vtanh.f32 %v1322_v62  ;;  %s5098_s14 = sld [smem:[#allocation9 + $0x1b]] }
 0x161   : > { %v3330_v15 = vpop.eup %3329  ;;  %v1356_v61 = vmul.f32 %v4877_v16, %v1354_v43  ;;  %v1294_v48 = vmul.f32 %v3324_v35, %v4924_v20  ;;  %v4958_v17 = vadd.f32 %v1292_v56, %v1254_v31  ;;  %3339 = vtanh.f32 %v1323_v60 }
 0x162   : > { %v1357_v5 = vmul.f32 %v4882_v2, %v1354_v43  ;;  %v1295_v24 = vmul.f32 %v3326_v54, %v4924_v20  ;;  %v1296_v42 = vmul.f32 %v3328_v14, %v4924_v20  ;;  %3341 = vtanh.f32 %v1324_v63 }
 0x163   : > { %v1358_v23 = vmul.f32 %v4835_v46, %v1354_v43  ;;  %v1297_v53 = vmul.f32 %v3330_v15, %v4924_v20  ;;  %3343 = vtanh.f32 %v1325_v13  ;;  %v1359_v27 = vmul.f32 %v4841_v37, %v1354_v43 }
 0x164   : > { %v1365_v59 = vadd.f32 %v1364_v39, %v1355_v52  ;;  %v1360_v3 = vmul.f32 %v4846_v47, %v1354_v43  ;;  %v1361_v29 = vmul.f32 %v4855_v51, %v1354_v43  ;;  %v1366_v10 = vadd.f32 %v1364_v39, %v1356_v61 }
 0x165   : > { %v1400_v25 = vstv %s4943_s15  ;;  %v4973_v30 = vadd.f32 %v1293_v22, %v1255_v33  ;;  %v4975_v26 = vadd.f32 %v1294_v48, %v1256_v34  ;;  %v1362_v28 = vmul.f32 %v4864_v8, %v1354_v43  ;;  %s5101_s15 = sld [smem:[#allocation7 + $0x1c]] }
 0x166   : > { %v1367_v50 = vadd.f32 %v1364_v39, %v1357_v5  ;;  %v3332_v31 = vpop.eup %3331  ;;  %v4978_v12 = vadd.f32 %v1295_v24, %v1257_v40  ;;  %v4980_v20 = vadd.f32 %v1296_v42, %v1258_v41  ;;  %3345 = vtanh.f32 %v1326_v57 }
 0x167   : > { %v1368_v38 = vadd.f32 %v1364_v39, %v1358_v23  ;;  %v4984_v7 = vadd.f32 %v1297_v53, %v1259_v55  ;;  %v1369_v6 = vadd.f32 %v1364_v39, %v1359_v27  ;;  %3347 = vtanh.f32 %v1365_v59 }
 0x168   : > { %v1401_v33 = vmul.f32 %v4871_v19, %v1400_v25  ;;  %v3334_v1 = vpop.eup %3333  ;;  %v1370_v58 = vadd.f32 %v1364_v39, %v1360_v3  ;;  %v1371_v44 = vadd.f32 %v1364_v39, %v1361_v29  ;;  %3349 = vtanh.f32 %v1366_v10 }
 0x169   : > { %v1402_v34 = vmul.f32 %v4877_v16, %v1400_v25  ;;  %v3336_v18 = vpop.eup %3335  ;;  %v1336_v11 = vmul.f32 %v3332_v31, %v4947_v0  ;;  %v1372_v49 = vadd.f32 %v1364_v39, %v1362_v28  ;;  %3351 = vtanh.f32 %v1367_v50 }
 0x16a   : > { %v1403_v40 = vmul.f32 %v4882_v2, %v1400_v25  ;;  %v3338_v41 = vpop.eup %3337  ;;  %3353 = vtanh.f32 %v1368_v38  ;;  %v4991_v45 = vstv %s4963_s18  ;;  %v1404_v4 = vmul.f32 %v4835_v46, %v1400_v25  ;;  %s5117_s18 = sld [smem:[#allocation3 + $0x1d]] }
 0x16b   : > { %v1410_v32 = vstv %s4966_s25  ;;  %v3340_v21 = vpop.eup %3339  ;;  %v1337_v62 = vmul.f32 %v3334_v1, %v4947_v0  ;;  %3355 = vtanh.f32 %v1369_v6  ;;  %v1405_v43 = vmul.f32 %v4841_v37, %v1400_v25  ;;  %s5134_s25 = sld [smem:[#allocation7 + $0x1d]] }
 0x16c   : > { %v1411_v35 = vadd.f32 %v1410_v32, %v1401_v33  ;;  %v3342_v55 = vpop.eup %3341  ;;  %v1338_v56 = vmul.f32 %v3336_v18, %v4947_v0  ;;  %3357 = vtanh.f32 %v1370_v58  ;;  %v1406_v60 = vmul.f32 %v4846_v47, %v1400_v25 }
 0x16d   : > { %v1412_v63 = vadd.f32 %v1410_v32, %v1402_v34  ;;  %v3344_v54 = vpop.eup %3343  ;;  %v5002_v13 = vadd.f32 %v1336_v11, %v4949_v36  ;;  %3359 = vtanh.f32 %v1371_v44  ;;  %v1407_v57 = vmul.f32 %v4855_v51, %v1400_v25 }
 0x16e   : > { %v1413_v14 = vadd.f32 %v1410_v32, %v1403_v40  ;;  %v1339_v52 = vmul.f32 %v3338_v41, %v4947_v0  ;;  %3361 = vtanh.f32 %v1372_v49  ;;  %v1414_v39 = vadd.f32 %v1410_v32, %v1404_v4 }
 0x16f   : > { %v1446_v15 = vstv %s4982_s24  ;;  %v1340_v22 = vmul.f32 %v3340_v21, %v4947_v0  ;;  %v1408_v61 = vmul.f32 %v4864_v8, %v1400_v25  ;;  %v1415_v48 = vadd.f32 %v1410_v32, %v1405_v43  ;;  %s5141_s24 = sld [smem:[#allocation9 + $0x1c]] }
 0x170   : > { %3363 = vtanh.f32 %v1411_v35  ;;  %v3346_v5 = vpop.eup %3345  ;;  %v1341_v36 = vmul.f32 %v3342_v55, %v4947_v0  ;;  %v1345_v24 = vadd.f32 %v1337_v62, %v4954_v9  ;;  %v1416_v42 = vadd.f32 %v1410_v32, %v1406_v60 }
 0x171   : > { %3365 = vtanh.f32 %v1412_v63  ;;  %v3348_v23 = vpop.eup %3347  ;;  %v1342_v53 = vmul.f32 %v3344_v54, %v4947_v0  ;;  %v1417_v27 = vadd.f32 %v1410_v32, %v1407_v57  ;;  %v1447_v59 = vmul.f32 %v4871_v19, %v1446_v15 }
 0x172   : > { %3367 = vtanh.f32 %v1413_v14  ;;  %v3350_v3 = vpop.eup %3349  ;;  %v1346_v29 = vadd.f32 %v1338_v56, %v4958_v17  ;;  %v1347_v10 = vadd.f32 %v1339_v52, %v4973_v30  ;;  %v1448_v25 = vmul.f32 %v4877_v16, %v1446_v15 }
 0x173   : > { %3369 = vtanh.f32 %v1414_v39  ;;  %v3352_v28 = vpop.eup %3351  ;;  %v1348_v9 = vadd.f32 %v1340_v22, %v4975_v26  ;;  %v1418_v50 = vadd.f32 %v1410_v32, %v1408_v61  ;;  %v1449_v31 = vmul.f32 %v4882_v2, %v1446_v15 }
 0x174   : > { %3371 = vtanh.f32 %v1415_v48  ;;  %v3354_v38 = vpop.eup %3353  ;;  %v1343_v6 = vmul.f32 %v3346_v5, %v4947_v0  ;;  %v1349_v33 = vadd.f32 %v1341_v36, %v4978_v12  ;;  %v1456_v17 = vstv %s4999_s27  ;;  %s5158_s27 = sld [smem:[#allocation3 + $0x1e]] }
 0x175   : > { %3373 = vtanh.f32 %v1416_v42  ;;  %v3356_v30 = vpop.eup %3355  ;;  %v1350_v1 = vadd.f32 %v1342_v53, %v4980_v20  ;;  %v1450_v26 = vmul.f32 %v4835_v46, %v1446_v15  ;;  %v1457_v58 = vadd.f32 %v1456_v17, %v1447_v59 }
 0x176   : > { %3375 = vtanh.f32 %v1417_v27  ;;  %v3358_v44 = vpop.eup %3357  ;;  %v1382_v34 = vmul.f32 %v3348_v23, %v4991_v45  ;;  %v5029_v18 = vstv %s5006_s7  ;;  %v1451_v0 = vmul.f32 %v4841_v37, %v1446_v15  ;;  %s5173_s7 = sld [smem:[#allocation7 + $0x1e]] }
 0x177   : > { %v1458_v11 = vadd.f32 %v1456_v17, %v1448_v25  ;;  %v3360_v12 = vpop.eup %3359  ;;  %v1383_v49 = vmul.f32 %v3350_v3, %v4991_v45  ;;  %3377 = vtanh.f32 %v1418_v50  ;;  %v1452_v40 = vmul.f32 %v4846_v47, %v1446_v15 }
 0x178   : > { %v1459_v41 = vadd.f32 %v1456_v17, %v1449_v31  ;;  %v3362_v20 = vpop.eup %3361  ;;  %v1351_v4 = vadd.f32 %v1343_v6, %v4984_v7  ;;  %v1384_v32 = vmul.f32 %v3352_v28, %v4991_v45  ;;  %v1385_v21 = vmul.f32 %v3354_v38, %v4991_v45 }
 0x179   : > { %v1453_v62 = vmul.f32 %v4855_v51, %v1446_v15  ;;  %v1386_v35 = vmul.f32 %v3356_v30, %v4991_v45  ;;  %v1454_v55 = vmul.f32 %v4864_v8, %v1446_v15  ;;  %v1460_v56 = vadd.f32 %v1456_v17, %v1450_v26 }
 0x17a   : > { %v3364_v43 = vpop.eup %3363  ;;  %3379 = vtanh.f32 %v1457_v58  ;;  %v1387_v7 = vmul.f32 %v3358_v44, %v4991_v45  ;;  %v1388_v63 = vmul.f32 %v3360_v12, %v4991_v45  ;;  %v1461_v54 = vadd.f32 %v1456_v17, %v1451_v0 }
 0x17b   : > { %v3366_v60 = vpop.eup %3365  ;;  %3381 = vtanh.f32 %v1458_v11  ;;  %v1390_v14 = vadd.f32 %v1382_v34, %v5002_v13  ;;  %v1391_v52 = vadd.f32 %v1383_v49, %v1345_v24  ;;  %v1462_v39 = vadd.f32 %v1456_v17, %v1452_v40 }
 0x17c   : > { %v3368_v57 = vpop.eup %3367  ;;  %3383 = vtanh.f32 %v1459_v41  ;;  %v1389_v61 = vmul.f32 %v3362_v20, %v4991_v45  ;;  %v1392_v15 = vadd.f32 %v1384_v32, %v1346_v29  ;;  %v1463_v48 = vadd.f32 %v1456_v17, %v1453_v62 }
 0x17d   : > { %v3370_v22 = vpop.eup %3369  ;;  %v1492_v5 = vstv %s5023_s6  ;;  %v1393_v42 = vadd.f32 %v1385_v21, %v1347_v10  ;;  %v1394_v23 = vadd.f32 %v1386_v35, %v1348_v9  ;;  %v1464_v53 = vadd.f32 %v1456_v17, %v1454_v55  ;;  %s5176_s6 = sld [smem:[#allocation9 + $0x1d]] }
 0x17e   : > { %v3372_v36 = vpop.eup %3371  ;;  %3385 = vtanh.f32 %v1460_v56  ;;  %v1395_v59 = vadd.f32 %v1387_v7, %v1349_v33  ;;  %v1396_v3 = vadd.f32 %v1388_v63, %v1350_v1  ;;  %v1428_v13 = vmul.f32 %v3364_v43, %v5029_v18 }
 0x17f   : > { %v3374_v27 = vpop.eup %3373  ;;  %3387 = vtanh.f32 %v1461_v54  ;;  %v1429_v25 = vmul.f32 %v3366_v60, %v5029_v18  ;;  %v1430_v45 = vmul.f32 %v3368_v57, %v5029_v18  ;;  %v1493_v29 = vmul.f32 %v4871_v19, %v1492_v5 }
 0x180   : > { %v3376_v24 = vpop.eup %3375  ;;  %3389 = vtanh.f32 %v1462_v39  ;;  %v1397_v10 = vadd.f32 %v1389_v61, %v1351_v4  ;;  %v1431_v28 = vmul.f32 %v3370_v22, %v5029_v18  ;;  %v1502_v9 = vstv %s5038_s8  ;;  %s5188_s8 = sld [smem:[#allocation3 + $0x1f]] }
 0x181   : > { %3391 = vtanh.f32 %v1463_v48  ;;  %v3378_v50 = vpop.eup %3377  ;;  %v1432_v31 = vmul.f32 %v3372_v36, %v5029_v18  ;;  %v5059_v38 = vstv %s5041_s9  ;;  %v1494_v6 = vmul.f32 %v4877_v16, %v1492_v5  ;;  %s5196_s9 = sld [smem:[#allocation9 + $0x1e]] }
 0x182   : > { %3393 = vtanh.f32 %v1464_v53  ;;  %v1433_v33 = vmul.f32 %v3374_v27, %v5029_v18  ;;  %v1434_v17 = vmul.f32 %v3376_v24, %v5029_v18  ;;  %v1436_v30 = vadd.f32 %v1428_v13, %v1390_v14 }
 0x183   : > { %v1495_v1 = vmul.f32 %v4882_v2, %v1492_v5  ;;  %v1437_v58 = vadd.f32 %v1429_v25, %v1391_v52  ;;  %v1438_v44 = vadd.f32 %v1430_v45, %v1392_v15  ;;  %v1496_v34 = vmul.f32 %v4835_v46, %v1492_v5 }
 0x184   : > { %v3380_v26 = vpop.eup %3379  ;;  %v1503_v0 = vadd.f32 %v1502_v9, %v1493_v29  ;;  %v1435_v12 = vmul.f32 %v3378_v50, %v5029_v18  ;;  %v1439_v49 = vadd.f32 %v1431_v28, %v1393_v42  ;;  %v1497_v40 = vmul.f32 %v4841_v37, %v1492_v5 }
 0x185   : > { %v3382_v11 = vpop.eup %3381  ;;  %v1498_v41 = vmul.f32 %v4846_v47, %v1492_v5  ;;  %v1440_v4 = vadd.f32 %v1432_v31, %v1394_v23  ;;  %v1499_v32 = vmul.f32 %v4855_v51, %v1492_v5  ;;  %v1500_v21 = vmul.f32 %v4864_v8, %v1492_v5 }
 0x186   : > { %v3384_v20 = vpop.eup %3383  ;;  %v1504_v62 = vadd.f32 %v1502_v9, %v1494_v6  ;;  %v1441_v43 = vadd.f32 %v1433_v33, %v1395_v59  ;;  %v1442_v35 = vadd.f32 %v1434_v17, %v1396_v3  ;;  %v1474_v55 = vmul.f32 %v3380_v26, %v5059_v38 }
 0x187   : > { %v1505_v56 = vadd.f32 %v1502_v9, %v1495_v1  ;;  %v1475_v60 = vmul.f32 %v3382_v11, %v5059_v38  ;;  %v1506_v7 = vadd.f32 %v1502_v9, %v1496_v34  ;;  %3395 = vtanh.f32 %v1503_v0 }
 0x188   : > { %v3386_v18 = vpop.eup %3385  ;;  %v1538_v63 = vstv %s5053_s10  ;;  %v1443_v57 = vadd.f32 %v1435_v12, %v1397_v10  ;;  %v1476_v14 = vmul.f32 %v3384_v20, %v5059_v38  ;;  %v1507_v52 = vadd.f32 %v1502_v9, %v1497_v40  ;;  %s5202_s10 = sld [smem:[#allocation7 + $0x1f]] }
 0x189   : > { %v3388_v54 = vpop.eup %3387  ;;  %v1508_v39 = vadd.f32 %v1502_v9, %v1498_v41  ;;  %v1509_v61 = vadd.f32 %v1502_v9, %v1499_v32  ;;  %v1510_v15 = vadd.f32 %v1502_v9, %v1500_v21  ;;  %3397 = vtanh.f32 %v1504_v62 }
 0x18a   : > { %v3390_v22 = vpop.eup %3389  ;;  %v5082_v48 = vstv %s5061_s12  ;;  %v5084_v36 = vadd.f32 %v1474_v55, %v1436_v30  ;;  %3399 = vtanh.f32 %v1505_v56  ;;  %v1539_v42 = vmul.f32 %v4871_v19, %v1538_v63  ;;  %s5230_s12 = sld [smem:[#allocation3 + $0x20]] }
 0x18b   : > { %v3392_v5 = vpop.eup %3391  ;;  %v1548_v23 = vstv %s5067_s16  ;;  %v1477_v27 = vmul.f32 %v3386_v18, %v5059_v38  ;;  %v5089_v59 = vadd.f32 %v1475_v60, %v1437_v58  ;;  %3401 = vtanh.f32 %v1506_v7  ;;  %s5259_s16 = sld [smem:[#allocation9 + $0x1f]] }
 0x18c   : > { %v3394_v53 = vpop.eup %3393  ;;  %v1540_v3 = vmul.f32 %v4877_v16, %v1538_v63  ;;  %v1478_v13 = vmul.f32 %v3388_v54, %v5059_v38  ;;  %v5093_v24 = vadd.f32 %v1476_v14, %v1438_v44  ;;  %3403 = vtanh.f32 %v1507_v52 }
 0x18d   : > { %v1541_v25 = vmul.f32 %v4882_v2, %v1538_v63  ;;  %v1479_v45 = vmul.f32 %v3390_v22, %v5059_v38  ;;  %v1480_v29 = vmul.f32 %v3392_v5, %v5059_v38  ;;  %3405 = vtanh.f32 %v1508_v39 }
 0x18e   : > { %v1542_v10 = vmul.f32 %v4835_v46, %v1538_v63  ;;  %v1481_v28 = vmul.f32 %v3394_v53, %v5059_v38  ;;  %3407 = vtanh.f32 %v1509_v61  ;;  %v1543_v9 = vmul.f32 %v4841_v37, %v1538_v63 }
 0x18f   : > { %v1549_v50 = vadd.f32 %v1548_v23, %v1539_v42  ;;  %v1544_v31 = vmul.f32 %v4846_v47, %v1538_v63  ;;  %v1545_v6 = vmul.f32 %v4855_v51, %v1538_v63  ;;  %v1550_v33 = vadd.f32 %v1548_v23, %v1540_v3 }
 0x190   : > { %v1584_v17 = vstv %s5078_s11  ;;  %v5108_v30 = vadd.f32 %v1477_v27, %v1439_v49  ;;  %v5110_v1 = vadd.f32 %v1478_v13, %v1440_v4  ;;  %v1546_v26 = vmul.f32 %v4864_v8, %v1538_v63  ;;  %s5262_s11 = sld [smem:[#allocation7 + $0x20]] }
 0x191   : > { %v1551_v58 = vadd.f32 %v1548_v23, %v1541_v25  ;;  %v3396_v44 = vpop.eup %3395  ;;  %v5113_v34 = vadd.f32 %v1479_v45, %v1441_v43  ;;  %v5115_v38 = vadd.f32 %v1480_v29, %v1442_v35  ;;  %3409 = vtanh.f32 %v1510_v15 }
 0x192   : > { %v1552_v0 = vadd.f32 %v1548_v23, %v1542_v10  ;;  %v5119_v11 = vadd.f32 %v1481_v28, %v1443_v57  ;;  %v1553_v12 = vadd.f32 %v1548_v23, %v1543_v9  ;;  %3411 = vtanh.f32 %v1549_v50 }
 0x193   : > { %v1585_v49 = vmul.f32 %v4871_v19, %v1584_v17  ;;  %v3398_v40 = vpop.eup %3397  ;;  %v1554_v41 = vadd.f32 %v1548_v23, %v1544_v31  ;;  %v1555_v20 = vadd.f32 %v1548_v23, %v1545_v6  ;;  %3413 = vtanh.f32 %v1550_v33 }
 0x194   : > { %v1586_v4 = vmul.f32 %v4877_v16, %v1584_v17  ;;  %v3400_v32 = vpop.eup %3399  ;;  %v1520_v21 = vmul.f32 %v3396_v44, %v5082_v48  ;;  %v1556_v62 = vadd.f32 %v1548_v23, %v1546_v26  ;;  %3415 = vtanh.f32 %v1551_v58 }
 0x195   : > { %v1587_v43 = vmul.f32 %v4882_v2, %v1584_v17  ;;  %v3402_v35 = vpop.eup %3401  ;;  %3417 = vtanh.f32 %v1552_v0  ;;  %v5126_v55 = vstv %s5098_s14  ;;  %v1588_v56 = vmul.f32 %v4835_v46, %v1584_v17  ;;  %s5279_s14 = sld [smem:[#allocation3 + $0x21]] }
 0x196   : > { %v1594_v18 = vstv %s5101_s15  ;;  %v3404_v60 = vpop.eup %3403  ;;  %v1521_v7 = vmul.f32 %v3398_v40, %v5082_v48  ;;  %3419 = vtanh.f32 %v1553_v12  ;;  %v1589_v63 = vmul.f32 %v4841_v37, %v1584_v17  ;;  %s5296_s15 = sld [smem:[#allocation7 + $0x21]] }
 0x197   : > { %v1595_v54 = vadd.f32 %v1594_v18, %v1585_v49  ;;  %v3406_v57 = vpop.eup %3405  ;;  %v1522_v14 = vmul.f32 %v3400_v32, %v5082_v48  ;;  %3421 = vtanh.f32 %v1554_v41  ;;  %v1590_v52 = vmul.f32 %v4846_v47, %v1584_v17 }
 0x198   : > { %v1596_v39 = vadd.f32 %v1594_v18, %v1586_v4  ;;  %v3408_v22 = vpop.eup %3407  ;;  %v5137_v61 = vadd.f32 %v1520_v21, %v5084_v36  ;;  %3423 = vtanh.f32 %v1555_v20  ;;  %v1591_v15 = vmul.f32 %v4855_v51, %v1584_v17 }
 0x199   : > { %v1597_v5 = vadd.f32 %v1594_v18, %v1587_v43  ;;  %v1523_v42 = vmul.f32 %v3402_v35, %v5082_v48  ;;  %3425 = vtanh.f32 %v1556_v62  ;;  %v1598_v23 = vadd.f32 %v1594_v18, %v1588_v56 }
 0x19a   : > { %v1630_v53 = vstv %s5117_s18  ;;  %v1524_v27 = vmul.f32 %v3404_v60, %v5082_v48  ;;  %v1592_v3 = vmul.f32 %v4864_v8, %v1584_v17  ;;  %v1599_v13 = vadd.f32 %v1594_v18, %v1589_v63  ;;  %s5303_s18 = sld [smem:[#allocation9 + $0x20]] }
 0x19b   : > { %3427 = vtanh.f32 %v1595_v54  ;;  %v3410_v25 = vpop.eup %3409  ;;  %v1525_v36 = vmul.f32 %v3406_v57, %v5082_v48  ;;  %v1529_v45 = vadd.f32 %v1521_v7, %v5089_v59  ;;  %v1600_v29 = vadd.f32 %v1594_v18, %v1590_v52 }
 0x19c   : > { %3429 = vtanh.f32 %v1596_v39  ;;  %v3412_v10 = vpop.eup %3411  ;;  %v1526_v28 = vmul.f32 %v3408_v22, %v5082_v48  ;;  %v1601_v9 = vadd.f32 %v1594_v18, %v1591_v15  ;;  %v1631_v50 = vmul.f32 %v4871_v19, %v1630_v53 }
 0x19d   : > { %3431 = vtanh.f32 %v1597_v5  ;;  %v3414_v31 = vpop.eup %3413  ;;  %v1530_v6 = vadd.f32 %v1522_v14, %v5093_v24  ;;  %v1531_v33 = vadd.f32 %v1523_v42, %v5108_v30  ;;  %v1632_v17 = vmul.f32 %v4877_v16, %v1630_v53 }
 0x19e   : > { %3433 = vtanh.f32 %v1598_v23  ;;  %v3416_v26 = vpop.eup %3415  ;;  %v1532_v59 = vadd.f32 %v1524_v27, %v5110_v1  ;;  %v1602_v58 = vadd.f32 %v1594_v18, %v1592_v3  ;;  %v1633_v44 = vmul.f32 %v4882_v2, %v1630_v53 }
 0x19f   : > { %3435 = vtanh.f32 %v1599_v13  ;;  %v3418_v0 = vpop.eup %3417  ;;  %v1527_v12 = vmul.f32 %v3410_v25, %v5082_v48  ;;  %v1533_v49 = vadd.f32 %v1525_v36, %v5113_v34  ;;  %v1640_v24 = vstv %s5134_s25  ;;  %s5320_s25 = sld [smem:[#allocation3 + $0x22]] }
 0x1a0   : > { %3437 = vtanh.f32 %v1600_v29  ;;  %v3420_v30 = vpop.eup %3419  ;;  %v1534_v40 = vadd.f32 %v1526_v28, %v5115_v38  ;;  %v1634_v1 = vmul.f32 %v4835_v46, %v1630_v53  ;;  %v1641_v41 = vadd.f32 %v1640_v24, %v1631_v50 }
 0x1a1   : > { %3439 = vtanh.f32 %v1601_v9  ;;  %v3422_v20 = vpop.eup %3421  ;;  %v1566_v4 = vmul.f32 %v3412_v10, %v5126_v55  ;;  %v5164_v32 = vstv %s5141_s24  ;;  %v1635_v48 = vmul.f32 %v4841_v37, %v1630_v53  ;;  %s5335_s24 = sld [smem:[#allocation7 + $0x22]] }
 0x1a2   : > { %v1642_v21 = vadd.f32 %v1640_v24, %v1632_v17  ;;  %v3424_v34 = vpop.eup %3423  ;;  %v1567_v62 = vmul.f32 %v3414_v31, %v5126_v55  ;;  %3441 = vtanh.f32 %v1602_v58  ;;  %v1636_v43 = vmul.f32 %v4846_v47, %v1630_v53 }
 0x1a3   : > { %v1643_v35 = vadd.f32 %v1640_v24, %v1633_v44  ;;  %v3426_v38 = vpop.eup %3425  ;;  %v1535_v56 = vadd.f32 %v1527_v12, %v5119_v11  ;;  %v1568_v46 = vmul.f32 %v3416_v26, %v5126_v55  ;;  %v1569_v18 = vmul.f32 %v3418_v0, %v5126_v55 }
 0x1a4   : > { %v1637_v60 = vmul.f32 %v4855_v51, %v1630_v53  ;;  %v1570_v7 = vmul.f32 %v3420_v30, %v5126_v55  ;;  %v1638_v63 = vmul.f32 %v4864_v8, %v1630_v53  ;;  %v1644_v47 = vadd.f32 %v1640_v24, %v1634_v1 }
 0x1a5   : > { %v3428_v37 = vpop.eup %3427  ;;  %3443 = vtanh.f32 %v1641_v41  ;;  %v1571_v11 = vmul.f32 %v3422_v20, %v5126_v55  ;;  %v1572_v57 = vmul.f32 %v3424_v34, %v5126_v55  ;;  %v1645_v14 = vadd.f32 %v1640_v24, %v1635_v48  ;;  %v5212_v20 = vld [vmem:[%s4167_s13 + $0x20] sm:$0xff] }
 0x1a6   : > { %v3430_v54 = vpop.eup %3429  ;;  %3445 = vtanh.f32 %v1642_v21  ;;  %v1574_v52 = vadd.f32 %v1566_v4, %v5137_v61  ;;  %v1575_v39 = vadd.f32 %v1567_v62, %v1529_v45  ;;  %v1646_v22 = vadd.f32 %v1640_v24, %v1636_v43  ;;  %v5216_v4 = vld [vmem:[%s4167_s13 + $0x28] sm:$0xff]  ;;  %v5220_v62 = vld [vmem:[%s4167_s13 + $0x30] sm:$0xff] }
 0x1a7   : > { %v3432_v51 = vpop.eup %3431  ;;  %3447 = vtanh.f32 %v1643_v35  ;;  %v1573_v5 = vmul.f32 %v3426_v38, %v5126_v55  ;;  %v1576_v8 = vadd.f32 %v1568_v46, %v1530_v6  ;;  %v1647_v42 = vadd.f32 %v1640_v24, %v1637_v60  ;;  %v5224_v35 = vld [vmem:[%s4167_s13 + $0x38] sm:$0xff] }
 0x1a8   : > { %v3434_v15 = vpop.eup %3433  ;;  %v1676_v23 = vstv %s5158_s27  ;;  %v1577_v27 = vadd.f32 %v1569_v18, %v1531_v33  ;;  %v1578_v3 = vadd.f32 %v1570_v7, %v1532_v59  ;;  %v1648_v13 = vadd.f32 %v1640_v24, %v1638_v63  ;;  %v5205_v24 = vld [vmem:[%s4167_s13 + $0x18] sm:$0xff]  ;;  %s5338_s27 = sld [smem:[#allocation9 + $0x21]] }
 0x1a9   : > { %v3436_v53 = vpop.eup %3435  ;;  %3449 = vtanh.f32 %v1644_v47  ;;  %v1579_v36 = vadd.f32 %v1571_v11, %v1533_v49  ;;  %v1580_v29 = vadd.f32 %v1572_v57, %v1534_v40  ;;  %v1612_v61 = vmul.f32 %v3428_v37, %v5164_v32 }
 0x1aa   : > { %v3438_v25 = vpop.eup %3437  ;;  %3451 = vtanh.f32 %v1645_v14  ;;  %v1613_v10 = vmul.f32 %v3430_v54, %v5164_v32  ;;  %v1614_v55 = vmul.f32 %v3432_v51, %v5164_v32  ;;  %v1677_v28 = vmul.f32 %v4871_v19, %v1676_v23 }
 0x1ab   : > { %v3440_v45 = vpop.eup %3439  ;;  %3453 = vtanh.f32 %v1646_v22  ;;  %v1581_v9 = vadd.f32 %v1573_v5, %v1535_v56  ;;  %v1615_v50 = vmul.f32 %v3434_v15, %v5164_v32  ;;  %v1686_v31 = vstv %s5173_s7  ;;  %s5350_s7 = sld [smem:[#allocation3 + $0x23]] }
 0x1ac   : > { %3455 = vtanh.f32 %v1647_v42  ;;  %v3442_v6 = vpop.eup %3441  ;;  %v1616_v33 = vmul.f32 %v3436_v53, %v5164_v32  ;;  %v5194_v17 = vstv %s5176_s6  ;;  %v1678_v26 = vmul.f32 %v4877_v16, %v1676_v23  ;;  %v5239_v42 = vld [vmem:[%s4167_s13] sm:$0xff]  ;;  %s5358_s6 = sld [smem:[#allocation9 + $0x22]] }
 0x1ad   : > { %3457 = vtanh.f32 %v1648_v13  ;;  %v1617_v19 = vmul.f32 %v3438_v25, %v5164_v32  ;;  %v1618_v59 = vmul.f32 %v3440_v45, %v5164_v32  ;;  %v1620_v58 = vadd.f32 %v1612_v61, %v1574_v52  ;;  %v5247_v25 = vld [vmem:[%s4167_s13 + $0x8] sm:$0xff]  ;;  %v5254_v45 = vld [vmem:[%s4167_s13 + $0x10] sm:$0xff] }
 0x1ae   : > { %v1679_v44 = vmul.f32 %v4882_v2, %v1676_v23  ;;  %v1621_v12 = vadd.f32 %v1613_v10, %v1575_v39  ;;  %v1622_v49 = vadd.f32 %v1614_v55, %v1576_v8  ;;  %v1680_v30 = vmul.f32 %v5205_v24, %v1676_v23 }
 0x1af   : > { %v3444_v0 = vpop.eup %3443  ;;  %v1687_v16 = vadd.f32 %v1686_v31, %v1677_v28  ;;  %v1619_v1 = vmul.f32 %v3442_v6, %v5164_v32  ;;  %v5209_v41 = vadd.f32 %v1615_v50, %v1577_v27  ;;  %v1681_v2 = vmul.f32 %v5212_v20, %v1676_v23 }
 0x1b0   : > { %v3446_v40 = vpop.eup %3445  ;;  %v1682_v48 = vmul.f32 %v5216_v4, %v1676_v23  ;;  %v1624_v34 = vadd.f32 %v1616_v33, %v1578_v3  ;;  %v1683_v43 = vmul.f32 %v5220_v62, %v1676_v23  ;;  %v1684_v32 = vmul.f32 %v5224_v35, %v1676_v23 }
 0x1b1   : > { %v3448_v21 = vpop.eup %3447  ;;  %v1688_v38 = vadd.f32 %v1686_v31, %v1678_v26  ;;  %v1625_v56 = vadd.f32 %v1617_v19, %v1579_v36  ;;  %v1626_v46 = vadd.f32 %v1618_v59, %v1580_v29  ;;  %v1658_v18 = vmul.f32 %v3444_v0, %v5194_v17 }
 0x1b2   : > { %v1689_v60 = vadd.f32 %v1686_v31, %v1679_v44  ;;  %v1659_v7 = vmul.f32 %v3446_v40, %v5194_v17  ;;  %v1690_v63 = vadd.f32 %v1686_v31, %v1680_v30  ;;  %3459 = vtanh.f32 %v1687_v16 }
 0x1b3   : > { %v3450_v37 = vpop.eup %3449  ;;  %v1722_v47 = vstv %s5188_s8  ;;  %v1627_v11 = vadd.f32 %v1619_v1, %v1581_v9  ;;  %v1660_v57 = vmul.f32 %v3448_v21, %v5194_v17  ;;  %v1691_v14 = vadd.f32 %v1686_v31, %v1681_v2  ;;  %s5364_s8 = sld [smem:[#allocation7 + $0x23]] }
 0x1b4   : > { %v3452_v54 = vpop.eup %3451  ;;  %v1692_v51 = vadd.f32 %v1686_v31, %v1682_v48  ;;  %v1693_v39 = vadd.f32 %v1686_v31, %v1683_v43  ;;  %v1694_v22 = vadd.f32 %v1686_v31, %v1684_v32  ;;  %3461 = vtanh.f32 %v1688_v38 }
 0x1b5   : > { %v3454_v52 = vpop.eup %3453  ;;  %v5234_v15 = vstv %s5196_s9  ;;  %v5236_v8 = vadd.f32 %v1658_v18, %v1620_v58  ;;  %3463 = vtanh.f32 %v1689_v60  ;;  %v1723_v23 = vmul.f32 %v5239_v42, %v1722_v47  ;;  %s5375_s9 = sld [smem:[#allocation3 + $0x24]] }
 0x1b6   : > { %v3456_v5 = vpop.eup %3455  ;;  %v1732_v53 = vstv %s5202_s10  ;;  %v1661_v3 = vmul.f32 %v3450_v37, %v5194_v17  ;;  %v5244_v13 = vadd.f32 %v1659_v7, %v1621_v12  ;;  %3465 = vtanh.f32 %v1690_v63  ;;  %s5395_s10 = sld [smem:[#allocation9 + $0x23]] }
 0x1b7   : > { %v3458_v27 = vpop.eup %3457  ;;  %v1724_v36 = vmul.f32 %v5247_v25, %v1722_v47  ;;  %v1662_v29 = vmul.f32 %v3452_v54, %v5194_v17  ;;  %v5251_v61 = vadd.f32 %v1660_v57, %v1622_v49  ;;  %3467 = vtanh.f32 %v1691_v14 }
 0x1b8   : > { %v1725_v10 = vmul.f32 %v5254_v45, %v1722_v47  ;;  %v1663_v55 = vmul.f32 %v3454_v52, %v5194_v17  ;;  %v1664_v28 = vmul.f32 %v3456_v5, %v5194_v17  ;;  %3469 = vtanh.f32 %v1692_v51 }
 0x1b9   : > { %v1726_v9 = vmul.f32 %v5205_v24, %v1722_v47  ;;  %v1665_v50 = vmul.f32 %v3458_v27, %v5194_v17  ;;  %3471 = vtanh.f32 %v1693_v39  ;;  %v1727_v31 = vmul.f32 %v5212_v20, %v1722_v47 }
 0x1ba   : > { %v1733_v6 = vadd.f32 %v1732_v53, %v1723_v23  ;;  %v1728_v33 = vmul.f32 %v5216_v4, %v1722_v47  ;;  %v1729_v26 = vmul.f32 %v5220_v62, %v1722_v47  ;;  %v1734_v19 = vadd.f32 %v1732_v53, %v1724_v36 }
 0x1bb   : > { %v1768_v59 = vstv %s5230_s12  ;;  %v5270_v58 = vadd.f32 %v1661_v3, %v5209_v41  ;;  %v5272_v44 = vadd.f32 %v1662_v29, %v1624_v34  ;;  %v1730_v0 = vmul.f32 %v5224_v35, %v1722_v47  ;;  %s5398_s12 = sld [smem:[#allocation7 + $0x24]] }
 0x1bc   : > { %v1735_v12 = vadd.f32 %v1732_v53, %v1725_v10  ;;  %v3460_v49 = vpop.eup %3459  ;;  %v5275_v17 = vadd.f32 %v1663_v55, %v1625_v56  ;;  %v5277_v30 = vadd.f32 %v1664_v28, %v1626_v46  ;;  %3473 = vtanh.f32 %v1694_v22 }
 0x1bd   : > { %v1736_v16 = vadd.f32 %v1732_v53, %v1726_v9  ;;  %v5281_v40 = vadd.f32 %v1665_v50, %v1627_v11  ;;  %v1737_v1 = vadd.f32 %v1732_v53, %v1727_v31  ;;  %3475 = vtanh.f32 %v1733_v6 }
 0x1be   : > { %v1769_v41 = vmul.f32 %v5239_v42, %v1768_v59  ;;  %v3462_v2 = vpop.eup %3461  ;;  %v1738_v48 = vadd.f32 %v1732_v53, %v1728_v33  ;;  %v1739_v21 = vadd.f32 %v1732_v53, %v1729_v26  ;;  %3477 = vtanh.f32 %v1734_v19 }
 0x1bf   : > { %v1770_v34 = vmul.f32 %v5247_v25, %v1768_v59  ;;  %v3464_v43 = vpop.eup %3463  ;;  %v1704_v32 = vmul.f32 %v3460_v49, %v5234_v15  ;;  %v1740_v38 = vadd.f32 %v1732_v53, %v1730_v0  ;;  %3479 = vtanh.f32 %v1735_v12 }
 0x1c0   : > { %v1771_v56 = vmul.f32 %v5254_v45, %v1768_v59  ;;  %v3466_v46 = vpop.eup %3465  ;;  %3481 = vtanh.f32 %v1736_v16  ;;  %v5288_v18 = vstv %s5259_s16  ;;  %v1772_v60 = vmul.f32 %v5205_v24, %v1768_v59  ;;  %s5414_s16 = sld [smem:[#allocation3 + $0x25]] }
 0x1c1   : > { %v1778_v37 = vstv %s5262_s11  ;;  %v3468_v7 = vpop.eup %3467  ;;  %v1705_v63 = vmul.f32 %v3462_v2, %v5234_v15  ;;  %3483 = vtanh.f32 %v1737_v1  ;;  %v1773_v47 = vmul.f32 %v5212_v20, %v1768_v59  ;;  %s5431_s11 = sld [smem:[#allocation7 + $0x25]] }
 0x1c2   : > { %v1779_v54 = vadd.f32 %v1778_v37, %v1769_v41  ;;  %v3470_v11 = vpop.eup %3469  ;;  %v1706_v57 = vmul.f32 %v3464_v43, %v5234_v15  ;;  %3485 = vtanh.f32 %v1738_v48  ;;  %v1774_v14 = vmul.f32 %v5216_v4, %v1768_v59 }
 0x1c3   : > { %v1780_v51 = vadd.f32 %v1778_v37, %v1770_v34  ;;  %v3472_v52 = vpop.eup %3471  ;;  %v5299_v39 = vadd.f32 %v1704_v32, %v5236_v8  ;;  %3487 = vtanh.f32 %v1739_v21  ;;  %v1775_v22 = vmul.f32 %v5220_v62, %v1768_v59 }
 0x1c4   : > { %v1781_v5 = vadd.f32 %v1778_v37, %v1771_v56  ;;  %v1707_v23 = vmul.f32 %v3466_v46, %v5234_v15  ;;  %3489 = vtanh.f32 %v1740_v38  ;;  %v1782_v53 = vadd.f32 %v1778_v37, %v1772_v60 }
 0x1c5   : > { %v1814_v27 = vstv %s5279_s14  ;;  %v1708_v3 = vmul.f32 %v3468_v7, %v5234_v15  ;;  %v1776_v36 = vmul.f32 %v5224_v35, %v1768_v59  ;;  %v1783_v29 = vadd.f32 %v1778_v37, %v1773_v47  ;;  %s5438_s14 = sld [smem:[#allocation9 + $0x24]] }
 0x1c6   : > { %3491 = vtanh.f32 %v1779_v54  ;;  %v3474_v10 = vpop.eup %3473  ;;  %v1709_v8 = vmul.f32 %v3470_v11, %v5234_v15  ;;  %v1713_v55 = vadd.f32 %v1705_v63, %v5244_v13  ;;  %v1784_v28 = vadd.f32 %v1778_v37, %v1774_v14 }
 0x1c7   : > { %3493 = vtanh.f32 %v1780_v51  ;;  %v3476_v9 = vpop.eup %3475  ;;  %v1710_v50 = vmul.f32 %v3472_v52, %v5234_v15  ;;  %v1785_v31 = vadd.f32 %v1778_v37, %v1775_v22  ;;  %v1815_v6 = vmul.f32 %v5239_v42, %v1814_v27 }
 0x1c8   : > { %3495 = vtanh.f32 %v1781_v5  ;;  %v3478_v33 = vpop.eup %3477  ;;  %v1714_v26 = vadd.f32 %v1706_v57, %v5251_v61  ;;  %v1715_v19 = vadd.f32 %v1707_v23, %v5270_v58  ;;  %v1816_v59 = vmul.f32 %v5247_v25, %v1814_v27 }
 0x1c9   : > { %3497 = vtanh.f32 %v1782_v53  ;;  %v3480_v0 = vpop.eup %3479  ;;  %v1716_v13 = vadd.f32 %v1708_v3, %v5272_v44  ;;  %v1786_v12 = vadd.f32 %v1778_v37, %v1776_v36  ;;  %v1817_v49 = vmul.f32 %v5254_v45, %v1814_v27 }
 0x1ca   : > { %3499 = vtanh.f32 %v1783_v29  ;;  %v3482_v16 = vpop.eup %3481  ;;  %v1711_v1 = vmul.f32 %v3474_v10, %v5234_v15  ;;  %v1717_v41 = vadd.f32 %v1709_v8, %v5275_v17  ;;  %v1824_v61 = vstv %s5296_s15  ;;  %s5455_s15 = sld [smem:[#allocation3 + $0x26]] }
 0x1cb   : > { %3501 = vtanh.f32 %v1784_v28  ;;  %v3484_v58 = vpop.eup %3483  ;;  %v1718_v2 = vadd.f32 %v1710_v50, %v5277_v30  ;;  %v1818_v44 = vmul.f32 %v5205_v24, %v1814_v27  ;;  %v1825_v48 = vadd.f32 %v1824_v61, %v1815_v6 }
 0x1cc   : > { %3503 = vtanh.f32 %v1785_v31  ;;  %v3486_v21 = vpop.eup %3485  ;;  %v1750_v34 = vmul.f32 %v3476_v9, %v5288_v18  ;;  %v5326_v43 = vstv %s5303_s18  ;;  %v1819_v15 = vmul.f32 %v5212_v20, %v1814_v27  ;;  %s5470_s18 = sld [smem:[#allocation7 + $0x26]] }
 0x1cd   : > { %v1826_v32 = vadd.f32 %v1824_v61, %v1816_v59  ;;  %v3488_v17 = vpop.eup %3487  ;;  %v1751_v38 = vmul.f32 %v3478_v33, %v5288_v18  ;;  %3505 = vtanh.f32 %v1786_v12  ;;  %v1820_v56 = vmul.f32 %v5216_v4, %v1814_v27 }
 0x1ce   : > { %v1827_v46 = vadd.f32 %v1824_v61, %v1817_v49  ;;  %v3490_v30 = vpop.eup %3489  ;;  %v1719_v60 = vadd.f32 %v1711_v1, %v5281_v40  ;;  %v1752_v37 = vmul.f32 %v3480_v0, %v5288_v18  ;;  %v1753_v7 = vmul.f32 %v3482_v16, %v5288_v18 }
 0x1cf   : > { %v1821_v63 = vmul.f32 %v5220_v62, %v1814_v27  ;;  %v1754_v54 = vmul.f32 %v3484_v58, %v5288_v18  ;;  %v1822_v11 = vmul.f32 %v5224_v35, %v1814_v27  ;;  %v1828_v57 = vadd.f32 %v1824_v61, %v1818_v44 }
 0x1d0   : > { %v3492_v47 = vpop.eup %3491  ;;  %3507 = vtanh.f32 %v1825_v48  ;;  %v1755_v40 = vmul.f32 %v3486_v21, %v5288_v18  ;;  %v1756_v51 = vmul.f32 %v3488_v17, %v5288_v18  ;;  %v1829_v52 = vadd.f32 %v1824_v61, %v1819_v15 }
 0x1d1   : > { %v3494_v14 = vpop.eup %3493  ;;  %3509 = vtanh.f32 %v1826_v32  ;;  %v1758_v5 = vadd.f32 %v1750_v34, %v5299_v39  ;;  %v1759_v23 = vadd.f32 %v1751_v38, %v1713_v55  ;;  %v1830_v53 = vadd.f32 %v1824_v61, %v1820_v56 }
 0x1d2   : > { %v3496_v22 = vpop.eup %3495  ;;  %3511 = vtanh.f32 %v1827_v46  ;;  %v1757_v36 = vmul.f32 %v3490_v30, %v5288_v18  ;;  %v1760_v27 = vadd.f32 %v1752_v37, %v1714_v26  ;;  %v1831_v29 = vadd.f32 %v1824_v61, %v1821_v63 }
 0x1d3   : > { %v3498_v3 = vpop.eup %3497  ;;  %v1860_v10 = vstv %s5320_s25  ;;  %v1761_v28 = vadd.f32 %v1753_v7, %v1715_v19  ;;  %v1762_v9 = vadd.f32 %v1754_v54, %v1716_v13  ;;  %v1832_v50 = vadd.f32 %v1824_v61, %v1822_v11  ;;  %s5473_s25 = sld [smem:[#allocation9 + $0x25]] }
 0x1d4   : > { %v3500_v8 = vpop.eup %3499  ;;  %3513 = vtanh.f32 %v1828_v57  ;;  %v1763_v6 = vadd.f32 %v1755_v40, %v1717_v41  ;;  %v1764_v33 = vadd.f32 %v1756_v51, %v1718_v2  ;;  %v1796_v39 = vmul.f32 %v3492_v47, %v5326_v43 }
 0x1d5   : > { %v3502_v31 = vpop.eup %3501  ;;  %3515 = vtanh.f32 %v1829_v52  ;;  %v1797_v59 = vmul.f32 %v3494_v14, %v5326_v43  ;;  %v1798_v18 = vmul.f32 %v3496_v22, %v5326_v43  ;;  %v1861_v26 = vmul.f32 %v5239_v42, %v1860_v10 }
 0x1d6   : > { %v3504_v55 = vpop.eup %3503  ;;  %3517 = vtanh.f32 %v1830_v53  ;;  %v1765_v19 = vadd.f32 %v1757_v36, %v1719_v60  ;;  %v1799_v0 = vmul.f32 %v3498_v3, %v5326_v43  ;;  %v1870_v13 = vstv %s5335_s24  ;;  %s5485_s24 = sld [smem:[#allocation3 + $0x27]] }
 0x1d7   : > { %3519 = vtanh.f32 %v1831_v29  ;;  %v3506_v12 = vpop.eup %3505  ;;  %v1800_v49 = vmul.f32 %v3500_v8, %v5326_v43  ;;  %v5356_v16 = vstv %s5338_s27  ;;  %v1862_v1 = vmul.f32 %v5247_v25, %v1860_v10  ;;  %s5493_s27 = sld [smem:[#allocation9 + $0x26]] }
 0x1d8   : > { %3521 = vtanh.f32 %v1832_v50  ;;  %v1801_v41 = vmul.f32 %v3502_v31, %v5326_v43  ;;  %v1802_v61 = vmul.f32 %v3504_v55, %v5326_v43  ;;  %v1804_v58 = vadd.f32 %v1796_v39, %v1758_v5 }
 0x1d9   : > { %v1863_v2 = vmul.f32 %v5254_v45, %v1860_v10  ;;  %v1805_v48 = vadd.f32 %v1797_v59, %v1759_v23  ;;  %v1806_v21 = vadd.f32 %v1798_v18, %v1760_v27  ;;  %v1864_v34 = vmul.f32 %v5205_v24, %v1860_v10 }
 0x1da   : > { %v3508_v44 = vpop.eup %3507  ;;  %v1871_v15 = vadd.f32 %v1870_v13, %v1861_v26  ;;  %v1803_v17 = vmul.f32 %v3506_v12, %v5326_v43  ;;  %v1807_v38 = vadd.f32 %v1799_v0, %v1761_v28  ;;  %v1865_v56 = vmul.f32 %v5212_v20, %v1860_v10 }
 0x1db   : > { %v3510_v32 = vpop.eup %3509  ;;  %v1866_v46 = vmul.f32 %v5216_v4, %v1860_v10  ;;  %v1808_v60 = vadd.f32 %v1800_v49, %v1762_v9  ;;  %v1867_v37 = vmul.f32 %v5220_v62, %v1860_v10  ;;  %v1868_v7 = vmul.f32 %v5224_v35, %v1860_v10 }
 0x1dc   : > { %v3512_v30 = vpop.eup %3511  ;;  %v1872_v63 = vadd.f32 %v1870_v13, %v1862_v1  ;;  %v1809_v47 = vadd.f32 %v1801_v41, %v1763_v6  ;;  %v1810_v54 = vadd.f32 %v1802_v61, %v1764_v33  ;;  %v1842_v11 = vmul.f32 %v3508_v44, %v5356_v16 }
 0x1dd   : > { %v1873_v57 = vadd.f32 %v1870_v13, %v1863_v2  ;;  %v1843_v14 = vmul.f32 %v3510_v32, %v5356_v16  ;;  %v1874_v40 = vadd.f32 %v1870_v13, %v1864_v34  ;;  %3523 = vtanh.f32 %v1871_v15 }
 0x1de   : > { %v3514_v43 = vpop.eup %3513  ;;  %v1906_v51 = vstv %s5350_s7  ;;  %v1811_v22 = vadd.f32 %v1803_v17, %v1765_v19  ;;  %v1844_v5 = vmul.f32 %v3512_v30, %v5356_v16  ;;  %v1875_v23 = vadd.f32 %v1870_v13, %v1865_v56  ;;  %s5499_s7 = sld [smem:[#allocation7 + $0x27]] }
 0x1df   : > { %v3516_v52 = vpop.eup %3515  ;;  %v1876_v53 = vadd.f32 %v1870_v13, %v1866_v46  ;;  %v1877_v36 = vadd.f32 %v1870_v13, %v1867_v37  ;;  %v1878_v27 = vadd.f32 %v1870_v13, %v1868_v7  ;;  %3525 = vtanh.f32 %v1872_v63 }
 0x1e0   : > { %v3518_v3 = vpop.eup %3517  ;;  %v5379_v29 = vstv %s5358_s6  ;;  %v5381_v8 = vadd.f32 %v1842_v11, %v1804_v58  ;;  %3527 = vtanh.f32 %v1873_v57  ;;  %v1907_v28 = vmul.f32 %v5239_v42, %v1906_v51  ;;  %s5510_s6 = sld [smem:[#allocation3 + $0x28]] }
 0x1e1   : > { %v3520_v10 = vpop.eup %3519  ;;  %v1916_v9 = vstv %s5364_s8  ;;  %v1845_v31 = vmul.f32 %v3514_v43, %v5356_v16  ;;  %v5386_v6 = vadd.f32 %v1843_v14, %v1805_v48  ;;  %3529 = vtanh.f32 %v1874_v40  ;;  %s5530_s8 = sld [smem:[#allocation9 + $0x27]] }
 0x1e2   : > { %v3522_v50 = vpop.eup %3521  ;;  %v1908_v33 = vmul.f32 %v5247_v25, %v1906_v51  ;;  %v1846_v39 = vmul.f32 %v3516_v52, %v5356_v16  ;;  %v5390_v55 = vadd.f32 %v1844_v5, %v1806_v21  ;;  %3531 = vtanh.f32 %v1875_v23 }
 0x1e3   : > { %v1909_v59 = vmul.f32 %v5254_v45, %v1906_v51  ;;  %v1847_v18 = vmul.f32 %v3518_v3, %v5356_v16  ;;  %v1848_v26 = vmul.f32 %v3520_v10, %v5356_v16  ;;  %3533 = vtanh.f32 %v1876_v53 }
 0x1e4   : > { %v1910_v19 = vmul.f32 %v5205_v24, %v1906_v51  ;;  %v1849_v0 = vmul.f32 %v3522_v50, %v5356_v16  ;;  %3535 = vtanh.f32 %v1877_v36  ;;  %v1911_v13 = vmul.f32 %v5212_v20, %v1906_v51 }
 0x1e5   : > { %v1917_v12 = vadd.f32 %v1916_v9, %v1907_v28  ;;  %v1912_v49 = vmul.f32 %v5216_v4, %v1906_v51  ;;  %v1913_v1 = vmul.f32 %v5220_v62, %v1906_v51  ;;  %v1918_v41 = vadd.f32 %v1916_v9, %v1908_v33 }
 0x1e6   : > { %v1952_v61 = vstv %s5375_s9  ;;  %v5405_v58 = vadd.f32 %v1845_v31, %v1807_v38  ;;  %v5407_v2 = vadd.f32 %v1846_v39, %v1808_v60  ;;  %v1914_v44 = vmul.f32 %v5224_v35, %v1906_v51  ;;  %s5533_s9 = sld [smem:[#allocation7 + $0x28]] }
 0x1e7   : > { %v1919_v48 = vadd.f32 %v1916_v9, %v1909_v59  ;;  %v3524_v21 = vpop.eup %3523  ;;  %v5410_v34 = vadd.f32 %v1847_v18, %v1809_v47  ;;  %v5412_v16 = vadd.f32 %v1848_v26, %v1810_v54  ;;  %3537 = vtanh.f32 %v1878_v27 }
 0x1e8   : > { %v1920_v15 = vadd.f32 %v1916_v9, %v1910_v19  ;;  %v5416_v32 = vadd.f32 %v1849_v0, %v1811_v22  ;;  %v1921_v17 = vadd.f32 %v1916_v9, %v1911_v13  ;;  %3539 = vtanh.f32 %v1917_v12 }
 0x1e9   : > { %v1953_v38 = vmul.f32 %v5239_v42, %v1952_v61  ;;  %v3526_v56 = vpop.eup %3525  ;;  %v1922_v46 = vadd.f32 %v1916_v9, %v1912_v49  ;;  %v1923_v30 = vadd.f32 %v1916_v9, %v1913_v1  ;;  %3541 = vtanh.f32 %v1918_v41 }
 0x1ea   : > { %v1954_v60 = vmul.f32 %v5247_v25, %v1952_v61  ;;  %v3528_v37 = vpop.eup %3527  ;;  %v1888_v7 = vmul.f32 %v3524_v21, %v5379_v29  ;;  %v1924_v63 = vadd.f32 %v1916_v9, %v1914_v44  ;;  %3543 = vtanh.f32 %v1919_v48 }
 0x1eb   : > { %v1955_v47 = vmul.f32 %v5254_v45, %v1952_v61  ;;  %v3530_v54 = vpop.eup %3529  ;;  %3545 = vtanh.f32 %v1920_v15  ;;  %v5423_v11 = vstv %s5395_s10  ;;  %v1956_v57 = vmul.f32 %v5205_v24, %v1952_v61  ;;  %s5549_s10 = sld [smem:[#allocation3 + $0x29]] }
 0x1ec   : > { %v1962_v43 = vstv %s5398_s12  ;;  %v3532_v14 = vpop.eup %3531  ;;  %v1889_v40 = vmul.f32 %v3526_v56, %v5379_v29  ;;  %3547 = vtanh.f32 %v1921_v17  ;;  %v1957_v51 = vmul.f32 %v5212_v20, %v1952_v61  ;;  %s5575_s12 = sld [smem:[#allocation7 + $0x29]] }
 0x1ed   : > { %v1963_v52 = vadd.f32 %v1962_v43, %v1953_v38  ;;  %v3534_v22 = vpop.eup %3533  ;;  %v1890_v5 = vmul.f32 %v3528_v37, %v5379_v29  ;;  %3549 = vtanh.f32 %v1922_v46  ;;  %v1958_v23 = vmul.f32 %v5216_v4, %v1952_v61 }
 0x1ee   : > { %v1964_v53 = vadd.f32 %v1962_v43, %v1954_v60  ;;  %v3536_v3 = vpop.eup %3535  ;;  %v5434_v36 = vadd.f32 %v1888_v7, %v5381_v8  ;;  %3551 = vtanh.f32 %v1923_v30  ;;  %v1959_v27 = vmul.f32 %v5220_v62, %v1952_v61 }
 0x1ef   : > { %v1965_v10 = vadd.f32 %v1962_v43, %v1955_v47  ;;  %v1891_v28 = vmul.f32 %v3530_v54, %v5379_v29  ;;  %3553 = vtanh.f32 %v1924_v63  ;;  %v1966_v9 = vadd.f32 %v1962_v43, %v1956_v57 }
 0x1f0   : > { %v1998_v50 = vstv %s5414_s16  ;;  %v1892_v31 = vmul.f32 %v3532_v14, %v5379_v29  ;;  %v1960_v33 = vmul.f32 %v5224_v35, %v1952_v61  ;;  %v1967_v39 = vadd.f32 %v1962_v43, %v1957_v51  ;;  %s5585_s16 = sld [smem:[#allocation9 + $0x28]] }
 0x1f1   : > { %3555 = vtanh.f32 %v1963_v52  ;;  %v3538_v59 = vpop.eup %3537  ;;  %v1893_v8 = vmul.f32 %v3534_v22, %v5379_v29  ;;  %v1897_v18 = vadd.f32 %v1889_v40, %v5386_v6  ;;  %v1968_v26 = vadd.f32 %v1962_v43, %v1958_v23 }
 0x1f2   : > { %3557 = vtanh.f32 %v1964_v53  ;;  %v3540_v19 = vpop.eup %3539  ;;  %v1894_v0 = vmul.f32 %v3536_v3, %v5379_v29  ;;  %v1969_v13 = vadd.f32 %v1962_v43, %v1959_v27  ;;  %v1999_v12 = vmul.f32 %v5239_v42, %v1998_v50 }
 0x1f3   : > { %3559 = vtanh.f32 %v1965_v10  ;;  %v3542_v49 = vpop.eup %3541  ;;  %v1898_v1 = vadd.f32 %v1890_v5, %v5390_v55  ;;  %v1899_v41 = vadd.f32 %v1891_v28, %v5405_v58  ;;  %v2000_v61 = vmul.f32 %v5247_v25, %v1998_v50 }
 0x1f4   : > { %3561 = vtanh.f32 %v1966_v9  ;;  %v3544_v44 = vpop.eup %3543  ;;  %v1900_v6 = vadd.f32 %v1892_v31, %v5407_v2  ;;  %v1970_v48 = vadd.f32 %v1962_v43, %v1960_v33  ;;  %v2001_v21 = vmul.f32 %v5254_v45, %v1998_v50 }
 0x1f5   : > { %3563 = vtanh.f32 %v1967_v39  ;;  %v3546_v15 = vpop.eup %3545  ;;  %v1895_v17 = vmul.f32 %v3538_v59, %v5379_v29  ;;  %v1901_v38 = vadd.f32 %v1893_v8, %v5410_v34  ;;  %v2008_v55 = vstv %s5431_s11  ;;  %s5614_s11 = sld [smem:[#allocation3 + $0x2a]] }
 0x1f6   : > { %3565 = vtanh.f32 %v1968_v26  ;;  %v3548_v58 = vpop.eup %3547  ;;  %v1902_v56 = vadd.f32 %v1894_v0, %v5412_v16  ;;  %v2002_v2 = vmul.f32 %v5205_v24, %v1998_v50  ;;  %v2009_v46 = vadd.f32 %v2008_v55, %v1999_v12 }
 0x1f7   : > { %3567 = vtanh.f32 %v1969_v13  ;;  %v3550_v30 = vpop.eup %3549  ;;  %v1934_v60 = vmul.f32 %v3540_v19, %v5423_v11  ;;  %v5461_v37 = vstv %s5438_s14  ;;  %v2003_v29 = vmul.f32 %v5212_v20, %v1998_v50  ;;  %s5632_s14 = sld [smem:[#allocation9 + $0x29]] }
 0x1f8   : > { %v2010_v7 = vadd.f32 %v2008_v55, %v2000_v61  ;;  %v3552_v34 = vpop.eup %3551  ;;  %v1935_v63 = vmul.f32 %v3542_v49, %v5423_v11  ;;  %3569 = vtanh.f32 %v1970_v48  ;;  %v2004_v47 = vmul.f32 %v5216_v4, %v1998_v50 }
 0x1f9   : > { %v2011_v54 = vadd.f32 %v2008_v55, %v2001_v21  ;;  %v3554_v16 = vpop.eup %3553  ;;  %v1903_v57 = vadd.f32 %v1895_v17, %v5416_v32  ;;  %v1936_v43 = vmul.f32 %v3544_v44, %v5423_v11  ;;  %v1937_v14 = vmul.f32 %v3546_v15, %v5423_v11 }
 0x1fa   : > { %v2005_v40 = vmul.f32 %v5220_v62, %v1998_v50  ;;  %v1938_v52 = vmul.f32 %v3548_v58, %v5423_v11  ;;  %v2006_v22 = vmul.f32 %v5224_v35, %v1998_v50  ;;  %v2012_v5 = vadd.f32 %v2008_v55, %v2002_v2 }
 0x1fb   : > { %v3556_v51 = vpop.eup %3555  ;;  %3571 = vtanh.f32 %v2009_v46  ;;  %v1939_v32 = vmul.f32 %v3550_v30, %v5423_v11  ;;  %v1940_v53 = vmul.f32 %v3552_v34, %v5423_v11  ;;  %v2013_v3 = vadd.f32 %v2008_v55, %v2003_v29 }
 0x1fc   : > { %v3558_v23 = vpop.eup %3557  ;;  %3573 = vtanh.f32 %v2010_v7  ;;  %v1942_v10 = vadd.f32 %v1934_v60, %v5434_v36  ;;  %v1943_v28 = vadd.f32 %v1935_v63, %v1897_v18  ;;  %v2014_v9 = vadd.f32 %v2008_v55, %v2004_v47 }
 0x1fd   : > { %v3560_v27 = vpop.eup %3559  ;;  %3575 = vtanh.f32 %v2011_v54  ;;  %v1941_v33 = vmul.f32 %v3554_v16, %v5423_v11  ;;  %v1944_v50 = vadd.f32 %v1936_v43, %v1898_v1  ;;  %v2015_v39 = vadd.f32 %v2008_v55, %v2005_v40 }
 0x1fe   : > { %v3562_v31 = vpop.eup %3561  ;;  %v2044_v59 = vstv %s5455_s15  ;;  %v1945_v26 = vadd.f32 %v1937_v14, %v1899_v41  ;;  %v1946_v19 = vadd.f32 %v1938_v52, %v1900_v6  ;;  %v2016_v0 = vadd.f32 %v2008_v55, %v2006_v22  ;;  %s5644_s15 = sld [smem:[#allocation3 + $0x2b]] }
 0x1ff   : > { %v3564_v8 = vpop.eup %3563  ;;  %3577 = vtanh.f32 %v2012_v5  ;;  %v1947_v12 = vadd.f32 %v1939_v32, %v1901_v38  ;;  %v1948_v49 = vadd.f32 %v1940_v53, %v1902_v56  ;;  %v1980_v36 = vmul.f32 %v3556_v51, %v5461_v37 }
 0x200   : > { %v3566_v13 = vpop.eup %3565  ;;  %3579 = vtanh.f32 %v2013_v3  ;;  %v1981_v61 = vmul.f32 %v3558_v23, %v5461_v37  ;;  %v1982_v11 = vmul.f32 %v3560_v27, %v5461_v37  ;;  %v2045_v1 = vmul.f32 %v5239_v42, %v2044_v59 }
 0x201   : > { %v3568_v18 = vpop.eup %3567  ;;  %3581 = vtanh.f32 %v2014_v9  ;;  %v1949_v41 = vadd.f32 %v1941_v33, %v1903_v57  ;;  %v1983_v44 = vmul.f32 %v3562_v31, %v5461_v37  ;;  %v2054_v6 = vstv %s5470_s18  ;;  %s5652_s18 = sld [smem:[#allocation9 + $0x2a]] }
 0x202   : > { %3583 = vtanh.f32 %v2015_v39  ;;  %v3570_v48 = vpop.eup %3569  ;;  %v1984_v21 = vmul.f32 %v3564_v8, %v5461_v37  ;;  %v5491_v15 = vstv %s5473_s25  ;;  %v2046_v17 = vmul.f32 %v5247_v25, %v2044_v59  ;;  %s5658_s25 = sld [smem:[#allocation7 + $0x2b]] }
 0x203   : > { %3585 = vtanh.f32 %v2016_v0  ;;  %v1985_v38 = vmul.f32 %v3566_v13, %v5461_v37  ;;  %v1986_v55 = vmul.f32 %v3568_v18, %v5461_v37  ;;  %v1988_v58 = vadd.f32 %v1980_v36, %v1942_v10 }
 0x204   : > { %v2047_v56 = vmul.f32 %v5254_v45, %v2044_v59  ;;  %v1989_v46 = vadd.f32 %v1981_v61, %v1943_v28  ;;  %v1990_v30 = vadd.f32 %v1982_v11, %v1944_v50  ;;  %v2048_v60 = vmul.f32 %v5205_v24, %v2044_v59 }
 0x205   : > { %v3572_v2 = vpop.eup %3571  ;;  %v2055_v29 = vadd.f32 %v2054_v6, %v2045_v1  ;;  %v1987_v34 = vmul.f32 %v3570_v48, %v5461_v37  ;;  %v1991_v63 = vadd.f32 %v1983_v44, %v1945_v26  ;;  %v2049_v47 = vmul.f32 %v5212_v20, %v2044_v59 }
 0x206   : > { %v3574_v7 = vpop.eup %3573  ;;  %v2050_v54 = vmul.f32 %v5216_v4, %v2044_v59  ;;  %v1992_v57 = vadd.f32 %v1984_v21, %v1946_v19  ;;  %v2051_v43 = vmul.f32 %v5220_v62, %v2044_v59  ;;  %v2052_v14 = vmul.f32 %v5224_v35, %v2044_v59 }
 0x207   : > { %v3576_v16 = vpop.eup %3575  ;;  %v2056_v40 = vadd.f32 %v2054_v6, %v2046_v17  ;;  %v1993_v51 = vadd.f32 %v1985_v38, %v1947_v12  ;;  %v1994_v52 = vadd.f32 %v1986_v55, %v1948_v49  ;;  %v2026_v22 = vmul.f32 %v3572_v2, %v5491_v15 }
 0x208   : > { %v2057_v5 = vadd.f32 %v2054_v6, %v2047_v56  ;;  %v2027_v23 = vmul.f32 %v3574_v7, %v5491_v15  ;;  %v2058_v32 = vadd.f32 %v2054_v6, %v2048_v60  ;;  %3587 = vtanh.f32 %v2055_v29 }
 0x209   : > { %v3578_v37 = vpop.eup %3577  ;;  %v2090_v53 = vstv %s5485_s24  ;;  %v1995_v27 = vadd.f32 %v1987_v34, %v1949_v41  ;;  %v2028_v10 = vmul.f32 %v3576_v16, %v5491_v15  ;;  %v2059_v28 = vadd.f32 %v2054_v6, %v2049_v47  ;;  %s5669_s24 = sld [smem:[#allocation3 + $0x2c]] }
 0x20a   : > { %v3580_v3 = vpop.eup %3579  ;;  %v2060_v9 = vadd.f32 %v2054_v6, %v2050_v54  ;;  %v2061_v33 = vadd.f32 %v2054_v6, %v2051_v43  ;;  %v2062_v50 = vadd.f32 %v2054_v6, %v2052_v14  ;;  %3589 = vtanh.f32 %v2056_v40 }
 0x20b   : > { %v3582_v31 = vpop.eup %3581  ;;  %v5514_v39 = vstv %s5493_s27  ;;  %v5516_v8 = vadd.f32 %v2026_v22, %v1988_v58  ;;  %3591 = vtanh.f32 %v2057_v5  ;;  %v2091_v26 = vmul.f32 %v5239_v42, %v2090_v53  ;;  %s5689_s27 = sld [smem:[#allocation9 + $0x2b]] }
 0x20c   : > { %v3584_v59 = vpop.eup %3583  ;;  %v2100_v19 = vstv %s5499_s7  ;;  %v2029_v13 = vmul.f32 %v3578_v37, %v5491_v15  ;;  %v5521_v12 = vadd.f32 %v2027_v23, %v1989_v46  ;;  %3593 = vtanh.f32 %v2058_v32  ;;  %v5572_v23 = vld [vmem:[%s4167_s13 + $0x28] sm:$0xff]  ;;  %s5692_s7 = sld [smem:[#allocation7 + $0x2c]] }
 0x20d   : > { %v3586_v0 = vpop.eup %3585  ;;  %v2092_v49 = vmul.f32 %v5247_v25, %v2090_v53  ;;  %v2030_v36 = vmul.f32 %v3580_v3, %v5491_v15  ;;  %v5525_v18 = vadd.f32 %v2028_v10, %v1990_v30  ;;  %3595 = vtanh.f32 %v2059_v28  ;;  %v5581_v10 = vld [vmem:[%s4167_s13 + $0x30] sm:$0xff] }
 0x20e   : > { %v2093_v61 = vmul.f32 %v5254_v45, %v2090_v53  ;;  %v2031_v11 = vmul.f32 %v3582_v31, %v5491_v15  ;;  %v2032_v1 = vmul.f32 %v3584_v59, %v5491_v15  ;;  %3597 = vtanh.f32 %v2060_v9 }
 0x20f   : > { %v2094_v41 = vmul.f32 %v5205_v24, %v2090_v53  ;;  %v2033_v44 = vmul.f32 %v3586_v0, %v5491_v15  ;;  %3599 = vtanh.f32 %v2061_v33  ;;  %v2095_v6 = vmul.f32 %v5212_v20, %v2090_v53 }
 0x210   : > { %v2101_v48 = vadd.f32 %v2100_v19, %v2091_v26  ;;  %v2096_v21 = vmul.f32 %v5216_v4, %v2090_v53  ;;  %v2097_v17 = vmul.f32 %v5220_v62, %v2090_v53  ;;  %v2102_v38 = vadd.f32 %v2100_v19, %v2092_v49  ;;  %v5590_v26 = vld [vmem:[%s4167_s13 + $0x38] sm:$0xff] }
 0x211   : > { %v2136_v55 = vstv %s5510_s6  ;;  %v5540_v58 = vadd.f32 %v2029_v13, %v1991_v63  ;;  %v5542_v56 = vadd.f32 %v2030_v36, %v1992_v57  ;;  %v2098_v24 = vmul.f32 %v5224_v35, %v2090_v53  ;;  %s5708_s6 = sld [smem:[#allocation3 + $0x2d]] }
 0x212   : > { %v2103_v2 = vadd.f32 %v2100_v19, %v2093_v61  ;;  %v3588_v46 = vpop.eup %3587  ;;  %v5545_v30 = vadd.f32 %v2031_v11, %v1993_v51  ;;  %v5547_v15 = vadd.f32 %v2032_v1, %v1994_v52  ;;  %3601 = vtanh.f32 %v2062_v50  ;;  %v5567_v52 = vld [vmem:[%s4167_s13 + $0x20] sm:$0xff] }
 0x213   : > { %v2104_v20 = vadd.f32 %v2100_v19, %v2094_v41  ;;  %v5551_v4 = vadd.f32 %v2033_v44, %v1995_v27  ;;  %v2105_v62 = vadd.f32 %v2100_v19, %v2095_v6  ;;  %3603 = vtanh.f32 %v2101_v48  ;;  %v5597_v41 = vld [vmem:[%s4167_s13] sm:$0xff] }
 0x214   : > { %v2137_v60 = vmul.f32 %v5239_v42, %v2136_v55  ;;  %v3590_v35 = vpop.eup %3589  ;;  %v2106_v29 = vadd.f32 %v2100_v19, %v2096_v21  ;;  %v2107_v7 = vadd.f32 %v2100_v19, %v2097_v17  ;;  %3605 = vtanh.f32 %v2102_v38  ;;  %v5561_v42 = vld [vmem:[%s4167_s13 + $0x18] sm:$0xff] }
 0x215   : > { %v2138_v34 = vmul.f32 %v5247_v25, %v2136_v55  ;;  %v3592_v63 = vpop.eup %3591  ;;  %v2072_v47 = vmul.f32 %v3588_v46, %v5514_v39  ;;  %v2108_v54 = vadd.f32 %v2100_v19, %v2098_v24  ;;  %3607 = vtanh.f32 %v2103_v2  ;;  %v5608_v2 = vld [vmem:[%s4167_s13 + $0x10] sm:$0xff] }
 0x216   : > { %v2139_v16 = vmul.f32 %v5254_v45, %v2136_v55  ;;  %v3594_v57 = vpop.eup %3593  ;;  %3609 = vtanh.f32 %v2104_v20  ;;  %v5558_v43 = vstv %s5530_s8  ;;  %v2140_v14 = vmul.f32 %v5561_v42, %v2136_v55  ;;  %s5725_s8 = sld [smem:[#allocation7 + $0x2d]] }
 0x217   : > { %v2146_v40 = vstv %s5533_s9  ;;  %v3596_v51 = vpop.eup %3595  ;;  %v2073_v25 = vmul.f32 %v3590_v35, %v5514_v39  ;;  %3611 = vtanh.f32 %v2105_v62  ;;  %v2141_v22 = vmul.f32 %v5567_v52, %v2136_v55  ;;  %s5732_s9 = sld [smem:[#allocation9 + $0x2c]] }
 0x218   : > { %v2147_v45 = vadd.f32 %v2146_v40, %v2137_v60  ;;  %v3598_v5 = vpop.eup %3597  ;;  %v2074_v37 = vmul.f32 %v3592_v63, %v5514_v39  ;;  %3613 = vtanh.f32 %v2106_v29  ;;  %v2142_v32 = vmul.f32 %v5572_v23, %v2136_v55 }
 0x219   : > { %v2148_v53 = vadd.f32 %v2146_v40, %v2138_v34  ;;  %v3600_v3 = vpop.eup %3599  ;;  %v5578_v27 = vadd.f32 %v2072_v47, %v5516_v8  ;;  %3615 = vtanh.f32 %v2107_v7  ;;  %v2143_v28 = vmul.f32 %v5581_v10, %v2136_v55 }
 0x21a   : > { %v2149_v9 = vadd.f32 %v2146_v40, %v2139_v16  ;;  %v2075_v31 = vmul.f32 %v3594_v57, %v5514_v39  ;;  %3617 = vtanh.f32 %v2108_v54  ;;  %v2150_v33 = vadd.f32 %v2146_v40, %v2140_v14 }
 0x21b   : > { %v2182_v50 = vstv %s5549_s10  ;;  %v2076_v59 = vmul.f32 %v3596_v51, %v5514_v39  ;;  %v2144_v8 = vmul.f32 %v5590_v26, %v2136_v55  ;;  %v2151_v19 = vadd.f32 %v2146_v40, %v2141_v22  ;;  %s5749_s10 = sld [smem:[#allocation3 + $0x2e]] }
 0x21c   : > { %3619 = vtanh.f32 %v2147_v45  ;;  %v3602_v0 = vpop.eup %3601  ;;  %v2077_v13 = vmul.f32 %v3598_v5, %v5514_v39  ;;  %v2081_v49 = vadd.f32 %v2073_v25, %v5521_v12  ;;  %v2152_v36 = vadd.f32 %v2146_v40, %v2142_v32  ;;  %v5603_v12 = vld [vmem:[%s4167_s13 + $0x8] sm:$0xff]  ;;  %s5629_s13 = sld [smem:[#allocation7 + $0x2a]] }
 0x21d   : > { %3621 = vtanh.f32 %v2148_v53  ;;  %v3604_v61 = vpop.eup %3603  ;;  %v2078_v11 = vmul.f32 %v3600_v3, %v5514_v39  ;;  %v2153_v1 = vadd.f32 %v2146_v40, %v2143_v28  ;;  %v2183_v44 = vmul.f32 %v5597_v41, %v2182_v50 }
 0x21e   : > { %3623 = vtanh.f32 %v2149_v9  ;;  %v3606_v6 = vpop.eup %3605  ;;  %v2082_v48 = vadd.f32 %v2074_v37, %v5525_v18  ;;  %v2083_v21 = vadd.f32 %v2075_v31, %v5540_v58  ;;  %v2184_v17 = vmul.f32 %v5603_v12, %v2182_v50 }
 0x21f   : > { %3625 = vtanh.f32 %v2150_v33  ;;  %v3608_v38 = vpop.eup %3607  ;;  %v2084_v55 = vadd.f32 %v2076_v59, %v5542_v56  ;;  %v2154_v24 = vadd.f32 %v2146_v40, %v2144_v8  ;;  %v2185_v46 = vmul.f32 %v5608_v2, %v2182_v50 }
 0x220   : > { %3627 = vtanh.f32 %v2151_v19  ;;  %v3610_v20 = vpop.eup %3609  ;;  %v2079_v18 = vmul.f32 %v3602_v0, %v5514_v39  ;;  %v2085_v58 = vadd.f32 %v2077_v13, %v5545_v30  ;;  %v2192_v62 = vstv %s5575_s12  ;;  %s5763_s12 = sld [smem:[#allocation7 + $0x2e]] }
 0x221   : > { %3629 = vtanh.f32 %v2152_v36  ;;  %v3612_v60 = vpop.eup %3611  ;;  %v2086_v35 = vadd.f32 %v2078_v11, %v5547_v15  ;;  %v2186_v56 = vmul.f32 %v5561_v42, %v2182_v50  ;;  %v2193_v29 = vadd.f32 %v2192_v62, %v2183_v44 }
 0x222   : > { %3631 = vtanh.f32 %v2153_v1  ;;  %v3614_v7 = vpop.eup %3613  ;;  %v2118_v34 = vmul.f32 %v3604_v61, %v5558_v43  ;;  %v5620_v63 = vstv %s5585_s16  ;;  %v2187_v39 = vmul.f32 %v5567_v52, %v2182_v50  ;;  %s5767_s16 = sld [smem:[#allocation9 + $0x2d]] }
 0x223   : > { %v2194_v47 = vadd.f32 %v2192_v62, %v2184_v17  ;;  %v3616_v30 = vpop.eup %3615  ;;  %v2119_v54 = vmul.f32 %v3606_v6, %v5558_v43  ;;  %3633 = vtanh.f32 %v2154_v24  ;;  %v2188_v16 = vmul.f32 %v5572_v23, %v2182_v50 }
 0x224   : > { %v2195_v57 = vadd.f32 %v2192_v62, %v2185_v46  ;;  %v3618_v15 = vpop.eup %3617  ;;  %v2087_v14 = vadd.f32 %v2079_v18, %v5551_v4  ;;  %v2120_v40 = vmul.f32 %v3608_v38, %v5558_v43  ;;  %v2121_v51 = vmul.f32 %v3610_v20, %v5558_v43 }
 0x225   : > { %v2189_v25 = vmul.f32 %v5581_v10, %v2182_v50  ;;  %v2122_v45 = vmul.f32 %v3612_v60, %v5558_v43  ;;  %v2190_v5 = vmul.f32 %v5590_v26, %v2182_v50  ;;  %v2196_v37 = vadd.f32 %v2192_v62, %v2186_v56 }
 0x226   : > { %v3620_v22 = vpop.eup %3619  ;;  %3635 = vtanh.f32 %v2193_v29  ;;  %v2123_v4 = vmul.f32 %v3614_v7, %v5558_v43  ;;  %v2124_v53 = vmul.f32 %v3616_v30, %v5558_v43  ;;  %v2197_v3 = vadd.f32 %v2192_v62, %v2187_v39 }
 0x227   : > { %v3622_v32 = vpop.eup %3621  ;;  %3637 = vtanh.f32 %v2194_v47  ;;  %v2126_v9 = vadd.f32 %v2118_v34, %v5578_v27  ;;  %v2127_v31 = vadd.f32 %v2119_v54, %v2081_v49  ;;  %v2198_v33 = vadd.f32 %v2192_v62, %v2188_v16 }
 0x228   : > { %v3624_v28 = vpop.eup %3623  ;;  %3639 = vtanh.f32 %v2195_v57  ;;  %v2125_v8 = vmul.f32 %v3618_v15, %v5558_v43  ;;  %v2128_v50 = vadd.f32 %v2120_v40, %v2082_v48  ;;  %v2199_v19 = vadd.f32 %v2192_v62, %v2189_v25 }
 0x229   : > { %v3626_v59 = vpop.eup %3625  ;;  %v2228_v0 = vstv %s5614_s11  ;;  %v2129_v36 = vadd.f32 %v2121_v51, %v2083_v21  ;;  %v2130_v61 = vadd.f32 %v2122_v45, %v2084_v55  ;;  %v2200_v11 = vadd.f32 %v2192_v62, %v2190_v5  ;;  %s5779_s11 = sld [smem:[#allocation3 + $0x2f]] }
 0x22a   : > { %v3628_v13 = vpop.eup %3627  ;;  %3641 = vtanh.f32 %v2196_v37  ;;  %v2131_v44 = vadd.f32 %v2123_v4, %v2085_v58  ;;  %v2132_v6 = vadd.f32 %v2124_v53, %v2086_v35  ;;  %v2164_v27 = vmul.f32 %v3620_v22, %v5620_v63 }
 0x22b   : > { %v3630_v1 = vpop.eup %3629  ;;  %3643 = vtanh.f32 %v2197_v3  ;;  %v2165_v17 = vmul.f32 %v3622_v32, %v5620_v63  ;;  %v2166_v43 = vmul.f32 %v3624_v28, %v5620_v63  ;;  %v2229_v48 = vmul.f32 %v5597_v41, %v2228_v0 }
 0x22c   : > { %v3632_v49 = vpop.eup %3631  ;;  %3645 = vtanh.f32 %v2198_v33  ;;  %v2133_v21 = vadd.f32 %v2125_v8, %v2087_v14  ;;  %v2167_v38 = vmul.f32 %v3626_v59, %v5620_v63  ;;  %v2238_v55 = vstv %s5629_s13  ;;  %s5790_s13 = sld [smem:[#allocation9 + $0x2e]] }
 0x22d   : > { %3647 = vtanh.f32 %v2199_v19  ;;  %v3634_v24 = vpop.eup %3633  ;;  %v2168_v46 = vmul.f32 %v3628_v13, %v5620_v63  ;;  %v5650_v20 = vstv %s5632_s14  ;;  %v2230_v18 = vmul.f32 %v5603_v12, %v2228_v0  ;;  %s5794_s14 = sld [smem:[#allocation7 + $0x2f]] }
 0x22e   : > { %3649 = vtanh.f32 %v2200_v11  ;;  %v2169_v58 = vmul.f32 %v3630_v1, %v5620_v63  ;;  %v2170_v62 = vmul.f32 %v3632_v49, %v5620_v63  ;;  %v2172_v60 = vadd.f32 %v2164_v27, %v2126_v9 }
 0x22f   : > { %v2231_v35 = vmul.f32 %v5608_v2, %v2228_v0  ;;  %v2173_v29 = vadd.f32 %v2165_v17, %v2127_v31  ;;  %v2174_v7 = vadd.f32 %v2166_v43, %v2128_v50  ;;  %v2232_v34 = vmul.f32 %v5561_v42, %v2228_v0 }
 0x230   : > { %v3636_v56 = vpop.eup %3635  ;;  %v2239_v39 = vadd.f32 %v2238_v55, %v2229_v48  ;;  %v2171_v30 = vmul.f32 %v3634_v24, %v5620_v63  ;;  %v2175_v54 = vadd.f32 %v2167_v38, %v2129_v36  ;;  %v2233_v16 = vmul.f32 %v5567_v52, %v2228_v0 }
 0x231   : > { %v3638_v47 = vpop.eup %3637  ;;  %v2234_v57 = vmul.f32 %v5572_v23, %v2228_v0  ;;  %v2176_v14 = vadd.f32 %v2168_v46, %v2130_v61  ;;  %v2235_v40 = vmul.f32 %v5581_v10, %v2228_v0  ;;  %v2236_v51 = vmul.f32 %v5590_v26, %v2228_v0 }
 0x232   : > { %v3640_v15 = vpop.eup %3639  ;;  %v2240_v25 = vadd.f32 %v2238_v55, %v2230_v18  ;;  %v2177_v22 = vadd.f32 %v2169_v58, %v2131_v44  ;;  %v2178_v45 = vadd.f32 %v2170_v62, %v2132_v6  ;;  %v2210_v5 = vmul.f32 %v3636_v56, %v5650_v20 }
 0x233   : > { %v2241_v37 = vadd.f32 %v2238_v55, %v2231_v35  ;;  %v2211_v32 = vmul.f32 %v3638_v47, %v5650_v20  ;;  %v2242_v4 = vadd.f32 %v2238_v55, %v2232_v34  ;;  %3651 = vtanh.f32 %v2239_v39 }
 0x234   : > { %v3642_v63 = vpop.eup %3641  ;;  %v2274_v53 = vstv %s5644_s15  ;;  %v2179_v28 = vadd.f32 %v2171_v30, %v2133_v21  ;;  %v2212_v9 = vmul.f32 %v3640_v15, %v5650_v20  ;;  %v2243_v31 = vadd.f32 %v2238_v55, %v2233_v16  ;;  %s5804_s15 = sld [smem:[#allocation3 + $0x30]] }
 0x235   : > { %v3644_v3 = vpop.eup %3643  ;;  %v2244_v33 = vadd.f32 %v2238_v55, %v2234_v57  ;;  %v2245_v8 = vadd.f32 %v2238_v55, %v2235_v40  ;;  %v2246_v50 = vadd.f32 %v2238_v55, %v2236_v51  ;;  %3653 = vtanh.f32 %v2240_v25 }
 0x236   : > { %v3646_v59 = vpop.eup %3645  ;;  %v5673_v19 = vstv %s5652_s18  ;;  %v5675_v13 = vadd.f32 %v2210_v5, %v2172_v60  ;;  %3655 = vtanh.f32 %v2241_v37  ;;  %v2275_v36 = vmul.f32 %v5597_v41, %v2274_v53  ;;  %s5826_s18 = sld [smem:[#allocation9 + $0x2f]] }
 0x237   : > { %v3648_v0 = vpop.eup %3647  ;;  %v2284_v61 = vstv %s5658_s25  ;;  %v2213_v1 = vmul.f32 %v3642_v63, %v5650_v20  ;;  %v5680_v44 = vadd.f32 %v2211_v32, %v2173_v29  ;;  %3657 = vtanh.f32 %v2242_v4  ;;  %s5829_s25 = sld [smem:[#allocation7 + $0x30]] }
 0x238   : > { %v3650_v11 = vpop.eup %3649  ;;  %v2276_v6 = vmul.f32 %v5603_v12, %v2274_v53  ;;  %v2214_v27 = vmul.f32 %v3644_v3, %v5650_v20  ;;  %v5684_v49 = vadd.f32 %v2212_v9, %v2174_v7  ;;  %3659 = vtanh.f32 %v2243_v31 }
 0x239   : > { %v2277_v17 = vmul.f32 %v5608_v2, %v2274_v53  ;;  %v2215_v43 = vmul.f32 %v3646_v59, %v5650_v20  ;;  %v2216_v48 = vmul.f32 %v3648_v0, %v5650_v20  ;;  %3661 = vtanh.f32 %v2244_v33 }
 0x23a   : > { %v2278_v21 = vmul.f32 %v5561_v42, %v2274_v53  ;;  %v2217_v38 = vmul.f32 %v3650_v11, %v5650_v20  ;;  %3663 = vtanh.f32 %v2245_v8  ;;  %v2279_v55 = vmul.f32 %v5567_v52, %v2274_v53 }
 0x23b   : > { %v2285_v24 = vadd.f32 %v2284_v61, %v2275_v36  ;;  %v2280_v46 = vmul.f32 %v5572_v23, %v2274_v53  ;;  %v2281_v18 = vmul.f32 %v5581_v10, %v2274_v53  ;;  %v2286_v58 = vadd.f32 %v2284_v61, %v2276_v6 }
 0x23c   : > { %v2320_v62 = vstv %s5669_s24  ;;  %v5699_v60 = vadd.f32 %v2213_v1, %v2175_v54  ;;  %v5701_v35 = vadd.f32 %v2214_v27, %v2176_v14  ;;  %v2282_v56 = vmul.f32 %v5590_v26, %v2274_v53  ;;  %s5843_s24 = sld [smem:[#allocation3 + $0x31]] }
 0x23d   : > { %v2287_v29 = vadd.f32 %v2284_v61, %v2277_v17  ;;  %v3652_v7 = vpop.eup %3651  ;;  %v5704_v34 = vadd.f32 %v2215_v43, %v2177_v22  ;;  %v5706_v20 = vadd.f32 %v2216_v48, %v2178_v45  ;;  %3665 = vtanh.f32 %v2246_v50 }
 0x23e   : > { %v2288_v39 = vadd.f32 %v2284_v61, %v2278_v21  ;;  %v5710_v47 = vadd.f32 %v2217_v38, %v2179_v28  ;;  %v2289_v30 = vadd.f32 %v2284_v61, %v2279_v55  ;;  %3667 = vtanh.f32 %v2285_v24 }
 0x23f   : > { %v2321_v54 = vmul.f32 %v5597_v41, %v2320_v62  ;;  %v3654_v16 = vpop.eup %3653  ;;  %v2290_v57 = vadd.f32 %v2284_v61, %v2280_v46  ;;  %v2291_v15 = vadd.f32 %v2284_v61, %v2281_v18  ;;  %3669 = vtanh.f32 %v2286_v58 }
 0x240   : > { %v2322_v14 = vmul.f32 %v5603_v12, %v2320_v62  ;;  %v3656_v40 = vpop.eup %3655  ;;  %v2256_v51 = vmul.f32 %v3652_v7, %v5673_v19  ;;  %v2292_v25 = vadd.f32 %v2284_v61, %v2282_v56  ;;  %3671 = vtanh.f32 %v2287_v29 }
 0x241   : > { %v2323_v22 = vmul.f32 %v5608_v2, %v2320_v62  ;;  %v3658_v45 = vpop.eup %3657  ;;  %3673 = vtanh.f32 %v2288_v39  ;;  %v5717_v5 = vstv %s5689_s27  ;;  %v2324_v37 = vmul.f32 %v5561_v42, %v2320_v62  ;;  %s5860_s27 = sld [smem:[#allocation7 + $0x31]] }
 0x242   : > { %v2330_v63 = vstv %s5692_s7  ;;  %v3660_v32 = vpop.eup %3659  ;;  %v2257_v4 = vmul.f32 %v3654_v16, %v5673_v19  ;;  %3675 = vtanh.f32 %v2289_v30  ;;  %v2325_v53 = vmul.f32 %v5567_v52, %v2320_v62  ;;  %s5873_s7 = sld [smem:[#allocation9 + $0x30]] }
 0x243   : > { %v2331_v3 = vadd.f32 %v2330_v63, %v2321_v54  ;;  %v3662_v28 = vpop.eup %3661  ;;  %v2258_v9 = vmul.f32 %v3656_v40, %v5673_v19  ;;  %3677 = vtanh.f32 %v2290_v57  ;;  %v2326_v31 = vmul.f32 %v5572_v23, %v2320_v62 }
 0x244   : > { %v2332_v33 = vadd.f32 %v2330_v63, %v2322_v14  ;;  %v3664_v59 = vpop.eup %3663  ;;  %v5728_v8 = vadd.f32 %v2256_v51, %v5675_v13  ;;  %3679 = vtanh.f32 %v2291_v15  ;;  %v2327_v50 = vmul.f32 %v5581_v10, %v2320_v62 }
 0x245   : > { %v2333_v0 = vadd.f32 %v2330_v63, %v2323_v22  ;;  %v2259_v36 = vmul.f32 %v3658_v45, %v5673_v19  ;;  %3681 = vtanh.f32 %v2292_v25  ;;  %v2334_v61 = vadd.f32 %v2330_v63, %v2324_v37 }
 0x246   : > { %v2366_v11 = vstv %s5708_s6  ;;  %v2260_v1 = vmul.f32 %v3660_v32, %v5673_v19  ;;  %v2328_v6 = vmul.f32 %v5590_v26, %v2320_v62  ;;  %v2335_v27 = vadd.f32 %v2330_v63, %v2325_v53  ;;  %s5892_s6 = sld [smem:[#allocation9 + $0x31]] }
 0x247   : > { %3683 = vtanh.f32 %v2331_v3  ;;  %v3666_v17 = vpop.eup %3665  ;;  %v2261_v13 = vmul.f32 %v3662_v28, %v5673_v19  ;;  %v2265_v43 = vadd.f32 %v2257_v4, %v5680_v44  ;;  %v2336_v48 = vadd.f32 %v2330_v63, %v2326_v31 }
 0x248   : > { %3685 = vtanh.f32 %v2332_v33  ;;  %v3668_v21 = vpop.eup %3667  ;;  %v2262_v38 = vmul.f32 %v3664_v59, %v5673_v19  ;;  %v2337_v55 = vadd.f32 %v2330_v63, %v2327_v50  ;;  %v2367_v24 = vmul.f32 %v5597_v41, %v2366_v11 }
 0x249   : > { %3687 = vtanh.f32 %v2333_v0  ;;  %v3670_v46 = vpop.eup %3669  ;;  %v2266_v18 = vadd.f32 %v2258_v9, %v5684_v49  ;;  %v2267_v58 = vadd.f32 %v2259_v36, %v5699_v60  ;;  %v2368_v62 = vmul.f32 %v5603_v12, %v2366_v11 }
 0x24a   : > { %3689 = vtanh.f32 %v2334_v61  ;;  %v3672_v56 = vpop.eup %3671  ;;  %v2268_v44 = vadd.f32 %v2260_v1, %v5701_v35  ;;  %v2338_v29 = vadd.f32 %v2330_v63, %v2328_v6  ;;  %v2369_v7 = vmul.f32 %v5608_v2, %v2366_v11 }
 0x24b   : > { %3691 = vtanh.f32 %v2335_v27  ;;  %v3674_v39 = vpop.eup %3673  ;;  %v2263_v30 = vmul.f32 %v3666_v17, %v5673_v19  ;;  %v2370_v54 = vmul.f32 %v5561_v42, %v2366_v11  ;;  %v2376_v49 = vstv %s5725_s8  ;;  %s5900_s8 = sld [smem:[#allocation2]] }
 0x24c   : > { %3693 = vtanh.f32 %v2336_v48  ;;  %v3676_v60 = vpop.eup %3675  ;;  %v2269_v16 = vadd.f32 %v2261_v13, %v5704_v34  ;;  %v2270_v57 = vadd.f32 %v2262_v38, %v5706_v20  ;;  %v2377_v35 = vadd.f32 %v2376_v49, %v2367_v24 }
 0x24d   : > { %3695 = vtanh.f32 %v2337_v55  ;;  %v3678_v15 = vpop.eup %3677  ;;  %v2302_v14 = vmul.f32 %v3668_v21, %v5717_v5  ;;  %v5755_v40 = vstv %s5732_s9  ;;  %v2371_v19 = vmul.f32 %v5567_v52, %v2366_v11  ;;  %s282_s9 = scalar_lea.vmem [#allocation11], %s2742_s30 }
 0x24e   : > { %v2378_v51 = vadd.f32 %v2376_v49, %v2368_v62  ;;  %v3680_v25 = vpop.eup %3679  ;;  %v2303_v22 = vmul.f32 %v3670_v46, %v5717_v5  ;;  %3697 = vtanh.f32 %v2338_v29  ;;  %v2372_v45 = vmul.f32 %v5572_v23, %v2366_v11 }
 0x24f   : > { %v2379_v37 = vadd.f32 %v2376_v49, %v2369_v7  ;;  %v3682_v34 = vpop.eup %3681  ;;  %v2271_v20 = vadd.f32 %v2263_v30, %v5710_v47  ;;  %v2304_v63 = vmul.f32 %v3672_v56, %v5717_v5  ;;  %v2373_v32 = vmul.f32 %v5581_v10, %v2366_v11 }
 0x250   : > { %v2380_v4 = vadd.f32 %v2376_v49, %v2370_v54  ;;  %v2305_v3 = vmul.f32 %v3674_v39, %v5717_v5  ;;  %v2306_v28 = vmul.f32 %v3676_v60, %v5717_v5  ;;  %v2374_v9 = vmul.f32 %v5590_v26, %v2366_v11 }
 0x251   : > { %v3684_v53 = vpop.eup %3683  ;;  %3699 = vtanh.f32 %v2377_v35  ;;  %v2307_v47 = vmul.f32 %v3678_v15, %v5717_v5  ;;  %v2308_v33 = vmul.f32 %v3680_v25, %v5717_v5  ;;  %v2381_v59 = vadd.f32 %v2376_v49, %v2371_v19 }
 0x252   : > { %v3686_v31 = vpop.eup %3685  ;;  %3701 = vtanh.f32 %v2378_v51  ;;  %v2310_v0 = vadd.f32 %v2302_v14, %v5728_v8  ;;  %v2311_v36 = vadd.f32 %v2303_v22, %v2265_v43  ;;  %v2382_v61 = vadd.f32 %v2376_v49, %v2372_v45 }
 0x253   : > { %v3688_v50 = vpop.eup %3687  ;;  %3703 = vtanh.f32 %v2379_v37  ;;  %v2309_v6 = vmul.f32 %v3682_v34, %v5717_v5  ;;  %v2383_v27 = vadd.f32 %v2376_v49, %v2373_v32  ;;  %v2412_v11 = vstv %s5749_s10  ;;  %s2897_s10 = sshll.u32 %s4025_s3, 10  ;;  %s2612_s3 = scalar_lea.sflag [#allocation5], %s4161_s17 }
 0x254   : > { %v3690_v1 = vpop.eup %3689  ;;  %3705 = vtanh.f32 %v2380_v4  ;;  %v2312_v13 = vadd.f32 %v2304_v63, %v2266_v18  ;;  %v2313_v48 = vadd.f32 %v2305_v3, %v2267_v58  ;;  %v2314_v21 = vadd.f32 %v2306_v28, %v2268_v44  ;;  %s5919_s30 = scalar_lea.hbm %s5970_s5, %s2897_s10 }
 0x255   : > { %v3692_v17 = vpop.eup %3691  ;;  %v2384_v38 = vadd.f32 %v2376_v49, %v2374_v9  ;;  %v2315_v24 = vadd.f32 %v2307_v47, %v2269_v16  ;;  %v2316_v46 = vadd.f32 %v2308_v33, %v2270_v57  ;;  %v2348_v8 = vmul.f32 %v3684_v53, %v5755_v40 }
 0x256   : > { %v3694_v55 = vpop.eup %3693  ;;  %3707 = vtanh.f32 %v2381_v59  ;;  %v2349_v62 = vmul.f32 %v3686_v31, %v5755_v40  ;;  %v2350_v5 = vmul.f32 %v3688_v50, %v5755_v40  ;;  %v2413_v56 = vmul.f32 %v5597_v41, %v2412_v11 }
 0x257   : > { %v3696_v43 = vpop.eup %3695  ;;  %3709 = vtanh.f32 %v2382_v61  ;;  %v2317_v18 = vadd.f32 %v2309_v6, %v2271_v20  ;;  %v2351_v58 = vmul.f32 %v3690_v1, %v5755_v40  ;;  %v2422_v44 = vstv %s5763_s12  ;;  %s2625_s12 = sshll.u32 %s282_s9, 4  ;;  %s5921_s12 = int_to_ptr.vmem [resolvable:$true] %s2625_s12 }
 0x258   : > { %3711 = vtanh.f32 %v2383_v27  ;;  %v3698_v29 = vpop.eup %3697  ;;  %v2352_v7 = vmul.f32 %v3692_v17, %v5755_v40  ;;  %v5785_v39 = vstv %s5767_s16  ;;  %v2414_v30 = vmul.f32 %v5603_v12, %v2412_v11 }
 0x259   : > { %3713 = vtanh.f32 %v2384_v38  ;;  %v2353_v54 = vmul.f32 %v3694_v55, %v5755_v40  ;;  %v2354_v49 = vmul.f32 %v3696_v43, %v5755_v40  ;;  %v2415_v60 = vmul.f32 %v5608_v2, %v2412_v11 }
 0x25a   : > { %v2416_v16 = vmul.f32 %v5561_v42, %v2412_v11  ;;  %v2356_v35 = vadd.f32 %v2348_v8, %v2310_v0  ;;  %v2357_v15 = vadd.f32 %v2349_v62, %v2311_v36  ;;  %v2358_v14 = vadd.f32 %v2350_v5, %v2312_v13 }
 0x25b   : > { %v3700_v57 = vpop.eup %3699  ;;  %v2423_v19 = vadd.f32 %v2422_v44, %v2413_v56  ;;  %v2355_v25 = vmul.f32 %v3698_v29, %v5755_v40  ;;  %v2359_v22 = vadd.f32 %v2351_v58, %v2313_v48  ;;  %v2417_v45 = vmul.f32 %v5567_v52, %v2412_v11 }
 0x25c   : > { %v3702_v51 = vpop.eup %3701  ;;  %v2418_v37 = vmul.f32 %v5572_v23, %v2412_v11  ;;  %v2360_v20 = vadd.f32 %v2352_v7, %v2314_v21  ;;  %v2419_v63 = vmul.f32 %v5581_v10, %v2412_v11  ;;  %v2420_v32 = vmul.f32 %v5590_v26, %v2412_v11 }
 0x25d   : > { %v3704_v34 = vpop.eup %3703  ;;  %v2424_v4 = vadd.f32 %v2422_v44, %v2414_v30  ;;  %v2361_v3 = vadd.f32 %v2353_v54, %v2315_v24  ;;  %v2362_v28 = vadd.f32 %v2354_v49, %v2316_v46  ;;  %v2425_v9 = vadd.f32 %v2422_v44, %v2415_v60 }
 0x25e   : > { %v3706_v53 = vpop.eup %3705  ;;  %v2426_v31 = vadd.f32 %v2422_v44, %v2416_v16  ;;  %v2394_v40 = vmul.f32 %v3700_v57, %v5785_v39  ;;  %v2395_v47 = vmul.f32 %v3702_v51, %v5785_v39  ;;  %3715 = vtanh.f32 %v2423_v19 }
 0x25f   : > { %v2458_v33 = vstv %s5779_s11  ;;  %v2363_v50 = vadd.f32 %v2355_v25, %v2317_v18  ;;  %v2396_v0 = vmul.f32 %v3704_v34, %v5785_v39  ;;  %v2427_v36 = vadd.f32 %v2422_v44, %v2417_v45 }
 0x260   : > { %v3708_v59 = vpop.eup %3707  ;;  %v2428_v61 = vadd.f32 %v2422_v44, %v2418_v37  ;;  %v2397_v6 = vmul.f32 %v3706_v53, %v5785_v39  ;;  %v2429_v27 = vadd.f32 %v2422_v44, %v2419_v63  ;;  %v2430_v11 = vadd.f32 %v2422_v44, %v2420_v32 }
 0x261   : > { %v3710_v1 = vpop.eup %3709  ;;  %3717 = vtanh.f32 %v2424_v4  ;;  %v5809_v13 = vstv %s5790_s13  ;;  %v2459_v48 = vmul.f32 %v5597_v41, %v2458_v33  ;;  %v2468_v21 = vstv %s5794_s14  ;;  %s3886_s13 = scalar_lea.vmem %s5921_s12, 1024  ;;  %s3968_s14 = smov [#allocation11]  }
 0x262   : > { %v3712_v17 = vpop.eup %3711  ;;  %3719 = vtanh.f32 %v2425_v9  ;;  %v5813_v55 = vadd.f32 %v2394_v40, %v2356_v35  ;;  %v5815_v24 = vadd.f32 %v2395_v47, %v2357_v15  ;;  %v2460_v46 = vmul.f32 %v5603_v12, %v2458_v33  ;;  %p3887_p12 = scmp.ne.s32.totalorder %s5921_s12, %s3886_s13 }
 0x263   : > { %v3714_v38 = vpop.eup %3713  ;;  %3721 = vtanh.f32 %v2426_v31  ;;  %v2398_v8 = vmul.f32 %v3708_v59, %v5785_v39  ;;  %v5819_v43 = vadd.f32 %v2396_v0, %v2358_v14  ;;  %v2461_v62 = vmul.f32 %v5608_v2, %v2458_v33 }
 0x264   : > { %3723 = vtanh.f32 %v2427_v36  ;;  %v2399_v5 = vmul.f32 %v3710_v1, %v5785_v39  ;;  %v2400_v56 = vmul.f32 %v3712_v17, %v5785_v39  ;;  %v5824_v18 = vadd.f32 %v2397_v6, %v2359_v22  ;;  %p3888_p0 = pnand %p3887_p12, %p4105_p9 }
 0x265   : > { %v2462_v58 = vmul.f32 %v5561_v42, %v2458_v33  ;;  %v2401_v44 = vmul.f32 %v3714_v38, %v5785_v39  ;;  %3725 = vtanh.f32 %v2428_v61  ;;  %v2463_v29 = vmul.f32 %v5567_v52, %v2458_v33 }
 0x266   : > { %v2469_v7 = vadd.f32 %v2468_v21, %v2459_v48  ;;  %v2464_v30 = vmul.f32 %v5572_v23, %v2458_v33  ;;  %v2465_v54 = vmul.f32 %v5581_v10, %v2458_v33  ;;  %v2470_v49 = vadd.f32 %v2468_v21, %v2460_v46  ;;  %p3889_p3 = pneg %p3888_p0 }
 0x267   : > { %v2504_v60 = vstv %s5804_s15  ;;  %v5836_v16 = vadd.f32 %v2398_v8, %v2360_v20  ;;  %3727 = vtanh.f32 %v2429_v27  ;;  %v2466_v57 = vmul.f32 %v5590_v26, %v2458_v33  ;;  %s3890_s15 = sshll.u32 %s3968_s14, 4  ;;  %s3891_s15 = int_to_ptr.vmem [resolvable:$false] %s3890_s15 }
 0x268   : > { %v2471_v35 = vadd.f32 %v2468_v21, %v2461_v62  ;;  %v3716_v15 = vpop.eup %3715  ;;  %v5839_v14 = vadd.f32 %v2399_v5, %v2361_v3  ;;  %v5841_v39 = vadd.f32 %v2400_v56, %v2362_v28  ;;  %3729 = vtanh.f32 %v2430_v11  ;;  %p3893_p2 = scmp.lt.s32.totalorder %s5921_s12, %s3891_s15 }
 0x269   : > { %v2472_v19 = vadd.f32 %v2468_v21, %v2462_v58  ;;  %v5845_v51 = vadd.f32 %v2401_v44, %v2363_v50  ;;  %v2473_v25 = vadd.f32 %v2468_v21, %v2463_v29  ;;  %3731 = vtanh.f32 %v2469_v7 }
 0x26a   : > { %v2505_v22 = vmul.f32 %v5597_v41, %v2504_v60  ;;  %v2474_v37 = vadd.f32 %v2468_v21, %v2464_v30  ;;  %v2475_v34 = vadd.f32 %v2468_v21, %v2465_v54  ;;  %3733 = vtanh.f32 %v2470_v49 }
 0x26b   : > { %v3718_v45 = vpop.eup %3717  ;;  %v2506_v20 = vmul.f32 %v5603_v12, %v2504_v60  ;;  %v2440_v32 = vmul.f32 %v3716_v15, %v5809_v13  ;;  %v2476_v4 = vadd.f32 %v2468_v21, %v2466_v57  ;;  %3735 = vtanh.f32 %v2471_v35 }
 0x26c   : > { %v3720_v63 = vpop.eup %3719  ;;  %v2507_v53 = vmul.f32 %v5608_v2, %v2504_v60  ;;  %3737 = vtanh.f32 %v2472_v19  ;;  %v5852_v28 = vstv %s5826_s18  ;;  %v2508_v9 = vmul.f32 %v5561_v42, %v2504_v60  ;;  %s3892_s18 = scalar_lea.vmem %s3891_s15, 2048 }
 0x26d   : > { %v3722_v3 = vpop.eup %3721  ;;  %v2514_v31 = vstv %s5829_s25  ;;  %v2441_v47 = vmul.f32 %v3718_v45, %v5809_v13  ;;  %3739 = vtanh.f32 %v2473_v25  ;;  %v2509_v33 = vmul.f32 %v5567_v52, %v2504_v60  ;;  %p3894_p4 = scmp.lt.s32.totalorder %s3892_s18, %s3886_s13 }
 0x26e   : > { %v3724_v40 = vpop.eup %3723  ;;  %v2515_v59 = vadd.f32 %v2514_v31, %v2505_v22  ;;  %3741 = vtanh.f32 %v2474_v37  ;;  %v2510_v50 = vmul.f32 %v5572_v23, %v2504_v60  ;;  %v2511_v0 = vmul.f32 %v5581_v10, %v2504_v60 }
 0x26f   : > { %v2516_v36 = vadd.f32 %v2514_v31, %v2506_v20  ;;  %v3726_v61 = vpop.eup %3725  ;;  %v2442_v1 = vmul.f32 %v3720_v63, %v5809_v13  ;;  %v5864_v6 = vadd.f32 %v2440_v32, %v5813_v55  ;;  %3743 = vtanh.f32 %v2475_v34  ;;  %p3895_p6 = por %p3894_p4, %p3893_p2 }
 0x270   : > { %v2517_v27 = vadd.f32 %v2514_v31, %v2507_v53  ;;  %3745 = vtanh.f32 %v2476_v4  ;;  %v2512_v11 = vmul.f32 %v5590_v26, %v2504_v60  ;;  %v2518_v17 = vadd.f32 %v2514_v31, %v2508_v9 }
 0x271   : > { %v2550_v48 = vstv %s5843_s24  ;;  %v3728_v21 = vpop.eup %3727  ;;  %v2443_v38 = vmul.f32 %v3722_v3, %v5809_v13  ;;  %v5870_v46 = vadd.f32 %v2441_v47, %v5815_v24  ;;  %v2519_v8 = vadd.f32 %v2514_v31, %v2509_v33  ;;  %p3896_p8 = pnand %p3895_p6, %p3889_p3 }
 0x272   : > { %3747 = vtanh.f32 %v2515_v59  ;;  %v3730_v62 = vpop.eup %3729  ;;  %v2444_v5 = vmul.f32 %v3724_v40, %v5809_v13  ;;  %v2520_v55 = vadd.f32 %v2514_v31, %v2510_v50  ;;  %v2521_v56 = vadd.f32 %v2514_v31, %v2511_v0 }
 0x273   : > { %3749 = vtanh.f32 %v2516_v36  ;;  %v3732_v58 = vpop.eup %3731  ;;  %v2551_v44 = vmul.f32 %v5597_v41, %v2550_v48  ;;  %v2552_v29 = vmul.f32 %v5603_v12, %v2550_v48  ;;  %v2553_v24 = vmul.f32 %v5608_v2, %v2550_v48 }
 0x274   : > { %3751 = vtanh.f32 %v2517_v27  ;;  %v3734_v7 = vpop.eup %3733  ;;  %v5879_v30 = vadd.f32 %v2442_v1, %v5819_v43  ;;  %v2522_v54 = vadd.f32 %v2514_v31, %v2512_v11  ;;  %v2554_v49 = vmul.f32 %v5561_v42, %v2550_v48 }
 0x275   : > { %3753 = vtanh.f32 %v2518_v17  ;;  %v3736_v60 = vpop.eup %3735  ;;  %v2445_v57 = vmul.f32 %v3726_v61, %v5809_v13  ;;  %v2451_v35 = vadd.f32 %v2443_v38, %v5824_v18  ;;  %v2555_v41 = vmul.f32 %v5567_v52, %v2550_v48 }
 0x276   : > { %3755 = vtanh.f32 %v2519_v8  ;;  %v3738_v12 = vpop.eup %3737  ;;  %v2556_v2 = vmul.f32 %v5572_v23, %v2550_v48  ;;  %v2557_v15 = vmul.f32 %v5581_v10, %v2550_v48  ;;  %v2560_v43 = vstv %s5860_s27 }
 0x277   : > { %3757 = vtanh.f32 %v2520_v55  ;;  %v3740_v19 = vpop.eup %3739  ;;  %v2561_v25 = vadd.f32 %v2560_v43, %v2551_v44  ;;  %v2562_v22 = vadd.f32 %v2560_v43, %v2552_v29  ;;  %v2563_v42 = vadd.f32 %v2560_v43, %v2553_v24 }
 0x278   : > { %3759 = vtanh.f32 %v2521_v56  ;;  %v3742_v45 = vpop.eup %3741  ;;  %v2446_v37 = vmul.f32 %v3728_v21, %v5809_v13  ;;  %v2558_v18 = vmul.f32 %v5590_v26, %v2550_v48  ;;  %v2564_v52 = vadd.f32 %v2560_v43, %v2554_v49 }
 0x279   : > { %3761 = vtanh.f32 %v2522_v54  ;;  %v3744_v34 = vpop.eup %3743  ;;  %v2447_v20 = vmul.f32 %v3730_v62, %v5809_v13  ;;  %v2486_v23 = vmul.f32 %v3732_v58, %v5852_v28  ;;  %v2565_v10 = vadd.f32 %v2560_v43, %v2555_v41 }
 0x27a   : > { %3763 = vtanh.f32 %v2561_v25  ;;  %v3746_v63 = vpop.eup %3745  ;;  %v2452_v32 = vadd.f32 %v2444_v5, %v5836_v16  ;;  %v2487_v4 = vmul.f32 %v3734_v7, %v5852_v28  ;;  %v2566_v53 = vadd.f32 %v2560_v43, %v2556_v2 }
 0x27b   : > { %3765 = vtanh.f32 %v2562_v22  ;;  %v2453_v26 = vadd.f32 %v2445_v57, %v5839_v14  ;;  %v2531_v9 = vstv %s5873_s7  ;;  %v2567_v31 = vadd.f32 %v2560_v43, %v2557_v15 }
 0x27c   : > { %v3748_v3 = vpop.eup %3747  ;;  %3767 = vtanh.f32 %v2563_v42  ;;  %v2454_v40 = vadd.f32 %v2446_v37, %v5841_v39  ;;  %v2488_v47 = vmul.f32 %v3736_v60, %v5852_v28  ;;  %v2568_v33 = vadd.f32 %v2560_v43, %v2558_v18 }
 0x27d   : > { %v3750_v13 = vpop.eup %3749  ;;  %3769 = vtanh.f32 %v2564_v52  ;;  %v2455_v16 = vadd.f32 %v2447_v20, %v5845_v51  ;;  %v2489_v50 = vmul.f32 %v3738_v12, %v5852_v28  ;;  %v2494_v0 = vadd.f32 %v2486_v23, %v5864_v6 }
 0x27e   : > { %v3752_v59 = vpop.eup %3751  ;;  %3771 = vtanh.f32 %v2565_v10  ;;  %v2490_v36 = vmul.f32 %v3740_v19, %v5852_v28  ;;  %v2495_v61 = vadd.f32 %v2487_v4, %v5870_v46  ;;  %v2532_v39 = vmul.f32 %v3748_v3, %v2531_v9 }
 0x27f   : > { %v3754_v14 = vpop.eup %3753  ;;  %3773 = vtanh.f32 %v2566_v53  ;;  %v2491_v27 = vmul.f32 %v3742_v45, %v5852_v28  ;;  %v2492_v11 = vmul.f32 %v3744_v34, %v5852_v28  ;;  %v2533_v17 = vmul.f32 %v3750_v13, %v2531_v9 }
 0x280   : > { %v3756_v1 = vpop.eup %3755  ;;  %3775 = vtanh.f32 %v2567_v31  ;;  %v2493_v48 = vmul.f32 %v3746_v63, %v5852_v28  ;;  %v2496_v6 = vadd.f32 %v2488_v47, %v5879_v30  ;;  %v2534_v21 = vmul.f32 %v3752_v59, %v2531_v9 }
 0x281   : > { %v3758_v51 = vpop.eup %3757  ;;  %3777 = vtanh.f32 %v2568_v33  ;;  %v2497_v8 = vadd.f32 %v2489_v50, %v2451_v35  ;;  %v2535_v46 = vmul.f32 %v3754_v14, %v2531_v9  ;;  %v2577_v62 = vstv %s5892_s6 }
 0x282   : > { %v3760_v38 = vpop.eup %3759  ;;  %v2498_v55 = vadd.f32 %v2490_v36, %v2452_v32  ;;  %v2536_v56 = vmul.f32 %v3756_v1, %v2531_v9  ;;  %v2540_v58 = vadd.f32 %v2532_v39, %v2494_v0  ;;  %v2499_v29 = vadd.f32 %v2491_v27, %v2453_v26 }
 0x283   : > { %v3762_v5 = vpop.eup %3761  ;;  %v2500_v24 = vadd.f32 %v2492_v11, %v2454_v40  ;;  %v2537_v7 = vmul.f32 %v3758_v51, %v2531_v9  ;;  %v2541_v54 = vadd.f32 %v2533_v17, %v2495_v61  ;;  %v2501_v28 = vadd.f32 %v2493_v48, %v2455_v16 }
 0x284   : > { %v3764_v44 = vpop.eup %3763  ;;  %v2538_v60 = vmul.f32 %v3760_v38, %v2531_v9  ;;  %v2542_v30 = vadd.f32 %v2534_v21, %v2496_v6  ;;  %v2539_v12 = vmul.f32 %v3762_v5, %v2531_v9  ;;  %v2543_v35 = vadd.f32 %v2535_v46, %v2497_v8 }
 0x285   : > { %v3766_v49 = vpop.eup %3765  ;;  %v2578_v57 = vmul.f32 %v3764_v44, %v2577_v62  ;;  %v2594_v15 = vstv %s5900_s8  ;;  %v2544_v19 = vadd.f32 %v2536_v56, %v2498_v55  ;;  %v2545_v45 = vadd.f32 %v2537_v7, %v2499_v29 }
 0x286   : > { %v3768_v41 = vpop.eup %3767  ;;  %v2579_v2 = vmul.f32 %v3766_v49, %v2577_v62  ;;  %v2546_v34 = vadd.f32 %v2538_v60, %v2500_v24  ;;  %v2547_v32 = vadd.f32 %v2539_v12, %v2501_v28 }
 0x287   : > { %v3770_v43 = vpop.eup %3769  ;;  %v2580_v25 = vmul.f32 %v3768_v41, %v2577_v62  ;;  %v2586_v22 = vadd.f32 %v2578_v57, %v2540_v58 }
 0x288   : > { %v3772_v42 = vpop.eup %3771  ;;  %v2581_v37 = vmul.f32 %v3770_v43, %v2577_v62  ;;  %v2587_v18 = vadd.f32 %v2579_v2, %v2541_v54 }
 0x289   : > { %v3774_v52 = vpop.eup %3773  ;;  %v2582_v20 = vmul.f32 %v3772_v42, %v2577_v62  ;;  %v2588_v23 = vadd.f32 %v2580_v25, %v2542_v30  ;;  %v2595_v10 = vadd.f32 %v2594_v15, %v2586_v22 }
 0x28a   : > { %v3776_v63 = vpop.eup %3775  ;;  %v2583_v4 = vmul.f32 %v3774_v52, %v2577_v62  ;;  %v2589_v53 = vadd.f32 %v2581_v37, %v2543_v35  ;;  %v2596_v3 = vadd.f32 %v2594_v15, %v2587_v18 }
 0x28b   : > { %v3778_v26 = vpop.eup %3777  ;;  %v2584_v9 = vmul.f32 %v3776_v63, %v2577_v62  ;;  %v2590_v31 = vadd.f32 %v2582_v20, %v2544_v19  ;;  %v2597_v13 = vadd.f32 %v2594_v15, %v2588_v23  ;;  %2603 = vst [vmem:[%s282_s9] sm:$0xff] %v2595_v10 }
 0x28c   : > { %v2585_v40 = vmul.f32 %v3778_v26, %v2577_v62  ;;  %v2591_v47 = vadd.f32 %v2583_v4, %v2545_v45  ;;  %v2598_v33 = vadd.f32 %v2594_v15, %v2589_v53  ;;  %2604 = vst [vmem:[%s282_s9 + $0x8] sm:$0xff] %v2596_v3 }
 0x28d   : > { %v2592_v59 = vadd.f32 %v2584_v9, %v2546_v34  ;;  %v2599_v16 = vadd.f32 %v2594_v15, %v2590_v31  ;;  %2605 = vst [vmem:[%s282_s9 + $0x10] sm:$0xff] %v2597_v13 }
 0x28e   : > { %v2593_v50 = vadd.f32 %v2585_v40, %v2547_v32  ;;  %v2600_v0 = vadd.f32 %v2594_v15, %v2591_v47  ;;  %2606 = vst [vmem:[%s282_s9 + $0x18] sm:$0xff] %v2598_v33 }
 0x28f   : > { %v2601_v14 = vadd.f32 %v2594_v15, %v2592_v59  ;;  %2607 = vst [vmem:[%s282_s9 + $0x20] sm:$0xff] %v2599_v16 }
 0x290   : > { %v2602_v36 = vadd.f32 %v2594_v15, %v2593_v50  ;;  %2608 = vst [vmem:[%s282_s9 + $0x28] sm:$0xff] %v2600_v0 }
 0x291   : > { %2609 = vst [vmem:[%s282_s9 + $0x30] sm:$0xff] %v2601_v14 }
 0x292   : > { %2610 = vst [vmem:[%s282_s9 + $0x38] sm:$0xff] %v2602_v36 }
 0x293   : > { %3899 = shalt.err (!%p3896_p8)
}
 0x294   : > { %s3900_s25 = scalar_lea.hbm %s5919_s30, 1024  ;;  %s3904_s7 = scalar_lea.hbm %s5970_s5, 2048 }
 0x295   : > { %p3901_p1 = scmp.ne.s32.totalorder %s5919_s30, %s3900_s25  ;;  %p3905_p7 = scmp.lt.u32.totalorder %s5919_s30, %s5970_s5 }
 0x296   : > { %p3906_p10 = scmp.lt.u32.totalorder %s3904_s7, %s3900_s25  ;;  %p3908_p12 = scmp.lt.u32.totalorder %s3900_s25, %s5919_s30 }
 0x297   : > { %p3902_p5 = pnand %p3901_p1, %p4105_p9 }
 0x298   : > { %p3907_p11 = por %p3906_p10, %p3905_p7 }
 0x299   : > { %p3903_p13 = pneg %p3902_p5 }
 0x29a   : > { %p3909_p0 = por %p3908_p12, %p3907_p11 }
 0x29c   : > { %p3910_p3 = pnand %p3909_p0, %p3903_p13 }
 0x29e   : > { %3913 = shalt.err (!%p3910_p3)
}
 0x29f   : > { %s3969_s9 = smov 128   ;;  %s3970_s10 = smov 8  }
 0x2a0   : > { %2912 = dma.vmem_to_hbm [thread:$0]  (%p4105_p9), %s5921_s12, 1024, %s5919_s30, %s2612_s3, %s3969_s9, %s3969_s9, %s3970_s10  }
 0x2a1 PF: > { %s2640_s16 = sand.u32 1, %s3948_s20   ;;  %p5987_p2 = scmp.ne.s32.totalorder %s5975_s26, 0 }
 0x2a2   : > { %p5988_p4 = scmp.ge.s32.totalorder %s3960_s23, 2  ;;  %s2641_s11 = scalar_lea.sflag [#allocation5], %s2640_s16 }
 0x2a4   : > { %p2929_p6 = pnand %p5988_p4, %p5987_p2 }
 0x2a6   : > { %3943 = dma.done.wait (!%p2929_p6), %s2641_s11, 1024  }
 0x2a7   : > { %3945 = vsyncadd (!%p2929_p6), %s2641_s11, 4294966272  ;;  %p21_p8 = scmp.ge.s32.totalorder %s4091_s19, 4   ;;  %s5989_s20 = smov %s3952_s21 }
 0x2a8   : > { %s5990_s21 = smov %s3956_s22  ;;  %s5991_s22 = smov %s4101_s28 }
 0x2a9   : > { %s5992_s23 = smov %s4091_s19  ;;  %23 = sbr.rel (!%p21_p8) target bundleno = 9 (0x9), region = 98 }
 0x2b0   :  { %2646 = vsyncpa [#allocation4], 1 }
 0x2b1   :  { %2648 = vsyncpa [#allocation4 + $0x1], 1 }
 0x2b2   :  { %2649 = vsyncpa [#allocation5], 1 }
 0x2b3   :  { %2651 = vsyncpa [#allocation5 + $0x1], 1 }
 0x2b4   :  { %2652 = vsyncpa [#allocation6], 1 }
 0x2b5   :  { %2654 = vsyncpa [#allocation6 + $0x1], 1 }
 0x2b6   :  { %2655 = vsyncpa [#allocation8], 1 }

</bundles_post_ra>
